<compile_context>
chip_gen: v7x
topology: tpu7x:2x2x1
jax: 0.10.0
libtpu: 0.0.40
codegen_flags: <defaults>
</compile_context>

<pallas_src>
import functools
import math

import jax
import jax.numpy as jnp
import numpy as np
from jax.experimental import pallas as pl
from jax.experimental.pallas import tpu as pltpu


# ---------------------------------------------------------------------------
# Shared math helpers (pure jnp). Used both INSIDE the Pallas kernels and by the
# pure-JAX reference so the self-check mirrors the kernel math exactly.
# ---------------------------------------------------------------------------

def layer_norm(x, g, b, eps=1e-5):
    mu = jnp.mean(x, axis=-1, keepdims=True)
    var = jnp.mean(jnp.square(x - mu), axis=-1, keepdims=True)
    return (x - mu) * jax.lax.rsqrt(var + eps) * g + b


def linear(x, w, b=None):
    # bf16 MXU inputs, f32 accumulation (perf feedback: bf16 weights).
    y = jnp.dot(x.astype(w.dtype), w, preferred_element_type=jnp.float32)
    if b is not None:
        y = y + b
    return y


def mha(x_q, x_kv, wq, bq, wk, bk, wv, bv, wo, bo, *, n_head, causal):
    tq, c = x_q.shape
    tk = x_kv.shape[0]
    dk = c // n_head
    scale = 1.0 / float(np.sqrt(dk))
    q = linear(x_q, wq, bq)
    k = linear(x_kv, wk, bk)
    v = linear(x_kv, wv, bv)
    heads = []
    for h in range(n_head):                       # static unroll over heads
        sl = slice(h * dk, (h + 1) * dk)
        qh = q[:, sl].astype(jnp.bfloat16)
        kh = k[:, sl].astype(jnp.bfloat16)
        vh = v[:, sl].astype(jnp.bfloat16)
        s = jax.lax.dot_general(qh, kh, (((1,), (1,)), ((), ())),
                                preferred_element_type=jnp.float32) * scale
        if causal:
            row = jax.lax.broadcasted_iota(jnp.int32, (tq, tk), 0)
            col = jax.lax.broadcasted_iota(jnp.int32, (tq, tk), 1)
            s = jnp.where(col <= row, s, -jnp.inf)
        s = s - jnp.max(s, axis=-1, keepdims=True)
        e = jnp.exp(s)
        p = e / jnp.sum(e, axis=-1, keepdims=True)
        # TODO(synk): training-mode attention dropout (p>0) would need pltpu.prng_* masking.
        heads.append(jnp.dot(p.astype(jnp.bfloat16), vh,
                             preferred_element_type=jnp.float32))
    att = jnp.concatenate(heads, axis=-1)
    return linear(att, wo, bo)


def ffn(x, w1, b1, w2, b2):
    h = jnp.maximum(linear(x, w1, b1), 0.0)
    return linear(h, w2, b2)


def encoder_layer_math(x, p, n_head):
    (ln1g, ln1b, wq, bq, wk, bk, wv, bv, wo, bo,
     ln2g, ln2b, w1, b1, w2, b2) = p
    x = layer_norm(x, ln1g, ln1b)
    x = x + mha(x, x, wq, bq, wk, bk, wv, bv, wo, bo, n_head=n_head, causal=False)
    x = x + ffn(layer_norm(x, ln2g, ln2b), w1, b1, w2, b2)
    return x


def decoder_layer_math(x, enc, p, n_head):
    (ln1g, ln1b, sq, sbq, sk, sbk, sv, sbv, so, sbo,
     ln2g, ln2b, cq, cbq, ck, cbk, cv, cbv, co, cbo,
     ln3g, ln3b, w1, b1, w2, b2) = p
    x = layer_norm(x, ln1g, ln1b)
    x = x + mha(x, x, sq, sbq, sk, sbk, sv, sbv, so, sbo, n_head=n_head, causal=True)
    x = layer_norm(x, ln2g, ln2b)
    x = x + mha(x, enc, cq, cbq, ck, cbk, cv, cbv, co, cbo, n_head=n_head, causal=False)
    x = layer_norm(x, ln3g, ln3b)
    x = x + ffn(x, w1, b1, w2, b2)
    return x


# ---------------------------------------------------------------------------
# Pallas kernels (one fused kernel per transformer layer + tiny finalizers)
# ---------------------------------------------------------------------------

def encoder_layer_kernel(x_ref, *refs, n_head):
    o_ref = refs[-1]
    params = tuple(r[...] for r in refs[:-1])
    o_ref[...] = encoder_layer_math(
        x_ref[...].astype(jnp.float32), params, n_head).astype(o_ref.dtype)


def decoder_layer_kernel(x_ref, enc_ref, *refs, n_head):
    o_ref = refs[-1]
    params = tuple(r[...] for r in refs[:-1])
    o_ref[...] = decoder_layer_math(
        x_ref[...].astype(jnp.float32), enc_ref[...].astype(jnp.float32),
        params, n_head).astype(o_ref.dtype)


def layernorm_kernel(x_ref, g_ref, b_ref, o_ref):
    o_ref[...] = layer_norm(
        x_ref[...].astype(jnp.float32), g_ref[...], b_ref[...]).astype(o_ref.dtype)


def head_kernel(x_ref, g_ref, b_ref, wlm_ref, o_ref):
    # Final decoder LayerNorm fused with lm_head; only the last position is needed.
    t = x_ref.shape[0]
    x_last = x_ref[t - 1:t, :].astype(jnp.float32)        # (1, C)
    xn = layer_norm(x_last, g_ref[...], b_ref[...])
    o_ref[...] = linear(xn, wlm_ref[...]).astype(o_ref.dtype)


# ---------------------------------------------------------------------------
# pallas_call wrappers
# ---------------------------------------------------------------------------

_PARALLEL = pltpu.CompilerParams(dimension_semantics=("parallel",))


def _resident_spec(p):
    nd = p.ndim
    return pl.BlockSpec(p.shape, lambda b, _n=nd: (0,) * _n)


def _act_spec(shape):
    # Squeeze the leading batch dim; one full (T, C)-like slab per grid step.
    trailing = len(shape) - 1
    return pl.BlockSpec((None,) + tuple(shape[1:]),
                        lambda b, _t=trailing: (b,) + (0,) * _t)


def run_encoder_layer(x, params, n_head):
    b, t, c = x.shape
    return pl.pallas_call(
        functools.partial(encoder_layer_kernel, n_head=n_head),
        out_shape=jax.ShapeDtypeStruct((b, t, c), jnp.float32),
        grid_spec=pl.GridSpec(
            grid=(b,),
            in_specs=[_act_spec(x.shape)] + [_resident_spec(p) for p in params],
            out_specs=_act_spec(x.shape),
        ),
        compiler_params=_PARALLEL,
    )(x, *params)


def run_decoder_layer(x, enc, params, n_head):
    b, t, c = x.shape
    return pl.pallas_call(
        functools.partial(decoder_layer_kernel, n_head=n_head),
        out_shape=jax.ShapeDtypeStruct((b, t, c), jnp.float32),
        grid_spec=pl.GridSpec(
            grid=(b,),
            in_specs=[_act_spec(x.shape), _act_spec(enc.shape)]
                     + [_resident_spec(p) for p in params],
            out_specs=_act_spec(x.shape),
        ),
        compiler_params=_PARALLEL,
    )(x, enc, *params)


def run_layernorm(x, g, beta):
    b, t, c = x.shape
    return pl.pallas_call(
        layernorm_kernel,
        out_shape=jax.ShapeDtypeStruct((b, t, c), jnp.float32),
        grid_spec=pl.GridSpec(
            grid=(b,),
            in_specs=[_act_spec(x.shape), _resident_spec(g), _resident_spec(beta)],
            out_specs=_act_spec(x.shape),
        ),
        compiler_params=_PARALLEL,
    )(x, g, beta)


def run_head(x, g, beta, wlm):
    b, t, c = x.shape
    v = wlm.shape[1]
    return pl.pallas_call(
        head_kernel,
        out_shape=jax.ShapeDtypeStruct((b, 1, v), jnp.float32),
        grid_spec=pl.GridSpec(
            grid=(b,),
            in_specs=[_act_spec(x.shape), _resident_spec(g), _resident_spec(beta),
                      _resident_spec(wlm)],
            out_specs=pl.BlockSpec((None, 1, v), lambda i: (i, 0, 0)),
        ),
        compiler_params=_PARALLEL,
    )(x, g, beta, wlm)


# ---------------------------------------------------------------------------
# Full Transformer forward (targets=None path): returns logits (B, 1, vocab)
# ---------------------------------------------------------------------------

def transformer_forward(idx, weights, *, n_head):
    b, t = idx.shape
    # TODO(synk): token-embedding gather, sinusoidal-PE add and the p=0 dropouts stay
    # in the XLA wrapper; training-mode dropout would need pltpu.prng_* masking.
    x = jnp.take(weights["wte"], idx, axis=0) + weights["pe"][:, :t, :]
    enc = x
    for p in weights["enc_layers"]:
        enc = run_encoder_layer(enc, p, n_head)
    enc = run_layernorm(enc, *weights["enc_norm"])
    dec = x
    for p in weights["dec_layers"]:
        dec = run_decoder_layer(dec, enc, p, n_head)
    logits = run_head(dec, weights["dec_norm"][0], weights["dec_norm"][1], weights["wlm"])
    return logits


def transformer_reference(idx, weights, *, n_head):
    b, t = idx.shape
    x = jnp.take(weights["wte"], idx, axis=0) + weights["pe"][:, :t, :]
    outs = []
    for i in range(b):
        xb = x[i].astype(jnp.float32)
        enc = xb
        for p in weights["enc_layers"]:
            enc = encoder_layer_math(enc, p, n_head)
        enc = layer_norm(enc, *weights["enc_norm"])
        dec = xb
        for p in weights["dec_layers"]:
            dec = decoder_layer_math(dec, enc, p, n_head)
        dec_last = layer_norm(dec[-1:, :], *weights["dec_norm"])
        outs.append(linear(dec_last, weights["wlm"]))
    return jnp.stack(outs, axis=0)


if __name__ == "__main__":
    # config: vocab_size=64, block_size=16, n_embd=32, n_head=4, n_layer=2,
    #         dropout=0.0 (inference), bias=True
    VOCAB, BLOCK, C, NH, NL = 64, 16, 32, 4, 2
    B, T = 2, 8
    H = 4 * C

    root = jax.random.PRNGKey(0)
    _ctr = [0]

    def rand(shape, scale=0.02, dtype=jnp.float32):
        _ctr[0] += 1
        k = jax.random.fold_in(root, _ctr[0])
        return (scale * jax.random.normal(k, shape, dtype=jnp.float32)).astype(dtype)

    def ln_params():
        return [1.0 + rand((1, C), scale=0.1), rand((1, C), scale=0.1)]

    def attn_params():
        ps = []
        for _ in range(4):                                  # q, k, v, out projections
            ps.append(rand((C, C), dtype=jnp.bfloat16))     # weight stored (in, out), bf16
            ps.append(rand((1, C)))                         # bias, f32
        return ps

    def ffn_params():
        return [rand((C, H), dtype=jnp.bfloat16), rand((1, H)),
                rand((H, C), dtype=jnp.bfloat16), rand((1, C))]

    weights = {
        "wte": rand((VOCAB, C)),                            # token embedding, f32
        "wlm": rand((C, VOCAB), dtype=jnp.bfloat16),        # lm_head (bias=False)
        "enc_layers": [tuple(ln_params() + attn_params() + ln_params() + ffn_params())
                       for _ in range(NL)],
        "dec_layers": [tuple(ln_params() + attn_params() + ln_params() + attn_params()
                             + ln_params() + ffn_params())
                       for _ in range(NL)],
        "enc_norm": tuple(ln_params()),
        "dec_norm": tuple(ln_params()),
    }

    # sinusoidal positional-encoding table (matches PositionalEncoding)
    pos = np.arange(BLOCK, dtype=np.float32)[:, None]
    div = np.exp(np.arange(0, C, 2, dtype=np.float32) * (-math.log(10000.0) / C))
    pe = np.zeros((BLOCK, C), dtype=np.float32)
    pe[:, 0::2] = np.sin(pos * div)
    pe[:, 1::2] = np.cos(pos * div)
    weights["pe"] = jnp.asarray(pe)[None]                   # (1, block_size, C)

    idx = jax.random.randint(jax.random.fold_in(root, 10_000), (B, T), 0, VOCAB,
                             dtype=jnp.int32)

    fwd = jax.jit(functools.partial(transformer_forward, n_head=NH))
    logits = jax.block_until_ready(fwd(idx, weights))

    ref = transformer_reference(idx, weights, n_head=NH)
    assert logits.shape == (B, 1, VOCAB)
    assert jnp.allclose(logits, ref, atol=1e-2, rtol=1e-2), "mismatch vs reference"

    print("KERNEL_OK")
</pallas_src>

<mosaic_0001>
module attributes {stable_mosaic.version = 11 : i64} {
  func.func @encoder_layer_kernel(%arg0: i32, %arg1: memref<1x8x32xf32, #tpu.memory_space<vmem>>, %arg2: memref<1x32xf32, #tpu.memory_space<vmem>>, %arg3: memref<1x32xf32, #tpu.memory_space<vmem>>, %arg4: memref<32x32xbf16, #tpu.memory_space<vmem>>, %arg5: memref<1x32xf32, #tpu.memory_space<vmem>>, %arg6: memref<32x32xbf16, #tpu.memory_space<vmem>>, %arg7: memref<1x32xf32, #tpu.memory_space<vmem>>, %arg8: memref<32x32xbf16, #tpu.memory_space<vmem>>, %arg9: memref<1x32xf32, #tpu.memory_space<vmem>>, %arg10: memref<32x32xbf16, #tpu.memory_space<vmem>>, %arg11: memref<1x32xf32, #tpu.memory_space<vmem>>, %arg12: memref<1x32xf32, #tpu.memory_space<vmem>>, %arg13: memref<1x32xf32, #tpu.memory_space<vmem>>, %arg14: memref<32x128xbf16, #tpu.memory_space<vmem>>, %arg15: memref<1x128xf32, #tpu.memory_space<vmem>>, %arg16: memref<128x32xbf16, #tpu.memory_space<vmem>>, %arg17: memref<1x32xf32, #tpu.memory_space<vmem>>, %arg18: memref<1x8x32xf32, #tpu.memory_space<vmem>>) attributes {dimension_semantics = [#tpu.dimension_semantics<parallel>], iteration_bounds = array<i64: 2>, scalar_prefetch = 0 : i64, scratch_operands = 0 : i64, tpu.core_type = #tpu.core_type<tc>, window_params = [{transform_indices = @transform_0, window_bounds = array<i64: 1, 8, 32>}, {pipeline_mode = #tpu.pipeline_mode<synchronous>, transform_indices = @transform_1, window_bounds = array<i64: 1, 32>}, {pipeline_mode = #tpu.pipeline_mode<synchronous>, transform_indices = @transform_2, window_bounds = array<i64: 1, 32>}, {pipeline_mode = #tpu.pipeline_mode<synchronous>, transform_indices = @transform_3, window_bounds = array<i64: 32, 32>}, {pipeline_mode = #tpu.pipeline_mode<synchronous>, transform_indices = @transform_4, window_bounds = array<i64: 1, 32>}, {pipeline_mode = #tpu.pipeline_mode<synchronous>, transform_indices = @transform_5, window_bounds = array<i64: 32, 32>}, {pipeline_mode = #tpu.pipeline_mode<synchronous>, transform_indices = @transform_6, window_bounds = array<i64: 1, 32>}, {pipeline_mode = #tpu.pipeline_mode<synchronous>, transform_indices = @transform_7, window_bounds = array<i64: 32, 32>}, {pipeline_mode = #tpu.pipeline_mode<synchronous>, transform_indices = @transform_8, window_bounds = array<i64: 1, 32>}, {pipeline_mode = #tpu.pipeline_mode<synchronous>, transform_indices = @transform_9, window_bounds = array<i64: 32, 32>}, {pipeline_mode = #tpu.pipeline_mode<synchronous>, transform_indices = @transform_10, window_bounds = array<i64: 1, 32>}, {pipeline_mode = #tpu.pipeline_mode<synchronous>, transform_indices = @transform_11, window_bounds = array<i64: 1, 32>}, {pipeline_mode = #tpu.pipeline_mode<synchronous>, transform_indices = @transform_12, window_bounds = array<i64: 1, 32>}, {pipeline_mode = #tpu.pipeline_mode<synchronous>, transform_indices = @transform_13, window_bounds = array<i64: 32, 128>}, {pipeline_mode = #tpu.pipeline_mode<synchronous>, transform_indices = @transform_14, window_bounds = array<i64: 1, 128>}, {pipeline_mode = #tpu.pipeline_mode<synchronous>, transform_indices = @transform_15, window_bounds = array<i64: 128, 32>}, {pipeline_mode = #tpu.pipeline_mode<synchronous>, transform_indices = @transform_16, window_bounds = array<i64: 1, 32>}, {transform_indices = @transform_17, window_bounds = array<i64: 1, 8, 32>}]} {
    %c0 = arith.constant 0 : index
    %c0_0 = arith.constant 0 : index
    %0 = vector.load %arg2[%c0, %c0_0] : memref<1x32xf32, #tpu.memory_space<vmem>>, vector<1x32xf32>
    %c0_1 = arith.constant 0 : index
    %c0_2 = arith.constant 0 : index
    %1 = vector.load %arg3[%c0_1, %c0_2] : memref<1x32xf32, #tpu.memory_space<vmem>>, vector<1x32xf32>
    %c0_3 = arith.constant 0 : index
    %c0_4 = arith.constant 0 : index
    %2 = vector.load %arg4[%c0_3, %c0_4] : memref<32x32xbf16, #tpu.memory_space<vmem>>, vector<32x32xbf16>
    %c0_5 = arith.constant 0 : index
    %c0_6 = arith.constant 0 : index
    %3 = vector.load %arg5[%c0_5, %c0_6] : memref<1x32xf32, #tpu.memory_space<vmem>>, vector<1x32xf32>
    %c0_7 = arith.constant 0 : index
    %c0_8 = arith.constant 0 : index
    %4 = vector.load %arg6[%c0_7, %c0_8] : memref<32x32xbf16, #tpu.memory_space<vmem>>, vector<32x32xbf16>
    %c0_9 = arith.constant 0 : index
    %c0_10 = arith.constant 0 : index
    %5 = vector.load %arg7[%c0_9, %c0_10] : memref<1x32xf32, #tpu.memory_space<vmem>>, vector<1x32xf32>
    %c0_11 = arith.constant 0 : index
    %c0_12 = arith.constant 0 : index
    %6 = vector.load %arg8[%c0_11, %c0_12] : memref<32x32xbf16, #tpu.memory_space<vmem>>, vector<32x32xbf16>
    %c0_13 = arith.constant 0 : index
    %c0_14 = arith.constant 0 : index
    %7 = vector.load %arg9[%c0_13, %c0_14] : memref<1x32xf32, #tpu.memory_space<vmem>>, vector<1x32xf32>
    %c0_15 = arith.constant 0 : index
    %c0_16 = arith.constant 0 : index
    %8 = vector.load %arg10[%c0_15, %c0_16] : memref<32x32xbf16, #tpu.memory_space<vmem>>, vector<32x32xbf16>
    %c0_17 = arith.constant 0 : index
    %c0_18 = arith.constant 0 : index
    %9 = vector.load %arg11[%c0_17, %c0_18] : memref<1x32xf32, #tpu.memory_space<vmem>>, vector<1x32xf32>
    %c0_19 = arith.constant 0 : index
    %c0_20 = arith.constant 0 : index
    %10 = vector.load %arg12[%c0_19, %c0_20] : memref<1x32xf32, #tpu.memory_space<vmem>>, vector<1x32xf32>
    %c0_21 = arith.constant 0 : index
    %c0_22 = arith.constant 0 : index
    %11 = vector.load %arg13[%c0_21, %c0_22] : memref<1x32xf32, #tpu.memory_space<vmem>>, vector<1x32xf32>
    %c0_23 = arith.constant 0 : index
    %c0_24 = arith.constant 0 : index
    %12 = vector.load %arg14[%c0_23, %c0_24] : memref<32x128xbf16, #tpu.memory_space<vmem>>, vector<32x128xbf16>
    %c0_25 = arith.constant 0 : index
    %c0_26 = arith.constant 0 : index
    %13 = vector.load %arg15[%c0_25, %c0_26] : memref<1x128xf32, #tpu.memory_space<vmem>>, vector<1x128xf32>
    %c0_27 = arith.constant 0 : index
    %c0_28 = arith.constant 0 : index
    %14 = vector.load %arg16[%c0_27, %c0_28] : memref<128x32xbf16, #tpu.memory_space<vmem>>, vector<128x32xbf16>
    %c0_29 = arith.constant 0 : index
    %c0_30 = arith.constant 0 : index
    %15 = vector.load %arg17[%c0_29, %c0_30] : memref<1x32xf32, #tpu.memory_space<vmem>>, vector<1x32xf32>
    %c0_31 = arith.constant 0 : index
    %c0_32 = arith.constant 0 : index
    %c0_33 = arith.constant 0 : index
    %16 = vector.load %arg1[%c0_31, %c0_32, %c0_33] : memref<1x8x32xf32, #tpu.memory_space<vmem>>, vector<1x8x32xf32>
    %17 = vector.shape_cast %16 : vector<1x8x32xf32> to vector<8x32xf32>
    %cst = arith.constant dense<0.000000e+00> : vector<8xf32>
    %18 = vector.multi_reduction <add>, %17, %cst [1] : vector<8x32xf32> to vector<8xf32>
    %19 = vector.shape_cast %18 : vector<8xf32> to vector<8x1xf32>
    %cst_34 = arith.constant 3.200000e+01 : f32
    %20 = vector.broadcast %cst_34 : f32 to vector<8x1xf32>
    %21 = arith.divf %19, %20 : vector<8x1xf32>
    %22 = vector.broadcast %21 : vector<8x1xf32> to vector<8x32xf32>
    %23 = arith.subf %17, %22 : vector<8x32xf32>
    %24 = arith.mulf %23, %23 : vector<8x32xf32>
    %cst_35 = arith.constant dense<0.000000e+00> : vector<8xf32>
    %25 = vector.multi_reduction <add>, %24, %cst_35 [1] : vector<8x32xf32> to vector<8xf32>
    %26 = vector.shape_cast %25 : vector<8xf32> to vector<8x1xf32>
    %cst_36 = arith.constant 3.200000e+01 : f32
    %27 = vector.broadcast %cst_36 : f32 to vector<8x1xf32>
    %28 = arith.divf %26, %27 : vector<8x1xf32>
    %29 = vector.broadcast %21 : vector<8x1xf32> to vector<8x32xf32>
    %30 = arith.subf %17, %29 : vector<8x32xf32>
    %cst_37 = arith.constant 9.99999974E-6 : f32
    %31 = vector.broadcast %cst_37 : f32 to vector<8x1xf32>
    %32 = arith.addf %28, %31 : vector<8x1xf32>
    %33 = math.rsqrt %32 : vector<8x1xf32>
    %34 = vector.broadcast %33 : vector<8x1xf32> to vector<8x32xf32>
    %35 = arith.mulf %30, %34 : vector<8x32xf32>
    %36 = vector.broadcast %0 : vector<1x32xf32> to vector<8x32xf32>
    %37 = arith.mulf %35, %36 : vector<8x32xf32>
    %38 = vector.broadcast %1 : vector<1x32xf32> to vector<8x32xf32>
    %39 = arith.addf %37, %38 : vector<8x32xf32>
    %40 = arith.truncf %39 : vector<8x32xf32> to vector<8x32xbf16>
    %cst_38 = arith.constant dense<0.000000e+00> : vector<8x32xf32>
    %41 = tpu.matmul %40, %2, %cst_38 {dimension_numbers = #tpu.dot_dimension_numbers<[1], [0], [0], [1], [0, 0, 1, 1], [], []>} : vector<8x32xbf16>, vector<32x32xbf16>, vector<8x32xf32> -> vector<8x32xf32>
    %42 = vector.broadcast %3 : vector<1x32xf32> to vector<8x32xf32>
    %43 = arith.addf %41, %42 : vector<8x32xf32>
    %44 = arith.truncf %39 : vector<8x32xf32> to vector<8x32xbf16>
    %cst_39 = arith.constant dense<0.000000e+00> : vector<8x32xf32>
    %45 = tpu.matmul %44, %4, %cst_39 {dimension_numbers = #tpu.dot_dimension_numbers<[1], [0], [0], [1], [0, 0, 1, 1], [], []>} : vector<8x32xbf16>, vector<32x32xbf16>, vector<8x32xf32> -> vector<8x32xf32>
    %46 = vector.broadcast %5 : vector<1x32xf32> to vector<8x32xf32>
    %47 = arith.addf %45, %46 : vector<8x32xf32>
    %48 = arith.truncf %39 : vector<8x32xf32> to vector<8x32xbf16>
    %cst_40 = arith.constant dense<0.000000e+00> : vector<8x32xf32>
    %49 = tpu.matmul %48, %6, %cst_40 {dimension_numbers = #tpu.dot_dimension_numbers<[1], [0], [0], [1], [0, 0, 1, 1], [], []>} : vector<8x32xbf16>, vector<32x32xbf16>, vector<8x32xf32> -> vector<8x32xf32>
    %50 = vector.broadcast %7 : vector<1x32xf32> to vector<8x32xf32>
    %51 = arith.addf %49, %50 : vector<8x32xf32>
    %52 = vector.extract_strided_slice %43 {offsets = [0, 0], sizes = [8, 8], strides = [1, 1]} : vector<8x32xf32> to vector<8x8xf32>
    %53 = arith.truncf %52 : vector<8x8xf32> to vector<8x8xbf16>
    %54 = vector.extract_strided_slice %47 {offsets = [0, 0], sizes = [8, 8], strides = [1, 1]} : vector<8x32xf32> to vector<8x8xf32>
    %55 = arith.truncf %54 : vector<8x8xf32> to vector<8x8xbf16>
    %56 = vector.extract_strided_slice %51 {offsets = [0, 0], sizes = [8, 8], strides = [1, 1]} : vector<8x32xf32> to vector<8x8xf32>
    %57 = arith.truncf %56 : vector<8x8xf32> to vector<8x8xbf16>
    %cst_41 = arith.constant dense<0.000000e+00> : vector<8x8xf32>
    %58 = tpu.matmul %53, %55, %cst_41 {dimension_numbers = #tpu.dot_dimension_numbers<[1], [1], [0], [0], [0, 0, 1, 0], [], []>} : vector<8x8xbf16>, vector<8x8xbf16>, vector<8x8xf32> -> vector<8x8xf32>
    %cst_42 = arith.constant 0.353553385 : f32
    %59 = vector.broadcast %cst_42 : f32 to vector<8x8xf32>
    %60 = arith.mulf %58, %59 : vector<8x8xf32>
    %cst_43 = arith.constant dense<0xFF800000> : vector<8xf32>
    %61 = vector.multi_reduction <maximumf>, %60, %cst_43 [1] : vector<8x8xf32> to vector<8xf32>
    %62 = vector.shape_cast %61 : vector<8xf32> to vector<8x1xf32>
    %63 = vector.broadcast %62 : vector<8x1xf32> to vector<8x8xf32>
    %64 = arith.subf %60, %63 : vector<8x8xf32>
    %65 = math.exp %64 : vector<8x8xf32>
    %cst_44 = arith.constant dense<0.000000e+00> : vector<8xf32>
    %66 = vector.multi_reduction <add>, %65, %cst_44 [1] : vector<8x8xf32> to vector<8xf32>
    %67 = vector.shape_cast %66 : vector<8xf32> to vector<8x1xf32>
    %68 = vector.broadcast %67 : vector<8x1xf32> to vector<8x8xf32>
    %69 = arith.divf %65, %68 : vector<8x8xf32>
    %70 = arith.truncf %69 : vector<8x8xf32> to vector<8x8xbf16>
    %cst_45 = arith.constant dense<0.000000e+00> : vector<8x8xf32>
    %71 = tpu.matmul %70, %57, %cst_45 {dimension_numbers = #tpu.dot_dimension_numbers<[1], [0], [0], [1], [0, 0, 1, 1], [], []>} : vector<8x8xbf16>, vector<8x8xbf16>, vector<8x8xf32> -> vector<8x8xf32>
    %72 = vector.extract_strided_slice %43 {offsets = [0, 8], sizes = [8, 8], strides = [1, 1]} : vector<8x32xf32> to vector<8x8xf32>
    %73 = arith.truncf %72 : vector<8x8xf32> to vector<8x8xbf16>
    %74 = vector.extract_strided_slice %47 {offsets = [0, 8], sizes = [8, 8], strides = [1, 1]} : vector<8x32xf32> to vector<8x8xf32>
    %75 = arith.truncf %74 : vector<8x8xf32> to vector<8x8xbf16>
    %76 = vector.extract_strided_slice %51 {offsets = [0, 8], sizes = [8, 8], strides = [1, 1]} : vector<8x32xf32> to vector<8x8xf32>
    %77 = arith.truncf %76 : vector<8x8xf32> to vector<8x8xbf16>
    %cst_46 = arith.constant dense<0.000000e+00> : vector<8x8xf32>
    %78 = tpu.matmul %73, %75, %cst_46 {dimension_numbers = #tpu.dot_dimension_numbers<[1], [1], [0], [0], [0, 0, 1, 0], [], []>} : vector<8x8xbf16>, vector<8x8xbf16>, vector<8x8xf32> -> vector<8x8xf32>
    %cst_47 = arith.constant 0.353553385 : f32
    %79 = vector.broadcast %cst_47 : f32 to vector<8x8xf32>
    %80 = arith.mulf %78, %79 : vector<8x8xf32>
    %cst_48 = arith.constant dense<0xFF800000> : vector<8xf32>
    %81 = vector.multi_reduction <maximumf>, %80, %cst_48 [1] : vector<8x8xf32> to vector<8xf32>
    %82 = vector.shape_cast %81 : vector<8xf32> to vector<8x1xf32>
    %83 = vector.broadcast %82 : vector<8x1xf32> to vector<8x8xf32>
    %84 = arith.subf %80, %83 : vector<8x8xf32>
    %85 = math.exp %84 : vector<8x8xf32>
    %cst_49 = arith.constant dense<0.000000e+00> : vector<8xf32>
    %86 = vector.multi_reduction <add>, %85, %cst_49 [1] : vector<8x8xf32> to vector<8xf32>
    %87 = vector.shape_cast %86 : vector<8xf32> to vector<8x1xf32>
    %88 = vector.broadcast %87 : vector<8x1xf32> to vector<8x8xf32>
    %89 = arith.divf %85, %88 : vector<8x8xf32>
    %90 = arith.truncf %89 : vector<8x8xf32> to vector<8x8xbf16>
    %cst_50 = arith.constant dense<0.000000e+00> : vector<8x8xf32>
    %91 = tpu.matmul %90, %77, %cst_50 {dimension_numbers = #tpu.dot_dimension_numbers<[1], [0], [0], [1], [0, 0, 1, 1], [], []>} : vector<8x8xbf16>, vector<8x8xbf16>, vector<8x8xf32> -> vector<8x8xf32>
    %92 = vector.extract_strided_slice %43 {offsets = [0, 16], sizes = [8, 8], strides = [1, 1]} : vector<8x32xf32> to vector<8x8xf32>
    %93 = arith.truncf %92 : vector<8x8xf32> to vector<8x8xbf16>
    %94 = vector.extract_strided_slice %47 {offsets = [0, 16], sizes = [8, 8], strides = [1, 1]} : vector<8x32xf32> to vector<8x8xf32>
    %95 = arith.truncf %94 : vector<8x8xf32> to vector<8x8xbf16>
    %96 = vector.extract_strided_slice %51 {offsets = [0, 16], sizes = [8, 8], strides = [1, 1]} : vector<8x32xf32> to vector<8x8xf32>
    %97 = arith.truncf %96 : vector<8x8xf32> to vector<8x8xbf16>
    %cst_51 = arith.constant dense<0.000000e+00> : vector<8x8xf32>
    %98 = tpu.matmul %93, %95, %cst_51 {dimension_numbers = #tpu.dot_dimension_numbers<[1], [1], [0], [0], [0, 0, 1, 0], [], []>} : vector<8x8xbf16>, vector<8x8xbf16>, vector<8x8xf32> -> vector<8x8xf32>
    %cst_52 = arith.constant 0.353553385 : f32
    %99 = vector.broadcast %cst_52 : f32 to vector<8x8xf32>
    %100 = arith.mulf %98, %99 : vector<8x8xf32>
    %cst_53 = arith.constant dense<0xFF800000> : vector<8xf32>
    %101 = vector.multi_reduction <maximumf>, %100, %cst_53 [1] : vector<8x8xf32> to vector<8xf32>
    %102 = vector.shape_cast %101 : vector<8xf32> to vector<8x1xf32>
    %103 = vector.broadcast %102 : vector<8x1xf32> to vector<8x8xf32>
    %104 = arith.subf %100, %103 : vector<8x8xf32>
    %105 = math.exp %104 : vector<8x8xf32>
    %cst_54 = arith.constant dense<0.000000e+00> : vector<8xf32>
    %106 = vector.multi_reduction <add>, %105, %cst_54 [1] : vector<8x8xf32> to vector<8xf32>
    %107 = vector.shape_cast %106 : vector<8xf32> to vector<8x1xf32>
    %108 = vector.broadcast %107 : vector<8x1xf32> to vector<8x8xf32>
    %109 = arith.divf %105, %108 : vector<8x8xf32>
    %110 = arith.truncf %109 : vector<8x8xf32> to vector<8x8xbf16>
    %cst_55 = arith.constant dense<0.000000e+00> : vector<8x8xf32>
    %111 = tpu.matmul %110, %97, %cst_55 {dimension_numbers = #tpu.dot_dimension_numbers<[1], [0], [0], [1], [0, 0, 1, 1], [], []>} : vector<8x8xbf16>, vector<8x8xbf16>, vector<8x8xf32> -> vector<8x8xf32>
    %112 = vector.extract_strided_slice %43 {offsets = [0, 24], sizes = [8, 8], strides = [1, 1]} : vector<8x32xf32> to vector<8x8xf32>
    %113 = arith.truncf %112 : vector<8x8xf32> to vector<8x8xbf16>
    %114 = vector.extract_strided_slice %47 {offsets = [0, 24], sizes = [8, 8], strides = [1, 1]} : vector<8x32xf32> to vector<8x8xf32>
    %115 = arith.truncf %114 : vector<8x8xf32> to vector<8x8xbf16>
    %116 = vector.extract_strided_slice %51 {offsets = [0, 24], sizes = [8, 8], strides = [1, 1]} : vector<8x32xf32> to vector<8x8xf32>
    %117 = arith.truncf %116 : vector<8x8xf32> to vector<8x8xbf16>
    %cst_56 = arith.constant dense<0.000000e+00> : vector<8x8xf32>
    %118 = tpu.matmul %113, %115, %cst_56 {dimension_numbers = #tpu.dot_dimension_numbers<[1], [1], [0], [0], [0, 0, 1, 0], [], []>} : vector<8x8xbf16>, vector<8x8xbf16>, vector<8x8xf32> -> vector<8x8xf32>
    %cst_57 = arith.constant 0.353553385 : f32
    %119 = vector.broadcast %cst_57 : f32 to vector<8x8xf32>
    %120 = arith.mulf %118, %119 : vector<8x8xf32>
    %cst_58 = arith.constant dense<0xFF800000> : vector<8xf32>
    %121 = vector.multi_reduction <maximumf>, %120, %cst_58 [1] : vector<8x8xf32> to vector<8xf32>
    %122 = vector.shape_cast %121 : vector<8xf32> to vector<8x1xf32>
    %123 = vector.broadcast %122 : vector<8x1xf32> to vector<8x8xf32>
    %124 = arith.subf %120, %123 : vector<8x8xf32>
    %125 = math.exp %124 : vector<8x8xf32>
    %cst_59 = arith.constant dense<0.000000e+00> : vector<8xf32>
    %126 = vector.multi_reduction <add>, %125, %cst_59 [1] : vector<8x8xf32> to vector<8xf32>
    %127 = vector.shape_cast %126 : vector<8xf32> to vector<8x1xf32>
    %128 = vector.broadcast %127 : vector<8x1xf32> to vector<8x8xf32>
    %129 = arith.divf %125, %128 : vector<8x8xf32>
    %130 = arith.truncf %129 : vector<8x8xf32> to vector<8x8xbf16>
    %cst_60 = arith.constant dense<0.000000e+00> : vector<8x8xf32>
    %131 = tpu.matmul %130, %117, %cst_60 {dimension_numbers = #tpu.dot_dimension_numbers<[1], [0], [0], [1], [0, 0, 1, 1], [], []>} : vector<8x8xbf16>, vector<8x8xbf16>, vector<8x8xf32> -> vector<8x8xf32>
    %132 = tpu.concatenate %71, %91, %111, %131 in 1 : vector<8x8xf32>, vector<8x8xf32>, vector<8x8xf32>, vector<8x8xf32> -> vector<8x32xf32>
    %133 = arith.truncf %132 : vector<8x32xf32> to vector<8x32xbf16>
    %cst_61 = arith.constant dense<0.000000e+00> : vector<8x32xf32>
    %134 = tpu.matmul %133, %8, %cst_61 {dimension_numbers = #tpu.dot_dimension_numbers<[1], [0], [0], [1], [0, 0, 1, 1], [], []>} : vector<8x32xbf16>, vector<32x32xbf16>, vector<8x32xf32> -> vector<8x32xf32>
    %135 = vector.broadcast %9 : vector<1x32xf32> to vector<8x32xf32>
    %136 = arith.addf %134, %135 : vector<8x32xf32>
    %137 = arith.addf %39, %136 : vector<8x32xf32>
    %cst_62 = arith.constant dense<0.000000e+00> : vector<8xf32>
    %138 = vector.multi_reduction <add>, %137, %cst_62 [1] : vector<8x32xf32> to vector<8xf32>
    %139 = vector.shape_cast %138 : vector<8xf32> to vector<8x1xf32>
    %cst_63 = arith.constant 3.200000e+01 : f32
    %140 = vector.broadcast %cst_63 : f32 to vector<8x1xf32>
    %141 = arith.divf %139, %140 : vector<8x1xf32>
    %142 = vector.broadcast %141 : vector<8x1xf32> to vector<8x32xf32>
    %143 = arith.subf %137, %142 : vector<8x32xf32>
    %144 = arith.mulf %143, %143 : vector<8x32xf32>
    %cst_64 = arith.constant dense<0.000000e+00> : vector<8xf32>
    %145 = vector.multi_reduction <add>, %144, %cst_64 [1] : vector<8x32xf32> to vector<8xf32>
    %146 = vector.shape_cast %145 : vector<8xf32> to vector<8x1xf32>
    %cst_65 = arith.constant 3.200000e+01 : f32
    %147 = vector.broadcast %cst_65 : f32 to vector<8x1xf32>
    %148 = arith.divf %146, %147 : vector<8x1xf32>
    %149 = vector.broadcast %141 : vector<8x1xf32> to vector<8x32xf32>
    %150 = arith.subf %137, %149 : vector<8x32xf32>
    %cst_66 = arith.constant 9.99999974E-6 : f32
    %151 = vector.broadcast %cst_66 : f32 to vector<8x1xf32>
    %152 = arith.addf %148, %151 : vector<8x1xf32>
    %153 = math.rsqrt %152 : vector<8x1xf32>
    %154 = vector.broadcast %153 : vector<8x1xf32> to vector<8x32xf32>
    %155 = arith.mulf %150, %154 : vector<8x32xf32>
    %156 = vector.broadcast %10 : vector<1x32xf32> to vector<8x32xf32>
    %157 = arith.mulf %155, %156 : vector<8x32xf32>
    %158 = vector.broadcast %11 : vector<1x32xf32> to vector<8x32xf32>
    %159 = arith.addf %157, %158 : vector<8x32xf32>
    %160 = arith.truncf %159 : vector<8x32xf32> to vector<8x32xbf16>
    %cst_67 = arith.constant dense<0.000000e+00> : vector<8x128xf32>
    %161 = tpu.matmul %160, %12, %cst_67 {dimension_numbers = #tpu.dot_dimension_numbers<[1], [0], [0], [1], [0, 0, 1, 1], [], []>} : vector<8x32xbf16>, vector<32x128xbf16>, vector<8x128xf32> -> vector<8x128xf32>
    %162 = vector.broadcast %13 : vector<1x128xf32> to vector<8x128xf32>
    %163 = arith.addf %161, %162 : vector<8x128xf32>
    %cst_68 = arith.constant 0.000000e+00 : f32
    %164 = vector.broadcast %cst_68 : f32 to vector<8x128xf32>
    %165 = arith.maximumf %163, %164 : vector<8x128xf32>
    %166 = arith.truncf %165 : vector<8x128xf32> to vector<8x128xbf16>
    %cst_69 = arith.constant dense<0.000000e+00> : vector<8x32xf32>
    %167 = tpu.matmul %166, %14, %cst_69 {dimension_numbers = #tpu.dot_dimension_numbers<[1], [0], [0], [1], [0, 0, 1, 1], [], []>} : vector<8x128xbf16>, vector<128x32xbf16>, vector<8x32xf32> -> vector<8x32xf32>
    %168 = vector.broadcast %15 : vector<1x32xf32> to vector<8x32xf32>
    %169 = arith.addf %167, %168 : vector<8x32xf32>
    %170 = arith.addf %137, %169 : vector<8x32xf32>
    %c0_70 = arith.constant 0 : index
    %c0_71 = arith.constant 0 : index
    %c0_72 = arith.constant 0 : index
    %171 = vector.load %arg18[%c0_70, %c0_71, %c0_72] : memref<1x8x32xf32, #tpu.memory_space<vmem>>, vector<1x8x32xf32>
    %172 = vector.shape_cast %171 : vector<1x8x32xf32> to vector<8x32xf32>
    %173 = vector.shape_cast %170 : vector<8x32xf32> to vector<1x8x32xf32>
    tpu.vector_store %arg18[%c0_70, %c0_71, %c0_72], %173 {strides = array<i32>} : memref<1x8x32xf32, #tpu.memory_space<vmem>>, vector<1x8x32xf32>,
    return
  }
  func.func @transform_0(%arg0: i32) -> (i32, i32, i32) {
    %c0_i32 = arith.constant 0 : i32
    %c0_i32_0 = arith.constant 0 : i32
    %c0_i32_1 = arith.constant 0 : i32
    return %arg0, %c0_i32, %c0_i32_0 : i32, i32, i32
  }
  func.func @transform_1(%arg0: i32) -> (i32, i32) {
    %c0_i32 = arith.constant 0 : i32
    %c0_i32_0 = arith.constant 0 : i32
    %c0_i32_1 = arith.constant 0 : i32
    return %c0_i32, %c0_i32_0 : i32, i32
  }
  func.func @transform_2(%arg0: i32) -> (i32, i32) {
    %c0_i32 = arith.constant 0 : i32
    %c0_i32_0 = arith.constant 0 : i32
    %c0_i32_1 = arith.constant 0 : i32
    return %c0_i32, %c0_i32_0 : i32, i32
  }
  func.func @transform_3(%arg0: i32) -> (i32, i32) {
    %c0_i32 = arith.constant 0 : i32
    %c0_i32_0 = arith.constant 0 : i32
    %c0_i32_1 = arith.constant 0 : i32
    return %c0_i32, %c0_i32_0 : i32, i32
  }
  func.func @transform_4(%arg0: i32) -> (i32, i32) {
    %c0_i32 = arith.constant 0 : i32
    %c0_i32_0 = arith.constant 0 : i32
    %c0_i32_1 = arith.constant 0 : i32
    return %c0_i32, %c0_i32_0 : i32, i32
  }
  func.func @transform_5(%arg0: i32) -> (i32, i32) {
    %c0_i32 = arith.constant 0 : i32
    %c0_i32_0 = arith.constant 0 : i32
    %c0_i32_1 = arith.constant 0 : i32
    return %c0_i32, %c0_i32_0 : i32, i32
  }
  func.func @transform_6(%arg0: i32) -> (i32, i32) {
    %c0_i32 = arith.constant 0 : i32
    %c0_i32_0 = arith.constant 0 : i32
    %c0_i32_1 = arith.constant 0 : i32
    return %c0_i32, %c0_i32_0 : i32, i32
  }
  func.func @transform_7(%arg0: i32) -> (i32, i32) {
    %c0_i32 = arith.constant 0 : i32
    %c0_i32_0 = arith.constant 0 : i32
    %c0_i32_1 = arith.constant 0 : i32
    return %c0_i32, %c0_i32_0 : i32, i32
  }
  func.func @transform_8(%arg0: i32) -> (i32, i32) {
    %c0_i32 = arith.constant 0 : i32
    %c0_i32_0 = arith.constant 0 : i32
    %c0_i32_1 = arith.constant 0 : i32
    return %c0_i32, %c0_i32_0 : i32, i32
  }
  func.func @transform_9(%arg0: i32) -> (i32, i32) {
    %c0_i32 = arith.constant 0 : i32
    %c0_i32_0 = arith.constant 0 : i32
    %c0_i32_1 = arith.constant 0 : i32
    return %c0_i32, %c0_i32_0 : i32, i32
  }
  func.func @transform_10(%arg0: i32) -> (i32, i32) {
    %c0_i32 = arith.constant 0 : i32
    %c0_i32_0 = arith.constant 0 : i32
    %c0_i32_1 = arith.constant 0 : i32
    return %c0_i32, %c0_i32_0 : i32, i32
  }
  func.func @transform_11(%arg0: i32) -> (i32, i32) {
    %c0_i32 = arith.constant 0 : i32
    %c0_i32_0 = arith.constant 0 : i32
    %c0_i32_1 = arith.constant 0 : i32
    return %c0_i32, %c0_i32_0 : i32, i32
  }
  func.func @transform_12(%arg0: i32) -> (i32, i32) {
    %c0_i32 = arith.constant 0 : i32
    %c0_i32_0 = arith.constant 0 : i32
    %c0_i32_1 = arith.constant 0 : i32
    return %c0_i32, %c0_i32_0 : i32, i32
  }
  func.func @transform_13(%arg0: i32) -> (i32, i32) {
    %c0_i32 = arith.constant 0 : i32
    %c0_i32_0 = arith.constant 0 : i32
    %c0_i32_1 = arith.constant 0 : i32
    return %c0_i32, %c0_i32_0 : i32, i32
  }
  func.func @transform_14(%arg0: i32) -> (i32, i32) {
    %c0_i32 = arith.constant 0 : i32
    %c0_i32_0 = arith.constant 0 : i32
    %c0_i32_1 = arith.constant 0 : i32
    return %c0_i32, %c0_i32_0 : i32, i32
  }
  func.func @transform_15(%arg0: i32) -> (i32, i32) {
    %c0_i32 = arith.constant 0 : i32
    %c0_i32_0 = arith.constant 0 : i32
    %c0_i32_1 = arith.constant 0 : i32
    return %c0_i32, %c0_i32_0 : i32, i32
  }
  func.func @transform_16(%arg0: i32) -> (i32, i32) {
    %c0_i32 = arith.constant 0 : i32
    %c0_i32_0 = arith.constant 0 : i32
    %c0_i32_1 = arith.constant 0 : i32
    return %c0_i32, %c0_i32_0 : i32, i32
  }
  func.func @transform_17(%arg0: i32) -> (i32, i32, i32) {
    %c0_i32 = arith.constant 0 : i32
    %c0_i32_0 = arith.constant 0 : i32
    %c0_i32_1 = arith.constant 0 : i32
    return %arg0, %c0_i32, %c0_i32_0 : i32, i32, i32
  }
}

module attributes {stable_mosaic.version = 11 : i64} {
  func.func @layernorm_kernel(%arg0: i32, %arg1: memref<1x8x32xf32, #tpu.memory_space<vmem>>, %arg2: memref<1x32xf32, #tpu.memory_space<vmem>>, %arg3: memref<1x32xf32, #tpu.memory_space<vmem>>, %arg4: memref<1x8x32xf32, #tpu.memory_space<vmem>>) attributes {dimension_semantics = [#tpu.dimension_semantics<parallel>], iteration_bounds = array<i64: 2>, scalar_prefetch = 0 : i64, scratch_operands = 0 : i64, tpu.core_type = #tpu.core_type<tc>, window_params = [{transform_indices = @transform_0, window_bounds = array<i64: 1, 8, 32>}, {pipeline_mode = #tpu.pipeline_mode<synchronous>, transform_indices = @transform_1, window_bounds = array<i64: 1, 32>}, {pipeline_mode = #tpu.pipeline_mode<synchronous>, transform_indices = @transform_2, window_bounds = array<i64: 1, 32>}, {transform_indices = @transform_3, window_bounds = array<i64: 1, 8, 32>}]} {
    %c0 = arith.constant 0 : index
    %c0_0 = arith.constant 0 : index
    %c0_1 = arith.constant 0 : index
    %0 = vector.load %arg1[%c0, %c0_0, %c0_1] : memref<1x8x32xf32, #tpu.memory_space<vmem>>, vector<1x8x32xf32>
    %1 = vector.shape_cast %0 : vector<1x8x32xf32> to vector<8x32xf32>
    %c0_2 = arith.constant 0 : index
    %c0_3 = arith.constant 0 : index
    %2 = vector.load %arg2[%c0_2, %c0_3] : memref<1x32xf32, #tpu.memory_space<vmem>>, vector<1x32xf32>
    %c0_4 = arith.constant 0 : index
    %c0_5 = arith.constant 0 : index
    %3 = vector.load %arg3[%c0_4, %c0_5] : memref<1x32xf32, #tpu.memory_space<vmem>>, vector<1x32xf32>
    %cst = arith.constant dense<0.000000e+00> : vector<8xf32>
    %4 = vector.multi_reduction <add>, %1, %cst [1] : vector<8x32xf32> to vector<8xf32>
    %5 = vector.shape_cast %4 : vector<8xf32> to vector<8x1xf32>
    %cst_6 = arith.constant 3.200000e+01 : f32
    %6 = vector.broadcast %cst_6 : f32 to vector<8x1xf32>
    %7 = arith.divf %5, %6 : vector<8x1xf32>
    %8 = vector.broadcast %7 : vector<8x1xf32> to vector<8x32xf32>
    %9 = arith.subf %1, %8 : vector<8x32xf32>
    %10 = arith.mulf %9, %9 : vector<8x32xf32>
    %cst_7 = arith.constant dense<0.000000e+00> : vector<8xf32>
    %11 = vector.multi_reduction <add>, %10, %cst_7 [1] : vector<8x32xf32> to vector<8xf32>
    %12 = vector.shape_cast %11 : vector<8xf32> to vector<8x1xf32>
    %cst_8 = arith.constant 3.200000e+01 : f32
    %13 = vector.broadcast %cst_8 : f32 to vector<8x1xf32>
    %14 = arith.divf %12, %13 : vector<8x1xf32>
    %15 = vector.broadcast %7 : vector<8x1xf32> to vector<8x32xf32>
    %16 = arith.subf %1, %15 : vector<8x32xf32>
    %cst_9 = arith.constant 9.99999974E-6 : f32
    %17 = vector.broadcast %cst_9 : f32 to vector<8x1xf32>
    %18 = arith.addf %14, %17 : vector<8x1xf32>
    %19 = math.rsqrt %18 : vector<8x1xf32>
    %20 = vector.broadcast %19 : vector<8x1xf32> to vector<8x32xf32>
    %21 = arith.mulf %16, %20 : vector<8x32xf32>
    %22 = vector.broadcast %2 : vector<1x32xf32> to vector<8x32xf32>
    %23 = arith.mulf %21, %22 : vector<8x32xf32>
    %24 = vector.broadcast %3 : vector<1x32xf32> to vector<8x32xf32>
    %25 = arith.addf %23, %24 : vector<8x32xf32>
    %c0_10 = arith.constant 0 : index
    %c0_11 = arith.constant 0 : index
    %c0_12 = arith.constant 0 : index
    %26 = vector.load %arg4[%c0_10, %c0_11, %c0_12] : memref<1x8x32xf32, #tpu.memory_space<vmem>>, vector<1x8x32xf32>
    %27 = vector.shape_cast %26 : vector<1x8x32xf32> to vector<8x32xf32>
    %28 = vector.shape_cast %25 : vector<8x32xf32> to vector<1x8x32xf32>
    tpu.vector_store %arg4[%c0_10, %c0_11, %c0_12], %28 {strides = array<i32>} : memref<1x8x32xf32, #tpu.memory_space<vmem>>, vector<1x8x32xf32>,
    return
  }
  func.func @transform_0(%arg0: i32) -> (i32, i32, i32) {
    %c0_i32 = arith.constant 0 : i32
    %c0_i32_0 = arith.constant 0 : i32
    %c0_i32_1 = arith.constant 0 : i32
    return %arg0, %c0_i32, %c0_i32_0 : i32, i32, i32
  }
  func.func @transform_1(%arg0: i32) -> (i32, i32) {
    %c0_i32 = arith.constant 0 : i32
    %c0_i32_0 = arith.constant 0 : i32
    %c0_i32_1 = arith.constant 0 : i32
    return %c0_i32, %c0_i32_0 : i32, i32
  }
  func.func @transform_2(%arg0: i32) -> (i32, i32) {
    %c0_i32 = arith.constant 0 : i32
    %c0_i32_0 = arith.constant 0 : i32
    %c0_i32_1 = arith.constant 0 : i32
    return %c0_i32, %c0_i32_0 : i32, i32
  }
  func.func @transform_3(%arg0: i32) -> (i32, i32, i32) {
    %c0_i32 = arith.constant 0 : i32
    %c0_i32_0 = arith.constant 0 : i32
    %c0_i32_1 = arith.constant 0 : i32
    return %arg0, %c0_i32, %c0_i32_0 : i32, i32, i32
  }
}

module attributes {stable_mosaic.version = 11 : i64} {
  func.func @decoder_layer_kernel(%arg0: i32, %arg1: memref<1x8x32xf32, #tpu.memory_space<vmem>>, %arg2: memref<1x8x32xf32, #tpu.memory_space<vmem>>, %arg3: memref<1x32xf32, #tpu.memory_space<vmem>>, %arg4: memref<1x32xf32, #tpu.memory_space<vmem>>, %arg5: memref<32x32xbf16, #tpu.memory_space<vmem>>, %arg6: memref<1x32xf32, #tpu.memory_space<vmem>>, %arg7: memref<32x32xbf16, #tpu.memory_space<vmem>>, %arg8: memref<1x32xf32, #tpu.memory_space<vmem>>, %arg9: memref<32x32xbf16, #tpu.memory_space<vmem>>, %arg10: memref<1x32xf32, #tpu.memory_space<vmem>>, %arg11: memref<32x32xbf16, #tpu.memory_space<vmem>>, %arg12: memref<1x32xf32, #tpu.memory_space<vmem>>, %arg13: memref<1x32xf32, #tpu.memory_space<vmem>>, %arg14: memref<1x32xf32, #tpu.memory_space<vmem>>, %arg15: memref<32x32xbf16, #tpu.memory_space<vmem>>, %arg16: memref<1x32xf32, #tpu.memory_space<vmem>>, %arg17: memref<32x32xbf16, #tpu.memory_space<vmem>>, %arg18: memref<1x32xf32, #tpu.memory_space<vmem>>, %arg19: memref<32x32xbf16, #tpu.memory_space<vmem>>, %arg20: memref<1x32xf32, #tpu.memory_space<vmem>>, %arg21: memref<32x32xbf16, #tpu.memory_space<vmem>>, %arg22: memref<1x32xf32, #tpu.memory_space<vmem>>, %arg23: memref<1x32xf32, #tpu.memory_space<vmem>>, %arg24: memref<1x32xf32, #tpu.memory_space<vmem>>, %arg25: memref<32x128xbf16, #tpu.memory_space<vmem>>, %arg26: memref<1x128xf32, #tpu.memory_space<vmem>>, %arg27: memref<128x32xbf16, #tpu.memory_space<vmem>>, %arg28: memref<1x32xf32, #tpu.memory_space<vmem>>, %arg29: memref<1x8x32xf32, #tpu.memory_space<vmem>>) attributes {dimension_semantics = [#tpu.dimension_semantics<parallel>], iteration_bounds = array<i64: 2>, scalar_prefetch = 0 : i64, scratch_operands = 0 : i64, tpu.core_type = #tpu.core_type<tc>, window_params = [{transform_indices = @transform_0, window_bounds = array<i64: 1, 8, 32>}, {transform_indices = @transform_1, window_bounds = array<i64: 1, 8, 32>}, {pipeline_mode = #tpu.pipeline_mode<synchronous>, transform_indices = @transform_2, window_bounds = array<i64: 1, 32>}, {pipeline_mode = #tpu.pipeline_mode<synchronous>, transform_indices = @transform_3, window_bounds = array<i64: 1, 32>}, {pipeline_mode = #tpu.pipeline_mode<synchronous>, transform_indices = @transform_4, window_bounds = array<i64: 32, 32>}, {pipeline_mode = #tpu.pipeline_mode<synchronous>, transform_indices = @transform_5, window_bounds = array<i64: 1, 32>}, {pipeline_mode = #tpu.pipeline_mode<synchronous>, transform_indices = @transform_6, window_bounds = array<i64: 32, 32>}, {pipeline_mode = #tpu.pipeline_mode<synchronous>, transform_indices = @transform_7, window_bounds = array<i64: 1, 32>}, {pipeline_mode = #tpu.pipeline_mode<synchronous>, transform_indices = @transform_8, window_bounds = array<i64: 32, 32>}, {pipeline_mode = #tpu.pipeline_mode<synchronous>, transform_indices = @transform_9, window_bounds = array<i64: 1, 32>}, {pipeline_mode = #tpu.pipeline_mode<synchronous>, transform_indices = @transform_10, window_bounds = array<i64: 32, 32>}, {pipeline_mode = #tpu.pipeline_mode<synchronous>, transform_indices = @transform_11, window_bounds = array<i64: 1, 32>}, {pipeline_mode = #tpu.pipeline_mode<synchronous>, transform_indices = @transform_12, window_bounds = array<i64: 1, 32>}, {pipeline_mode = #tpu.pipeline_mode<synchronous>, transform_indices = @transform_13, window_bounds = array<i64: 1, 32>}, {pipeline_mode = #tpu.pipeline_mode<synchronous>, transform_indices = @transform_14, window_bounds = array<i64: 32, 32>}, {pipeline_mode = #tpu.pipeline_mode<synchronous>, transform_indices = @transform_15, window_bounds = array<i64: 1, 32>}, {pipeline_mode = #tpu.pipeline_mode<synchronous>, transform_indices = @transform_16, window_bounds = array<i64: 32, 32>}, {pipeline_mode = #tpu.pipeline_mode<synchronous>, transform_indices = @transform_17, window_bounds = array<i64: 1, 32>}, {pipeline_mode = #tpu.pipeline_mode<synchronous>, transform_indices = @transform_18, window_bounds = array<i64: 32, 32>}, {pipeline_mode = #tpu.pipeline_mode<synchronous>, transform_indices = @transform_19, window_bounds = array<i64: 1, 32>}, {pipeline_mode = #tpu.pipeline_mode<synchronous>, transform_indices = @transform_20, window_bounds = array<i64: 32, 32>}, {pipeline_mode = #tpu.pipeline_mode<synchronous>, transform_indices = @transform_21, window_bounds = array<i64: 1, 32>}, {pipeline_mode = #tpu.pipeline_mode<synchronous>, transform_indices = @transform_22, window_bounds = array<i64: 1, 32>}, {pipeline_mode = #tpu.pipeline_mode<synchronous>, transform_indices = @transform_23, window_bounds = array<i64: 1, 32>}, {pipeline_mode = #tpu.pipeline_mode<synchronous>, transform_indices = @transform_24, window_bounds = array<i64: 32, 128>}, {pipeline_mode = #tpu.pipeline_mode<synchronous>, transform_indices = @transform_25, window_bounds = array<i64: 1, 128>}, {pipeline_mode = #tpu.pipeline_mode<synchronous>, transform_indices = @transform_26, window_bounds = array<i64: 128, 32>}, {pipeline_mode = #tpu.pipeline_mode<synchronous>, transform_indices = @transform_27, window_bounds = array<i64: 1, 32>}, {transform_indices = @transform_28, window_bounds = array<i64: 1, 8, 32>}]} {
    %c0 = arith.constant 0 : index
    %c0_0 = arith.constant 0 : index
    %0 = vector.load %arg3[%c0, %c0_0] : memref<1x32xf32, #tpu.memory_space<vmem>>, vector<1x32xf32>
    %c0_1 = arith.constant 0 : index
    %c0_2 = arith.constant 0 : index
    %1 = vector.load %arg4[%c0_1, %c0_2] : memref<1x32xf32, #tpu.memory_space<vmem>>, vector<1x32xf32>
    %c0_3 = arith.constant 0 : index
    %c0_4 = arith.constant 0 : index
    %2 = vector.load %arg5[%c0_3, %c0_4] : memref<32x32xbf16, #tpu.memory_space<vmem>>, vector<32x32xbf16>
    %c0_5 = arith.constant 0 : index
    %c0_6 = arith.constant 0 : index
    %3 = vector.load %arg6[%c0_5, %c0_6] : memref<1x32xf32, #tpu.memory_space<vmem>>, vector<1x32xf32>
    %c0_7 = arith.constant 0 : index
    %c0_8 = arith.constant 0 : index
    %4 = vector.load %arg7[%c0_7, %c0_8] : memref<32x32xbf16, #tpu.memory_space<vmem>>, vector<32x32xbf16>
    %c0_9 = arith.constant 0 : index
    %c0_10 = arith.constant 0 : index
    %5 = vector.load %arg8[%c0_9, %c0_10] : memref<1x32xf32, #tpu.memory_space<vmem>>, vector<1x32xf32>
    %c0_11 = arith.constant 0 : index
    %c0_12 = arith.constant 0 : index
    %6 = vector.load %arg9[%c0_11, %c0_12] : memref<32x32xbf16, #tpu.memory_space<vmem>>, vector<32x32xbf16>
    %c0_13 = arith.constant 0 : index
    %c0_14 = arith.constant 0 : index
    %7 = vector.load %arg10[%c0_13, %c0_14] : memref<1x32xf32, #tpu.memory_space<vmem>>, vector<1x32xf32>
    %c0_15 = arith.constant 0 : index
    %c0_16 = arith.constant 0 : index
    %8 = vector.load %arg11[%c0_15, %c0_16] : memref<32x32xbf16, #tpu.memory_space<vmem>>, vector<32x32xbf16>
    %c0_17 = arith.constant 0 : index
    %c0_18 = arith.constant 0 : index
    %9 = vector.load %arg12[%c0_17, %c0_18] : memref<1x32xf32, #tpu.memory_space<vmem>>, vector<1x32xf32>
    %c0_19 = arith.constant 0 : index
    %c0_20 = arith.constant 0 : index
    %10 = vector.load %arg13[%c0_19, %c0_20] : memref<1x32xf32, #tpu.memory_space<vmem>>, vector<1x32xf32>
    %c0_21 = arith.constant 0 : index
    %c0_22 = arith.constant 0 : index
    %11 = vector.load %arg14[%c0_21, %c0_22] : memref<1x32xf32, #tpu.memory_space<vmem>>, vector<1x32xf32>
    %c0_23 = arith.constant 0 : index
    %c0_24 = arith.constant 0 : index
    %12 = vector.load %arg15[%c0_23, %c0_24] : memref<32x32xbf16, #tpu.memory_space<vmem>>, vector<32x32xbf16>
    %c0_25 = arith.constant 0 : index
    %c0_26 = arith.constant 0 : index
    %13 = vector.load %arg16[%c0_25, %c0_26] : memref<1x32xf32, #tpu.memory_space<vmem>>, vector<1x32xf32>
    %c0_27 = arith.constant 0 : index
    %c0_28 = arith.constant 0 : index
    %14 = vector.load %arg17[%c0_27, %c0_28] : memref<32x32xbf16, #tpu.memory_space<vmem>>, vector<32x32xbf16>
    %c0_29 = arith.constant 0 : index
    %c0_30 = arith.constant 0 : index
    %15 = vector.load %arg18[%c0_29, %c0_30] : memref<1x32xf32, #tpu.memory_space<vmem>>, vector<1x32xf32>
    %c0_31 = arith.constant 0 : index
    %c0_32 = arith.constant 0 : index
    %16 = vector.load %arg19[%c0_31, %c0_32] : memref<32x32xbf16, #tpu.memory_space<vmem>>, vector<32x32xbf16>
    %c0_33 = arith.constant 0 : index
    %c0_34 = arith.constant 0 : index
    %17 = vector.load %arg20[%c0_33, %c0_34] : memref<1x32xf32, #tpu.memory_space<vmem>>, vector<1x32xf32>
    %c0_35 = arith.constant 0 : index
    %c0_36 = arith.constant 0 : index
    %18 = vector.load %arg21[%c0_35, %c0_36] : memref<32x32xbf16, #tpu.memory_space<vmem>>, vector<32x32xbf16>
    %c0_37 = arith.constant 0 : index
    %c0_38 = arith.constant 0 : index
    %19 = vector.load %arg22[%c0_37, %c0_38] : memref<1x32xf32, #tpu.memory_space<vmem>>, vector<1x32xf32>
    %c0_39 = arith.constant 0 : index
    %c0_40 = arith.constant 0 : index
    %20 = vector.load %arg23[%c0_39, %c0_40] : memref<1x32xf32, #tpu.memory_space<vmem>>, vector<1x32xf32>
    %c0_41 = arith.constant 0 : index
    %c0_42 = arith.constant 0 : index
    %21 = vector.load %arg24[%c0_41, %c0_42] : memref<1x32xf32, #tpu.memory_space<vmem>>, vector<1x32xf32>
    %c0_43 = arith.constant 0 : index
    %c0_44 = arith.constant 0 : index
    %22 = vector.load %arg25[%c0_43, %c0_44] : memref<32x128xbf16, #tpu.memory_space<vmem>>, vector<32x128xbf16>
    %c0_45 = arith.constant 0 : index
    %c0_46 = arith.constant 0 : index
    %23 = vector.load %arg26[%c0_45, %c0_46] : memref<1x128xf32, #tpu.memory_space<vmem>>, vector<1x128xf32>
    %c0_47 = arith.constant 0 : index
    %c0_48 = arith.constant 0 : index
    %24 = vector.load %arg27[%c0_47, %c0_48] : memref<128x32xbf16, #tpu.memory_space<vmem>>, vector<128x32xbf16>
    %c0_49 = arith.constant 0 : index
    %c0_50 = arith.constant 0 : index
    %25 = vector.load %arg28[%c0_49, %c0_50] : memref<1x32xf32, #tpu.memory_space<vmem>>, vector<1x32xf32>
    %c0_51 = arith.constant 0 : index
    %c0_52 = arith.constant 0 : index
    %c0_53 = arith.constant 0 : index
    %26 = vector.load %arg1[%c0_51, %c0_52, %c0_53] : memref<1x8x32xf32, #tpu.memory_space<vmem>>, vector<1x8x32xf32>
    %27 = vector.shape_cast %26 : vector<1x8x32xf32> to vector<8x32xf32>
    %c0_54 = arith.constant 0 : index
    %c0_55 = arith.constant 0 : index
    %c0_56 = arith.constant 0 : index
    %28 = vector.load %arg2[%c0_54, %c0_55, %c0_56] : memref<1x8x32xf32, #tpu.memory_space<vmem>>, vector<1x8x32xf32>
    %29 = vector.shape_cast %28 : vector<1x8x32xf32> to vector<8x32xf32>
    %cst = arith.constant dense<0.000000e+00> : vector<8xf32>
    %30 = vector.multi_reduction <add>, %27, %cst [1] : vector<8x32xf32> to vector<8xf32>
    %31 = vector.shape_cast %30 : vector<8xf32> to vector<8x1xf32>
    %cst_57 = arith.constant 3.200000e+01 : f32
    %32 = vector.broadcast %cst_57 : f32 to vector<8x1xf32>
    %33 = arith.divf %31, %32 : vector<8x1xf32>
    %34 = vector.broadcast %33 : vector<8x1xf32> to vector<8x32xf32>
    %35 = arith.subf %27, %34 : vector<8x32xf32>
    %36 = arith.mulf %35, %35 : vector<8x32xf32>
    %cst_58 = arith.constant dense<0.000000e+00> : vector<8xf32>
    %37 = vector.multi_reduction <add>, %36, %cst_58 [1] : vector<8x32xf32> to vector<8xf32>
    %38 = vector.shape_cast %37 : vector<8xf32> to vector<8x1xf32>
    %cst_59 = arith.constant 3.200000e+01 : f32
    %39 = vector.broadcast %cst_59 : f32 to vector<8x1xf32>
    %40 = arith.divf %38, %39 : vector<8x1xf32>
    %41 = vector.broadcast %33 : vector<8x1xf32> to vector<8x32xf32>
    %42 = arith.subf %27, %41 : vector<8x32xf32>
    %cst_60 = arith.constant 9.99999974E-6 : f32
    %43 = vector.broadcast %cst_60 : f32 to vector<8x1xf32>
    %44 = arith.addf %40, %43 : vector<8x1xf32>
    %45 = math.rsqrt %44 : vector<8x1xf32>
    %46 = vector.broadcast %45 : vector<8x1xf32> to vector<8x32xf32>
    %47 = arith.mulf %42, %46 : vector<8x32xf32>
    %48 = vector.broadcast %0 : vector<1x32xf32> to vector<8x32xf32>
    %49 = arith.mulf %47, %48 : vector<8x32xf32>
    %50 = vector.broadcast %1 : vector<1x32xf32> to vector<8x32xf32>
    %51 = arith.addf %49, %50 : vector<8x32xf32>
    %52 = arith.truncf %51 : vector<8x32xf32> to vector<8x32xbf16>
    %cst_61 = arith.constant dense<0.000000e+00> : vector<8x32xf32>
    %53 = tpu.matmul %52, %2, %cst_61 {dimension_numbers = #tpu.dot_dimension_numbers<[1], [0], [0], [1], [0, 0, 1, 1], [], []>} : vector<8x32xbf16>, vector<32x32xbf16>, vector<8x32xf32> -> vector<8x32xf32>
    %54 = vector.broadcast %3 : vector<1x32xf32> to vector<8x32xf32>
    %55 = arith.addf %53, %54 : vector<8x32xf32>
    %56 = arith.truncf %51 : vector<8x32xf32> to vector<8x32xbf16>
    %cst_62 = arith.constant dense<0.000000e+00> : vector<8x32xf32>
    %57 = tpu.matmul %56, %4, %cst_62 {dimension_numbers = #tpu.dot_dimension_numbers<[1], [0], [0], [1], [0, 0, 1, 1], [], []>} : vector<8x32xbf16>, vector<32x32xbf16>, vector<8x32xf32> -> vector<8x32xf32>
    %58 = vector.broadcast %5 : vector<1x32xf32> to vector<8x32xf32>
    %59 = arith.addf %57, %58 : vector<8x32xf32>
    %60 = arith.truncf %51 : vector<8x32xf32> to vector<8x32xbf16>
    %cst_63 = arith.constant dense<0.000000e+00> : vector<8x32xf32>
    %61 = tpu.matmul %60, %6, %cst_63 {dimension_numbers = #tpu.dot_dimension_numbers<[1], [0], [0], [1], [0, 0, 1, 1], [], []>} : vector<8x32xbf16>, vector<32x32xbf16>, vector<8x32xf32> -> vector<8x32xf32>
    %62 = vector.broadcast %7 : vector<1x32xf32> to vector<8x32xf32>
    %63 = arith.addf %61, %62 : vector<8x32xf32>
    %64 = vector.extract_strided_slice %55 {offsets = [0, 0], sizes = [8, 8], strides = [1, 1]} : vector<8x32xf32> to vector<8x8xf32>
    %65 = arith.truncf %64 : vector<8x8xf32> to vector<8x8xbf16>
    %66 = vector.extract_strided_slice %59 {offsets = [0, 0], sizes = [8, 8], strides = [1, 1]} : vector<8x32xf32> to vector<8x8xf32>
    %67 = arith.truncf %66 : vector<8x8xf32> to vector<8x8xbf16>
    %68 = vector.extract_strided_slice %63 {offsets = [0, 0], sizes = [8, 8], strides = [1, 1]} : vector<8x32xf32> to vector<8x8xf32>
    %69 = arith.truncf %68 : vector<8x8xf32> to vector<8x8xbf16>
    %cst_64 = arith.constant dense<0.000000e+00> : vector<8x8xf32>
    %70 = tpu.matmul %65, %67, %cst_64 {dimension_numbers = #tpu.dot_dimension_numbers<[1], [1], [0], [0], [0, 0, 1, 0], [], []>} : vector<8x8xbf16>, vector<8x8xbf16>, vector<8x8xf32> -> vector<8x8xf32>
    %cst_65 = arith.constant 0.353553385 : f32
    %71 = vector.broadcast %cst_65 : f32 to vector<8x8xf32>
    %72 = arith.mulf %70, %71 : vector<8x8xf32>
    %73 = tpu.iota {dimensions = array<i32: 0>} : vector<8x8xi32>
    %74 = tpu.iota {dimensions = array<i32: 1>} : vector<8x8xi32>
    %75 = arith.cmpi sle, %74, %73 : vector<8x8xi32>
    %cst_66 = arith.constant 0xFF800000 : f32
    %76 = vector.broadcast %cst_66 : f32 to vector<8x8xf32>
    %77 = arith.select %75, %72, %76 : vector<8x8xi1>, vector<8x8xf32>
    %cst_67 = arith.constant dense<0xFF800000> : vector<8xf32>
    %78 = vector.multi_reduction <maximumf>, %77, %cst_67 [1] : vector<8x8xf32> to vector<8xf32>
    %79 = vector.shape_cast %78 : vector<8xf32> to vector<8x1xf32>
    %80 = vector.broadcast %79 : vector<8x1xf32> to vector<8x8xf32>
    %81 = arith.subf %77, %80 : vector<8x8xf32>
    %82 = math.exp %81 : vector<8x8xf32>
    %cst_68 = arith.constant dense<0.000000e+00> : vector<8xf32>
    %83 = vector.multi_reduction <add>, %82, %cst_68 [1] : vector<8x8xf32> to vector<8xf32>
    %84 = vector.shape_cast %83 : vector<8xf32> to vector<8x1xf32>
    %85 = vector.broadcast %84 : vector<8x1xf32> to vector<8x8xf32>
    %86 = arith.divf %82, %85 : vector<8x8xf32>
    %87 = arith.truncf %86 : vector<8x8xf32> to vector<8x8xbf16>
    %cst_69 = arith.constant dense<0.000000e+00> : vector<8x8xf32>
    %88 = tpu.matmul %87, %69, %cst_69 {dimension_numbers = #tpu.dot_dimension_numbers<[1], [0], [0], [1], [0, 0, 1, 1], [], []>} : vector<8x8xbf16>, vector<8x8xbf16>, vector<8x8xf32> -> vector<8x8xf32>
    %89 = vector.extract_strided_slice %55 {offsets = [0, 8], sizes = [8, 8], strides = [1, 1]} : vector<8x32xf32> to vector<8x8xf32>
    %90 = arith.truncf %89 : vector<8x8xf32> to vector<8x8xbf16>
    %91 = vector.extract_strided_slice %59 {offsets = [0, 8], sizes = [8, 8], strides = [1, 1]} : vector<8x32xf32> to vector<8x8xf32>
    %92 = arith.truncf %91 : vector<8x8xf32> to vector<8x8xbf16>
    %93 = vector.extract_strided_slice %63 {offsets = [0, 8], sizes = [8, 8], strides = [1, 1]} : vector<8x32xf32> to vector<8x8xf32>
    %94 = arith.truncf %93 : vector<8x8xf32> to vector<8x8xbf16>
    %cst_70 = arith.constant dense<0.000000e+00> : vector<8x8xf32>
    %95 = tpu.matmul %90, %92, %cst_70 {dimension_numbers = #tpu.dot_dimension_numbers<[1], [1], [0], [0], [0, 0, 1, 0], [], []>} : vector<8x8xbf16>, vector<8x8xbf16>, vector<8x8xf32> -> vector<8x8xf32>
    %cst_71 = arith.constant 0.353553385 : f32
    %96 = vector.broadcast %cst_71 : f32 to vector<8x8xf32>
    %97 = arith.mulf %95, %96 : vector<8x8xf32>
    %98 = tpu.iota {dimensions = array<i32: 0>} : vector<8x8xi32>
    %99 = tpu.iota {dimensions = array<i32: 1>} : vector<8x8xi32>
    %100 = arith.cmpi sle, %99, %98 : vector<8x8xi32>
    %cst_72 = arith.constant 0xFF800000 : f32
    %101 = vector.broadcast %cst_72 : f32 to vector<8x8xf32>
    %102 = arith.select %100, %97, %101 : vector<8x8xi1>, vector<8x8xf32>
    %cst_73 = arith.constant dense<0xFF800000> : vector<8xf32>
    %103 = vector.multi_reduction <maximumf>, %102, %cst_73 [1] : vector<8x8xf32> to vector<8xf32>
    %104 = vector.shape_cast %103 : vector<8xf32> to vector<8x1xf32>
    %105 = vector.broadcast %104 : vector<8x1xf32> to vector<8x8xf32>
    %106 = arith.subf %102, %105 : vector<8x8xf32>
    %107 = math.exp %106 : vector<8x8xf32>
    %cst_74 = arith.constant dense<0.000000e+00> : vector<8xf32>
    %108 = vector.multi_reduction <add>, %107, %cst_74 [1] : vector<8x8xf32> to vector<8xf32>
    %109 = vector.shape_cast %108 : vector<8xf32> to vector<8x1xf32>
    %110 = vector.broadcast %109 : vector<8x1xf32> to vector<8x8xf32>
    %111 = arith.divf %107, %110 : vector<8x8xf32>
    %112 = arith.truncf %111 : vector<8x8xf32> to vector<8x8xbf16>
    %cst_75 = arith.constant dense<0.000000e+00> : vector<8x8xf32>
    %113 = tpu.matmul %112, %94, %cst_75 {dimension_numbers = #tpu.dot_dimension_numbers<[1], [0], [0], [1], [0, 0, 1, 1], [], []>} : vector<8x8xbf16>, vector<8x8xbf16>, vector<8x8xf32> -> vector<8x8xf32>
    %114 = vector.extract_strided_slice %55 {offsets = [0, 16], sizes = [8, 8], strides = [1, 1]} : vector<8x32xf32> to vector<8x8xf32>
    %115 = arith.truncf %114 : vector<8x8xf32> to vector<8x8xbf16>
    %116 = vector.extract_strided_slice %59 {offsets = [0, 16], sizes = [8, 8], strides = [1, 1]} : vector<8x32xf32> to vector<8x8xf32>
    %117 = arith.truncf %116 : vector<8x8xf32> to vector<8x8xbf16>
    %118 = vector.extract_strided_slice %63 {offsets = [0, 16], sizes = [8, 8], strides = [1, 1]} : vector<8x32xf32> to vector<8x8xf32>
    %119 = arith.truncf %118 : vector<8x8xf32> to vector<8x8xbf16>
    %cst_76 = arith.constant dense<0.000000e+00> : vector<8x8xf32>
    %120 = tpu.matmul %115, %117, %cst_76 {dimension_numbers = #tpu.dot_dimension_numbers<[1], [1], [0], [0], [0, 0, 1, 0], [], []>} : vector<8x8xbf16>, vector<8x8xbf16>, vector<8x8xf32> -> vector<8x8xf32>
    %cst_77 = arith.constant 0.353553385 : f32
    %121 = vector.broadcast %cst_77 : f32 to vector<8x8xf32>
    %122 = arith.mulf %120, %121 : vector<8x8xf32>
    %123 = tpu.iota {dimensions = array<i32: 0>} : vector<8x8xi32>
    %124 = tpu.iota {dimensions = array<i32: 1>} : vector<8x8xi32>
    %125 = arith.cmpi sle, %124, %123 : vector<8x8xi32>
    %cst_78 = arith.constant 0xFF800000 : f32
    %126 = vector.broadcast %cst_78 : f32 to vector<8x8xf32>
    %127 = arith.select %125, %122, %126 : vector<8x8xi1>, vector<8x8xf32>
    %cst_79 = arith.constant dense<0xFF800000> : vector<8xf32>
    %128 = vector.multi_reduction <maximumf>, %127, %cst_79 [1] : vector<8x8xf32> to vector<8xf32>
    %129 = vector.shape_cast %128 : vector<8xf32> to vector<8x1xf32>
    %130 = vector.broadcast %129 : vector<8x1xf32> to vector<8x8xf32>
    %131 = arith.subf %127, %130 : vector<8x8xf32>
    %132 = math.exp %131 : vector<8x8xf32>
    %cst_80 = arith.constant dense<0.000000e+00> : vector<8xf32>
    %133 = vector.multi_reduction <add>, %132, %cst_80 [1] : vector<8x8xf32> to vector<8xf32>
    %134 = vector.shape_cast %133 : vector<8xf32> to vector<8x1xf32>
    %135 = vector.broadcast %134 : vector<8x1xf32> to vector<8x8xf32>
    %136 = arith.divf %132, %135 : vector<8x8xf32>
    %137 = arith.truncf %136 : vector<8x8xf32> to vector<8x8xbf16>
    %cst_81 = arith.constant dense<0.000000e+00> : vector<8x8xf32>
    %138 = tpu.matmul %137, %119, %cst_81 {dimension_numbers = #tpu.dot_dimension_numbers<[1], [0], [0], [1], [0, 0, 1, 1], [], []>} : vector<8x8xbf16>, vector<8x8xbf16>, vector<8x8xf32> -> vector<8x8xf32>
    %139 = vector.extract_strided_slice %55 {offsets = [0, 24], sizes = [8, 8], strides = [1, 1]} : vector<8x32xf32> to vector<8x8xf32>
    %140 = arith.truncf %139 : vector<8x8xf32> to vector<8x8xbf16>
    %141 = vector.extract_strided_slice %59 {offsets = [0, 24], sizes = [8, 8], strides = [1, 1]} : vector<8x32xf32> to vector<8x8xf32>
    %142 = arith.truncf %141 : vector<8x8xf32> to vector<8x8xbf16>
    %143 = vector.extract_strided_slice %63 {offsets = [0, 24], sizes = [8, 8], strides = [1, 1]} : vector<8x32xf32> to vector<8x8xf32>
    %144 = arith.truncf %143 : vector<8x8xf32> to vector<8x8xbf16>
    %cst_82 = arith.constant dense<0.000000e+00> : vector<8x8xf32>
    %145 = tpu.matmul %140, %142, %cst_82 {dimension_numbers = #tpu.dot_dimension_numbers<[1], [1], [0], [0], [0, 0, 1, 0], [], []>} : vector<8x8xbf16>, vector<8x8xbf16>, vector<8x8xf32> -> vector<8x8xf32>
    %cst_83 = arith.constant 0.353553385 : f32
    %146 = vector.broadcast %cst_83 : f32 to vector<8x8xf32>
    %147 = arith.mulf %145, %146 : vector<8x8xf32>
    %148 = tpu.iota {dimensions = array<i32: 0>} : vector<8x8xi32>
    %149 = tpu.iota {dimensions = array<i32: 1>} : vector<8x8xi32>
    %150 = arith.cmpi sle, %149, %148 : vector<8x8xi32>
    %cst_84 = arith.constant 0xFF800000 : f32
    %151 = vector.broadcast %cst_84 : f32 to vector<8x8xf32>
    %152 = arith.select %150, %147, %151 : vector<8x8xi1>, vector<8x8xf32>
    %cst_85 = arith.constant dense<0xFF800000> : vector<8xf32>
    %153 = vector.multi_reduction <maximumf>, %152, %cst_85 [1] : vector<8x8xf32> to vector<8xf32>
    %154 = vector.shape_cast %153 : vector<8xf32> to vector<8x1xf32>
    %155 = vector.broadcast %154 : vector<8x1xf32> to vector<8x8xf32>
    %156 = arith.subf %152, %155 : vector<8x8xf32>
    %157 = math.exp %156 : vector<8x8xf32>
    %cst_86 = arith.constant dense<0.000000e+00> : vector<8xf32>
    %158 = vector.multi_reduction <add>, %157, %cst_86 [1] : vector<8x8xf32> to vector<8xf32>
    %159 = vector.shape_cast %158 : vector<8xf32> to vector<8x1xf32>
    %160 = vector.broadcast %159 : vector<8x1xf32> to vector<8x8xf32>
    %161 = arith.divf %157, %160 : vector<8x8xf32>
    %162 = arith.truncf %161 : vector<8x8xf32> to vector<8x8xbf16>
    %cst_87 = arith.constant dense<0.000000e+00> : vector<8x8xf32>
    %163 = tpu.matmul %162, %144, %cst_87 {dimension_numbers = #tpu.dot_dimension_numbers<[1], [0], [0], [1], [0, 0, 1, 1], [], []>} : vector<8x8xbf16>, vector<8x8xbf16>, vector<8x8xf32> -> vector<8x8xf32>
    %164 = tpu.concatenate %88, %113, %138, %163 in 1 : vector<8x8xf32>, vector<8x8xf32>, vector<8x8xf32>, vector<8x8xf32> -> vector<8x32xf32>
    %165 = arith.truncf %164 : vector<8x32xf32> to vector<8x32xbf16>
    %cst_88 = arith.constant dense<0.000000e+00> : vector<8x32xf32>
    %166 = tpu.matmul %165, %8, %cst_88 {dimension_numbers = #tpu.dot_dimension_numbers<[1], [0], [0], [1], [0, 0, 1, 1], [], []>} : vector<8x32xbf16>, vector<32x32xbf16>, vector<8x32xf32> -> vector<8x32xf32>
    %167 = vector.broadcast %9 : vector<1x32xf32> to vector<8x32xf32>
    %168 = arith.addf %166, %167 : vector<8x32xf32>
    %169 = arith.addf %51, %168 : vector<8x32xf32>
    %cst_89 = arith.constant dense<0.000000e+00> : vector<8xf32>
    %170 = vector.multi_reduction <add>, %169, %cst_89 [1] : vector<8x32xf32> to vector<8xf32>
    %171 = vector.shape_cast %170 : vector<8xf32> to vector<8x1xf32>
    %cst_90 = arith.constant 3.200000e+01 : f32
    %172 = vector.broadcast %cst_90 : f32 to vector<8x1xf32>
    %173 = arith.divf %171, %172 : vector<8x1xf32>
    %174 = vector.broadcast %173 : vector<8x1xf32> to vector<8x32xf32>
    %175 = arith.subf %169, %174 : vector<8x32xf32>
    %176 = arith.mulf %175, %175 : vector<8x32xf32>
    %cst_91 = arith.constant dense<0.000000e+00> : vector<8xf32>
    %177 = vector.multi_reduction <add>, %176, %cst_91 [1] : vector<8x32xf32> to vector<8xf32>
    %178 = vector.shape_cast %177 : vector<8xf32> to vector<8x1xf32>
    %cst_92 = arith.constant 3.200000e+01 : f32
    %179 = vector.broadcast %cst_92 : f32 to vector<8x1xf32>
    %180 = arith.divf %178, %179 : vector<8x1xf32>
    %181 = vector.broadcast %173 : vector<8x1xf32> to vector<8x32xf32>
    %182 = arith.subf %169, %181 : vector<8x32xf32>
    %cst_93 = arith.constant 9.99999974E-6 : f32
    %183 = vector.broadcast %cst_93 : f32 to vector<8x1xf32>
    %184 = arith.addf %180, %183 : vector<8x1xf32>
    %185 = math.rsqrt %184 : vector<8x1xf32>
    %186 = vector.broadcast %185 : vector<8x1xf32> to vector<8x32xf32>
    %187 = arith.mulf %182, %186 : vector<8x32xf32>
    %188 = vector.broadcast %10 : vector<1x32xf32> to vector<8x32xf32>
    %189 = arith.mulf %187, %188 : vector<8x32xf32>
    %190 = vector.broadcast %11 : vector<1x32xf32> to vector<8x32xf32>
    %191 = arith.addf %189, %190 : vector<8x32xf32>
    %192 = arith.truncf %191 : vector<8x32xf32> to vector<8x32xbf16>
    %cst_94 = arith.constant dense<0.000000e+00> : vector<8x32xf32>
    %193 = tpu.matmul %192, %12, %cst_94 {dimension_numbers = #tpu.dot_dimension_numbers<[1], [0], [0], [1], [0, 0, 1, 1], [], []>} : vector<8x32xbf16>, vector<32x32xbf16>, vector<8x32xf32> -> vector<8x32xf32>
    %194 = vector.broadcast %13 : vector<1x32xf32> to vector<8x32xf32>
    %195 = arith.addf %193, %194 : vector<8x32xf32>
    %196 = arith.truncf %29 : vector<8x32xf32> to vector<8x32xbf16>
    %cst_95 = arith.constant dense<0.000000e+00> : vector<8x32xf32>
    %197 = tpu.matmul %196, %14, %cst_95 {dimension_numbers = #tpu.dot_dimension_numbers<[1], [0], [0], [1], [0, 0, 1, 1], [], []>} : vector<8x32xbf16>, vector<32x32xbf16>, vector<8x32xf32> -> vector<8x32xf32>
    %198 = vector.broadcast %15 : vector<1x32xf32> to vector<8x32xf32>
    %199 = arith.addf %197, %198 : vector<8x32xf32>
    %200 = arith.truncf %29 : vector<8x32xf32> to vector<8x32xbf16>
    %cst_96 = arith.constant dense<0.000000e+00> : vector<8x32xf32>
    %201 = tpu.matmul %200, %16, %cst_96 {dimension_numbers = #tpu.dot_dimension_numbers<[1], [0], [0], [1], [0, 0, 1, 1], [], []>} : vector<8x32xbf16>, vector<32x32xbf16>, vector<8x32xf32> -> vector<8x32xf32>
    %202 = vector.broadcast %17 : vector<1x32xf32> to vector<8x32xf32>
    %203 = arith.addf %201, %202 : vector<8x32xf32>
    %204 = vector.extract_strided_slice %195 {offsets = [0, 0], sizes = [8, 8], strides = [1, 1]} : vector<8x32xf32> to vector<8x8xf32>
    %205 = arith.truncf %204 : vector<8x8xf32> to vector<8x8xbf16>
    %206 = vector.extract_strided_slice %199 {offsets = [0, 0], sizes = [8, 8], strides = [1, 1]} : vector<8x32xf32> to vector<8x8xf32>
    %207 = arith.truncf %206 : vector<8x8xf32> to vector<8x8xbf16>
    %208 = vector.extract_strided_slice %203 {offsets = [0, 0], sizes = [8, 8], strides = [1, 1]} : vector<8x32xf32> to vector<8x8xf32>
    %209 = arith.truncf %208 : vector<8x8xf32> to vector<8x8xbf16>
    %cst_97 = arith.constant dense<0.000000e+00> : vector<8x8xf32>
    %210 = tpu.matmul %205, %207, %cst_97 {dimension_numbers = #tpu.dot_dimension_numbers<[1], [1], [0], [0], [0, 0, 1, 0], [], []>} : vector<8x8xbf16>, vector<8x8xbf16>, vector<8x8xf32> -> vector<8x8xf32>
    %cst_98 = arith.constant 0.353553385 : f32
    %211 = vector.broadcast %cst_98 : f32 to vector<8x8xf32>
    %212 = arith.mulf %210, %211 : vector<8x8xf32>
    %cst_99 = arith.constant dense<0xFF800000> : vector<8xf32>
    %213 = vector.multi_reduction <maximumf>, %212, %cst_99 [1] : vector<8x8xf32> to vector<8xf32>
    %214 = vector.shape_cast %213 : vector<8xf32> to vector<8x1xf32>
    %215 = vector.broadcast %214 : vector<8x1xf32> to vector<8x8xf32>
    %216 = arith.subf %212, %215 : vector<8x8xf32>
    %217 = math.exp %216 : vector<8x8xf32>
    %cst_100 = arith.constant dense<0.000000e+00> : vector<8xf32>
    %218 = vector.multi_reduction <add>, %217, %cst_100 [1] : vector<8x8xf32> to vector<8xf32>
    %219 = vector.shape_cast %218 : vector<8xf32> to vector<8x1xf32>
    %220 = vector.broadcast %219 : vector<8x1xf32> to vector<8x8xf32>
    %221 = arith.divf %217, %220 : vector<8x8xf32>
    %222 = arith.truncf %221 : vector<8x8xf32> to vector<8x8xbf16>
    %cst_101 = arith.constant dense<0.000000e+00> : vector<8x8xf32>
    %223 = tpu.matmul %222, %209, %cst_101 {dimension_numbers = #tpu.dot_dimension_numbers<[1], [0], [0], [1], [0, 0, 1, 1], [], []>} : vector<8x8xbf16>, vector<8x8xbf16>, vector<8x8xf32> -> vector<8x8xf32>
    %224 = vector.extract_strided_slice %195 {offsets = [0, 8], sizes = [8, 8], strides = [1, 1]} : vector<8x32xf32> to vector<8x8xf32>
    %225 = arith.truncf %224 : vector<8x8xf32> to vector<8x8xbf16>
    %226 = vector.extract_strided_slice %199 {offsets = [0, 8], sizes = [8, 8], strides = [1, 1]} : vector<8x32xf32> to vector<8x8xf32>
    %227 = arith.truncf %226 : vector<8x8xf32> to vector<8x8xbf16>
    %228 = vector.extract_strided_slice %203 {offsets = [0, 8], sizes = [8, 8], strides = [1, 1]} : vector<8x32xf32> to vector<8x8xf32>
    %229 = arith.truncf %228 : vector<8x8xf32> to vector<8x8xbf16>
    %cst_102 = arith.constant dense<0.000000e+00> : vector<8x8xf32>
    %230 = tpu.matmul %225, %227, %cst_102 {dimension_numbers = #tpu.dot_dimension_numbers<[1], [1], [0], [0], [0, 0, 1, 0], [], []>} : vector<8x8xbf16>, vector<8x8xbf16>, vector<8x8xf32> -> vector<8x8xf32>
    %cst_103 = arith.constant 0.353553385 : f32
    %231 = vector.broadcast %cst_103 : f32 to vector<8x8xf32>
    %232 = arith.mulf %230, %231 : vector<8x8xf32>
    %cst_104 = arith.constant dense<0xFF800000> : vector<8xf32>
    %233 = vector.multi_reduction <maximumf>, %232, %cst_104 [1] : vector<8x8xf32> to vector<8xf32>
    %234 = vector.shape_cast %233 : vector<8xf32> to vector<8x1xf32>
    %235 = vector.broadcast %234 : vector<8x1xf32> to vector<8x8xf32>
    %236 = arith.subf %232, %235 : vector<8x8xf32>
    %237 = math.exp %236 : vector<8x8xf32>
    %cst_105 = arith.constant dense<0.000000e+00> : vector<8xf32>
    %238 = vector.multi_reduction <add>, %237, %cst_105 [1] : vector<8x8xf32> to vector<8xf32>
    %239 = vector.shape_cast %238 : vector<8xf32> to vector<8x1xf32>
    %240 = vector.broadcast %239 : vector<8x1xf32> to vector<8x8xf32>
    %241 = arith.divf %237, %240 : vector<8x8xf32>
    %242 = arith.truncf %241 : vector<8x8xf32> to vector<8x8xbf16>
    %cst_106 = arith.constant dense<0.000000e+00> : vector<8x8xf32>
    %243 = tpu.matmul %242, %229, %cst_106 {dimension_numbers = #tpu.dot_dimension_numbers<[1], [0], [0], [1], [0, 0, 1, 1], [], []>} : vector<8x8xbf16>, vector<8x8xbf16>, vector<8x8xf32> -> vector<8x8xf32>
    %244 = vector.extract_strided_slice %195 {offsets = [0, 16], sizes = [8, 8], strides = [1, 1]} : vector<8x32xf32> to vector<8x8xf32>
    %245 = arith.truncf %244 : vector<8x8xf32> to vector<8x8xbf16>
    %246 = vector.extract_strided_slice %199 {offsets = [0, 16], sizes = [8, 8], strides = [1, 1]} : vector<8x32xf32> to vector<8x8xf32>
    %247 = arith.truncf %246 : vector<8x8xf32> to vector<8x8xbf16>
    %248 = vector.extract_strided_slice %203 {offsets = [0, 16], sizes = [8, 8], strides = [1, 1]} : vector<8x32xf32> to vector<8x8xf32>
    %249 = arith.truncf %248 : vector<8x8xf32> to vector<8x8xbf16>
    %cst_107 = arith.constant dense<0.000000e+00> : vector<8x8xf32>
    %250 = tpu.matmul %245, %247, %cst_107 {dimension_numbers = #tpu.dot_dimension_numbers<[1], [1], [0], [0], [0, 0, 1, 0], [], []>} : vector<8x8xbf16>, vector<8x8xbf16>, vector<8x8xf32> -> vector<8x8xf32>
    %cst_108 = arith.constant 0.353553385 : f32
    %251 = vector.broadcast %cst_108 : f32 to vector<8x8xf32>
    %252 = arith.mulf %250, %251 : vector<8x8xf32>
    %cst_109 = arith.constant dense<0xFF800000> : vector<8xf32>
    %253 = vector.multi_reduction <maximumf>, %252, %cst_109 [1] : vector<8x8xf32> to vector<8xf32>
    %254 = vector.shape_cast %253 : vector<8xf32> to vector<8x1xf32>
    %255 = vector.broadcast %254 : vector<8x1xf32> to vector<8x8xf32>
    %256 = arith.subf %252, %255 : vector<8x8xf32>
    %257 = math.exp %256 : vector<8x8xf32>
    %cst_110 = arith.constant dense<0.000000e+00> : vector<8xf32>
    %258 = vector.multi_reduction <add>, %257, %cst_110 [1] : vector<8x8xf32> to vector<8xf32>
    %259 = vector.shape_cast %258 : vector<8xf32> to vector<8x1xf32>
    %260 = vector.broadcast %259 : vector<8x1xf32> to vector<8x8xf32>
    %261 = arith.divf %257, %260 : vector<8x8xf32>
    %262 = arith.truncf %261 : vector<8x8xf32> to vector<8x8xbf16>
    %cst_111 = arith.constant dense<0.000000e+00> : vector<8x8xf32>
    %263 = tpu.matmul %262, %249, %cst_111 {dimension_numbers = #tpu.dot_dimension_numbers<[1], [0], [0], [1], [0, 0, 1, 1], [], []>} : vector<8x8xbf16>, vector<8x8xbf16>, vector<8x8xf32> -> vector<8x8xf32>
    %264 = vector.extract_strided_slice %195 {offsets = [0, 24], sizes = [8, 8], strides = [1, 1]} : vector<8x32xf32> to vector<8x8xf32>
    %265 = arith.truncf %264 : vector<8x8xf32> to vector<8x8xbf16>
    %266 = vector.extract_strided_slice %199 {offsets = [0, 24], sizes = [8, 8], strides = [1, 1]} : vector<8x32xf32> to vector<8x8xf32>
    %267 = arith.truncf %266 : vector<8x8xf32> to vector<8x8xbf16>
    %268 = vector.extract_strided_slice %203 {offsets = [0, 24], sizes = [8, 8], strides = [1, 1]} : vector<8x32xf32> to vector<8x8xf32>
    %269 = arith.truncf %268 : vector<8x8xf32> to vector<8x8xbf16>
    %cst_112 = arith.constant dense<0.000000e+00> : vector<8x8xf32>
    %270 = tpu.matmul %265, %267, %cst_112 {dimension_numbers = #tpu.dot_dimension_numbers<[1], [1], [0], [0], [0, 0, 1, 0], [], []>} : vector<8x8xbf16>, vector<8x8xbf16>, vector<8x8xf32> -> vector<8x8xf32>
    %cst_113 = arith.constant 0.353553385 : f32
    %271 = vector.broadcast %cst_113 : f32 to vector<8x8xf32>
    %272 = arith.mulf %270, %271 : vector<8x8xf32>
    %cst_114 = arith.constant dense<0xFF800000> : vector<8xf32>
    %273 = vector.multi_reduction <maximumf>, %272, %cst_114 [1] : vector<8x8xf32> to vector<8xf32>
    %274 = vector.shape_cast %273 : vector<8xf32> to vector<8x1xf32>
    %275 = vector.broadcast %274 : vector<8x1xf32> to vector<8x8xf32>
    %276 = arith.subf %272, %275 : vector<8x8xf32>
    %277 = math.exp %276 : vector<8x8xf32>
    %cst_115 = arith.constant dense<0.000000e+00> : vector<8xf32>
    %278 = vector.multi_reduction <add>, %277, %cst_115 [1] : vector<8x8xf32> to vector<8xf32>
    %279 = vector.shape_cast %278 : vector<8xf32> to vector<8x1xf32>
    %280 = vector.broadcast %279 : vector<8x1xf32> to vector<8x8xf32>
    %281 = arith.divf %277, %280 : vector<8x8xf32>
    %282 = arith.truncf %281 : vector<8x8xf32> to vector<8x8xbf16>
    %cst_116 = arith.constant dense<0.000000e+00> : vector<8x8xf32>
    %283 = tpu.matmul %282, %269, %cst_116 {dimension_numbers = #tpu.dot_dimension_numbers<[1], [0], [0], [1], [0, 0, 1, 1], [], []>} : vector<8x8xbf16>, vector<8x8xbf16>, vector<8x8xf32> -> vector<8x8xf32>
    %284 = tpu.concatenate %223, %243, %263, %283 in 1 : vector<8x8xf32>, vector<8x8xf32>, vector<8x8xf32>, vector<8x8xf32> -> vector<8x32xf32>
    %285 = arith.truncf %284 : vector<8x32xf32> to vector<8x32xbf16>
    %cst_117 = arith.constant dense<0.000000e+00> : vector<8x32xf32>
    %286 = tpu.matmul %285, %18, %cst_117 {dimension_numbers = #tpu.dot_dimension_numbers<[1], [0], [0], [1], [0, 0, 1, 1], [], []>} : vector<8x32xbf16>, vector<32x32xbf16>, vector<8x32xf32> -> vector<8x32xf32>
    %287 = vector.broadcast %19 : vector<1x32xf32> to vector<8x32xf32>
    %288 = arith.addf %286, %287 : vector<8x32xf32>
    %289 = arith.addf %191, %288 : vector<8x32xf32>
    %cst_118 = arith.constant dense<0.000000e+00> : vector<8xf32>
    %290 = vector.multi_reduction <add>, %289, %cst_118 [1] : vector<8x32xf32> to vector<8xf32>
    %291 = vector.shape_cast %290 : vector<8xf32> to vector<8x1xf32>
    %cst_119 = arith.constant 3.200000e+01 : f32
    %292 = vector.broadcast %cst_119 : f32 to vector<8x1xf32>
    %293 = arith.divf %291, %292 : vector<8x1xf32>
    %294 = vector.broadcast %293 : vector<8x1xf32> to vector<8x32xf32>
    %295 = arith.subf %289, %294 : vector<8x32xf32>
    %296 = arith.mulf %295, %295 : vector<8x32xf32>
    %cst_120 = arith.constant dense<0.000000e+00> : vector<8xf32>
    %297 = vector.multi_reduction <add>, %296, %cst_120 [1] : vector<8x32xf32> to vector<8xf32>
    %298 = vector.shape_cast %297 : vector<8xf32> to vector<8x1xf32>
    %cst_121 = arith.constant 3.200000e+01 : f32
    %299 = vector.broadcast %cst_121 : f32 to vector<8x1xf32>
    %300 = arith.divf %298, %299 : vector<8x1xf32>
    %301 = vector.broadcast %293 : vector<8x1xf32> to vector<8x32xf32>
    %302 = arith.subf %289, %301 : vector<8x32xf32>
    %cst_122 = arith.constant 9.99999974E-6 : f32
    %303 = vector.broadcast %cst_122 : f32 to vector<8x1xf32>
    %304 = arith.addf %300, %303 : vector<8x1xf32>
    %305 = math.rsqrt %304 : vector<8x1xf32>
    %306 = vector.broadcast %305 : vector<8x1xf32> to vector<8x32xf32>
    %307 = arith.mulf %302, %306 : vector<8x32xf32>
    %308 = vector.broadcast %20 : vector<1x32xf32> to vector<8x32xf32>
    %309 = arith.mulf %307, %308 : vector<8x32xf32>
    %310 = vector.broadcast %21 : vector<1x32xf32> to vector<8x32xf32>
    %311 = arith.addf %309, %310 : vector<8x32xf32>
    %312 = arith.truncf %311 : vector<8x32xf32> to vector<8x32xbf16>
    %cst_123 = arith.constant dense<0.000000e+00> : vector<8x128xf32>
    %313 = tpu.matmul %312, %22, %cst_123 {dimension_numbers = #tpu.dot_dimension_numbers<[1], [0], [0], [1], [0, 0, 1, 1], [], []>} : vector<8x32xbf16>, vector<32x128xbf16>, vector<8x128xf32> -> vector<8x128xf32>
    %314 = vector.broadcast %23 : vector<1x128xf32> to vector<8x128xf32>
    %315 = arith.addf %313, %314 : vector<8x128xf32>
    %cst_124 = arith.constant 0.000000e+00 : f32
    %316 = vector.broadcast %cst_124 : f32 to vector<8x128xf32>
    %317 = arith.maximumf %315, %316 : vector<8x128xf32>
    %318 = arith.truncf %317 : vector<8x128xf32> to vector<8x128xbf16>
    %cst_125 = arith.constant dense<0.000000e+00> : vector<8x32xf32>
    %319 = tpu.matmul %318, %24, %cst_125 {dimension_numbers = #tpu.dot_dimension_numbers<[1], [0], [0], [1], [0, 0, 1, 1], [], []>} : vector<8x128xbf16>, vector<128x32xbf16>, vector<8x32xf32> -> vector<8x32xf32>
    %320 = vector.broadcast %25 : vector<1x32xf32> to vector<8x32xf32>
    %321 = arith.addf %319, %320 : vector<8x32xf32>
    %322 = arith.addf %311, %321 : vector<8x32xf32>
    %c0_126 = arith.constant 0 : index
    %c0_127 = arith.constant 0 : index
    %c0_128 = arith.constant 0 : index
    %323 = vector.load %arg29[%c0_126, %c0_127, %c0_128] : memref<1x8x32xf32, #tpu.memory_space<vmem>>, vector<1x8x32xf32>
    %324 = vector.shape_cast %323 : vector<1x8x32xf32> to vector<8x32xf32>
    %325 = vector.shape_cast %322 : vector<8x32xf32> to vector<1x8x32xf32>
    tpu.vector_store %arg29[%c0_126, %c0_127, %c0_128], %325 {strides = array<i32>} : memref<1x8x32xf32, #tpu.memory_space<vmem>>, vector<1x8x32xf32>,
    return
  }
  func.func @transform_0(%arg0: i32) -> (i32, i32, i32) {
    %c0_i32 = arith.constant 0 : i32
    %c0_i32_0 = arith.constant 0 : i32
    %c0_i32_1 = arith.constant 0 : i32
    return %arg0, %c0_i32, %c0_i32_0 : i32, i32, i32
  }
  func.func @transform_1(%arg0: i32) -> (i32, i32, i32) {
    %c0_i32 = arith.constant 0 : i32
    %c0_i32_0 = arith.constant 0 : i32
    %c0_i32_1 = arith.constant 0 : i32
    return %arg0, %c0_i32, %c0_i32_0 : i32, i32, i32
  }
  func.func @transform_2(%arg0: i32) -> (i32, i32) {
    %c0_i32 = arith.constant 0 : i32
    %c0_i32_0 = arith.constant 0 : i32
    %c0_i32_1 = arith.constant 0 : i32
    return %c0_i32, %c0_i32_0 : i32, i32
  }
  func.func @transform_3(%arg0: i32) -> (i32, i32) {
    %c0_i32 = arith.constant 0 : i32
    %c0_i32_0 = arith.constant 0 : i32
    %c0_i32_1 = arith.constant 0 : i32
    return %c0_i32, %c0_i32_0 : i32, i32
  }
  func.func @transform_4(%arg0: i32) -> (i32, i32) {
    %c0_i32 = arith.constant 0 : i32
    %c0_i32_0 = arith.constant 0 : i32
    %c0_i32_1 = arith.constant 0 : i32
    return %c0_i32, %c0_i32_0 : i32, i32
  }
  func.func @transform_5(%arg0: i32) -> (i32, i32) {
    %c0_i32 = arith.constant 0 : i32
    %c0_i32_0 = arith.constant 0 : i32
    %c0_i32_1 = arith.constant 0 : i32
    return %c0_i32, %c0_i32_0 : i32, i32
  }
  func.func @transform_6(%arg0: i32) -> (i32, i32) {
    %c0_i32 = arith.constant 0 : i32
    %c0_i32_0 = arith.constant 0 : i32
    %c0_i32_1 = arith.constant 0 : i32
    return %c0_i32, %c0_i32_0 : i32, i32
  }
  func.func @transform_7(%arg0: i32) -> (i32, i32) {
    %c0_i32 = arith.constant 0 : i32
    %c0_i32_0 = arith.constant 0 : i32
    %c0_i32_1 = arith.constant 0 : i32
    return %c0_i32, %c0_i32_0 : i32, i32
  }
  func.func @transform_8(%arg0: i32) -> (i32, i32) {
    %c0_i32 = arith.constant 0 : i32
    %c0_i32_0 = arith.constant 0 : i32
    %c0_i32_1 = arith.constant 0 : i32
    return %c0_i32, %c0_i32_0 : i32, i32
  }
  func.func @transform_9(%arg0: i32) -> (i32, i32) {
    %c0_i32 = arith.constant 0 : i32
    %c0_i32_0 = arith.constant 0 : i32
    %c0_i32_1 = arith.constant 0 : i32
    return %c0_i32, %c0_i32_0 : i32, i32
  }
  func.func @transform_10(%arg0: i32) -> (i32, i32) {
    %c0_i32 = arith.constant 0 : i32
    %c0_i32_0 = arith.constant 0 : i32
    %c0_i32_1 = arith.constant 0 : i32
    return %c0_i32, %c0_i32_0 : i32, i32
  }
  func.func @transform_11(%arg0: i32) -> (i32, i32) {
    %c0_i32 = arith.constant 0 : i32
    %c0_i32_0 = arith.constant 0 : i32
    %c0_i32_1 = arith.constant 0 : i32
    return %c0_i32, %c0_i32_0 : i32, i32
  }
  func.func @transform_12(%arg0: i32) -> (i32, i32) {
    %c0_i32 = arith.constant 0 : i32
    %c0_i32_0 = arith.constant 0 : i32
    %c0_i32_1 = arith.constant 0 : i32
    return %c0_i32, %c0_i32_0 : i32, i32
  }
  func.func @transform_13(%arg0: i32) -> (i32, i32) {
    %c0_i32 = arith.constant 0 : i32
    %c0_i32_0 = arith.constant 0 : i32
    %c0_i32_1 = arith.constant 0 : i32
    return %c0_i32, %c0_i32_0 : i32, i32
  }
  func.func @transform_14(%arg0: i32) -> (i32, i32) {
    %c0_i32 = arith.constant 0 : i32
    %c0_i32_0 = arith.constant 0 : i32
    %c0_i32_1 = arith.constant 0 : i32
    return %c0_i32, %c0_i32_0 : i32, i32
  }
  func.func @transform_15(%arg0: i32) -> (i32, i32) {
    %c0_i32 = arith.constant 0 : i32
    %c0_i32_0 = arith.constant 0 : i32
    %c0_i32_1 = arith.constant 0 : i32
    return %c0_i32, %c0_i32_0 : i32, i32
  }
  func.func @transform_16(%arg0: i32) -> (i32, i32) {
    %c0_i32 = arith.constant 0 : i32
    %c0_i32_0 = arith.constant 0 : i32
    %c0_i32_1 = arith.constant 0 : i32
    return %c0_i32, %c0_i32_0 : i32, i32
  }
  func.func @transform_17(%arg0: i32) -> (i32, i32) {
    %c0_i32 = arith.constant 0 : i32
    %c0_i32_0 = arith.constant 0 : i32
    %c0_i32_1 = arith.constant 0 : i32
    return %c0_i32, %c0_i32_0 : i32, i32
  }
  func.func @transform_18(%arg0: i32) -> (i32, i32) {
    %c0_i32 = arith.constant 0 : i32
    %c0_i32_0 = arith.constant 0 : i32
    %c0_i32_1 = arith.constant 0 : i32
    return %c0_i32, %c0_i32_0 : i32, i32
  }
  func.func @transform_19(%arg0: i32) -> (i32, i32) {
    %c0_i32 = arith.constant 0 : i32
    %c0_i32_0 = arith.constant 0 : i32
    %c0_i32_1 = arith.constant 0 : i32
    return %c0_i32, %c0_i32_0 : i32, i32
  }
  func.func @transform_20(%arg0: i32) -> (i32, i32) {
    %c0_i32 = arith.constant 0 : i32
    %c0_i32_0 = arith.constant 0 : i32
    %c0_i32_1 = arith.constant 0 : i32
    return %c0_i32, %c0_i32_0 : i32, i32
  }
  func.func @transform_21(%arg0: i32) -> (i32, i32) {
    %c0_i32 = arith.constant 0 : i32
    %c0_i32_0 = arith.constant 0 : i32
    %c0_i32_1 = arith.constant 0 : i32
    return %c0_i32, %c0_i32_0 : i32, i32
  }
  func.func @transform_22(%arg0: i32) -> (i32, i32) {
    %c0_i32 = arith.constant 0 : i32
    %c0_i32_0 = arith.constant 0 : i32
    %c0_i32_1 = arith.constant 0 : i32
    return %c0_i32, %c0_i32_0 : i32, i32
  }
  func.func @transform_23(%arg0: i32) -> (i32, i32) {
    %c0_i32 = arith.constant 0 : i32
    %c0_i32_0 = arith.constant 0 : i32
    %c0_i32_1 = arith.constant 0 : i32
    return %c0_i32, %c0_i32_0 : i32, i32
  }
  func.func @transform_24(%arg0: i32) -> (i32, i32) {
    %c0_i32 = arith.constant 0 : i32
    %c0_i32_0 = arith.constant 0 : i32
    %c0_i32_1 = arith.constant 0 : i32
    return %c0_i32, %c0_i32_0 : i32, i32
  }
  func.func @transform_25(%arg0: i32) -> (i32, i32) {
    %c0_i32 = arith.constant 0 : i32
    %c0_i32_0 = arith.constant 0 : i32
    %c0_i32_1 = arith.constant 0 : i32
    return %c0_i32, %c0_i32_0 : i32, i32
  }
  func.func @transform_26(%arg0: i32) -> (i32, i32) {
    %c0_i32 = arith.constant 0 : i32
    %c0_i32_0 = arith.constant 0 : i32
    %c0_i32_1 = arith.constant 0 : i32
    return %c0_i32, %c0_i32_0 : i32, i32
  }
  func.func @transform_27(%arg0: i32) -> (i32, i32) {
    %c0_i32 = arith.constant 0 : i32
    %c0_i32_0 = arith.constant 0 : i32
    %c0_i32_1 = arith.constant 0 : i32
    return %c0_i32, %c0_i32_0 : i32, i32
  }
  func.func @transform_28(%arg0: i32) -> (i32, i32, i32) {
    %c0_i32 = arith.constant 0 : i32
    %c0_i32_0 = arith.constant 0 : i32
    %c0_i32_1 = arith.constant 0 : i32
    return %arg0, %c0_i32, %c0_i32_0 : i32, i32, i32
  }
}

module attributes {stable_mosaic.version = 11 : i64} {
  func.func @decoder_layer_kernel(%arg0: i32, %arg1: memref<1x8x32xf32, #tpu.memory_space<vmem>>, %arg2: memref<1x8x32xf32, #tpu.memory_space<vmem>>, %arg3: memref<1x32xf32, #tpu.memory_space<vmem>>, %arg4: memref<1x32xf32, #tpu.memory_space<vmem>>, %arg5: memref<32x32xbf16, #tpu.memory_space<vmem>>, %arg6: memref<1x32xf32, #tpu.memory_space<vmem>>, %arg7: memref<32x32xbf16, #tpu.memory_space<vmem>>, %arg8: memref<1x32xf32, #tpu.memory_space<vmem>>, %arg9: memref<32x32xbf16, #tpu.memory_space<vmem>>, %arg10: memref<1x32xf32, #tpu.memory_space<vmem>>, %arg11: memref<32x32xbf16, #tpu.memory_space<vmem>>, %arg12: memref<1x32xf32, #tpu.memory_space<vmem>>, %arg13: memref<1x32xf32, #tpu.memory_space<vmem>>, %arg14: memref<1x32xf32, #tpu.memory_space<vmem>>, %arg15: memref<32x32xbf16, #tpu.memory_space<vmem>>, %arg16: memref<1x32xf32, #tpu.memory_space<vmem>>, %arg17: memref<32x32xbf16, #tpu.memory_space<vmem>>, %arg18: memref<1x32xf32, #tpu.memory_space<vmem>>, %arg19: memref<32x32xbf16, #tpu.memory_space<vmem>>, %arg20: memref<1x32xf32, #tpu.memory_space<vmem>>, %arg21: memref<32x32xbf16, #tpu.memory_space<vmem>>, %arg22: memref<1x32xf32, #tpu.memory_space<vmem>>, %arg23: memref<1x32xf32, #tpu.memory_space<vmem>>, %arg24: memref<1x32xf32, #tpu.memory_space<vmem>>, %arg25: memref<32x128xbf16, #tpu.memory_space<vmem>>, %arg26: memref<1x128xf32, #tpu.memory_space<vmem>>, %arg27: memref<128x32xbf16, #tpu.memory_space<vmem>>, %arg28: memref<1x32xf32, #tpu.memory_space<vmem>>, %arg29: memref<1x8x32xf32, #tpu.memory_space<vmem>>) attributes {dimension_semantics = [#tpu.dimension_semantics<parallel>], iteration_bounds = array<i64: 2>, scalar_prefetch = 0 : i64, scratch_operands = 0 : i64, tpu.core_type = #tpu.core_type<tc>, window_params = [{transform_indices = @transform_0, window_bounds = array<i64: 1, 8, 32>}, {transform_indices = @transform_1, window_bounds = array<i64: 1, 8, 32>}, {pipeline_mode = #tpu.pipeline_mode<synchronous>, transform_indices = @transform_2, window_bounds = array<i64: 1, 32>}, {pipeline_mode = #tpu.pipeline_mode<synchronous>, transform_indices = @transform_3, window_bounds = array<i64: 1, 32>}, {pipeline_mode = #tpu.pipeline_mode<synchronous>, transform_indices = @transform_4, window_bounds = array<i64: 32, 32>}, {pipeline_mode = #tpu.pipeline_mode<synchronous>, transform_indices = @transform_5, window_bounds = array<i64: 1, 32>}, {pipeline_mode = #tpu.pipeline_mode<synchronous>, transform_indices = @transform_6, window_bounds = array<i64: 32, 32>}, {pipeline_mode = #tpu.pipeline_mode<synchronous>, transform_indices = @transform_7, window_bounds = array<i64: 1, 32>}, {pipeline_mode = #tpu.pipeline_mode<synchronous>, transform_indices = @transform_8, window_bounds = array<i64: 32, 32>}, {pipeline_mode = #tpu.pipeline_mode<synchronous>, transform_indices = @transform_9, window_bounds = array<i64: 1, 32>}, {pipeline_mode = #tpu.pipeline_mode<synchronous>, transform_indices = @transform_10, window_bounds = array<i64: 32, 32>}, {pipeline_mode = #tpu.pipeline_mode<synchronous>, transform_indices = @transform_11, window_bounds = array<i64: 1, 32>}, {pipeline_mode = #tpu.pipeline_mode<synchronous>, transform_indices = @transform_12, window_bounds = array<i64: 1, 32>}, {pipeline_mode = #tpu.pipeline_mode<synchronous>, transform_indices = @transform_13, window_bounds = array<i64: 1, 32>}, {pipeline_mode = #tpu.pipeline_mode<synchronous>, transform_indices = @transform_14, window_bounds = array<i64: 32, 32>}, {pipeline_mode = #tpu.pipeline_mode<synchronous>, transform_indices = @transform_15, window_bounds = array<i64: 1, 32>}, {pipeline_mode = #tpu.pipeline_mode<synchronous>, transform_indices = @transform_16, window_bounds = array<i64: 32, 32>}, {pipeline_mode = #tpu.pipeline_mode<synchronous>, transform_indices = @transform_17, window_bounds = array<i64: 1, 32>}, {pipeline_mode = #tpu.pipeline_mode<synchronous>, transform_indices = @transform_18, window_bounds = array<i64: 32, 32>}, {pipeline_mode = #tpu.pipeline_mode<synchronous>, transform_indices = @transform_19, window_bounds = array<i64: 1, 32>}, {pipeline_mode = #tpu.pipeline_mode<synchronous>, transform_indices = @transform_20, window_bounds = array<i64: 32, 32>}, {pipeline_mode = #tpu.pipeline_mode<synchronous>, transform_indices = @transform_21, window_bounds = array<i64: 1, 32>}, {pipeline_mode = #tpu.pipeline_mode<synchronous>, transform_indices = @transform_22, window_bounds = array<i64: 1, 32>}, {pipeline_mode = #tpu.pipeline_mode<synchronous>, transform_indices = @transform_23, window_bounds = array<i64: 1, 32>}, {pipeline_mode = #tpu.pipeline_mode<synchronous>, transform_indices = @transform_24, window_bounds = array<i64: 32, 128>}, {pipeline_mode = #tpu.pipeline_mode<synchronous>, transform_indices = @transform_25, window_bounds = array<i64: 1, 128>}, {pipeline_mode = #tpu.pipeline_mode<synchronous>, transform_indices = @transform_26, window_bounds = array<i64: 128, 32>}, {pipeline_mode = #tpu.pipeline_mode<synchronous>, transform_indices = @transform_27, window_bounds = array<i64: 1, 32>}, {transform_indices = @transform_28, window_bounds = array<i64: 1, 8, 32>}]} {
    %c0 = arith.constant 0 : index
    %c0_0 = arith.constant 0 : index
    %0 = vector.load %arg3[%c0, %c0_0] : memref<1x32xf32, #tpu.memory_space<vmem>>, vector<1x32xf32>
    %c0_1 = arith.constant 0 : index
    %c0_2 = arith.constant 0 : index
    %1 = vector.load %arg4[%c0_1, %c0_2] : memref<1x32xf32, #tpu.memory_space<vmem>>, vector<1x32xf32>
    %c0_3 = arith.constant 0 : index
    %c0_4 = arith.constant 0 : index
    %2 = vector.load %arg5[%c0_3, %c0_4] : memref<32x32xbf16, #tpu.memory_space<vmem>>, vector<32x32xbf16>
    %c0_5 = arith.constant 0 : index
    %c0_6 = arith.constant 0 : index
    %3 = vector.load %arg6[%c0_5, %c0_6] : memref<1x32xf32, #tpu.memory_space<vmem>>, vector<1x32xf32>
    %c0_7 = arith.constant 0 : index
    %c0_8 = arith.constant 0 : index
    %4 = vector.load %arg7[%c0_7, %c0_8] : memref<32x32xbf16, #tpu.memory_space<vmem>>, vector<32x32xbf16>
    %c0_9 = arith.constant 0 : index
    %c0_10 = arith.constant 0 : index
    %5 = vector.load %arg8[%c0_9, %c0_10] : memref<1x32xf32, #tpu.memory_space<vmem>>, vector<1x32xf32>
    %c0_11 = arith.constant 0 : index
    %c0_12 = arith.constant 0 : index
    %6 = vector.load %arg9[%c0_11, %c0_12] : memref<32x32xbf16, #tpu.memory_space<vmem>>, vector<32x32xbf16>
    %c0_13 = arith.constant 0 : index
    %c0_14 = arith.constant 0 : index
    %7 = vector.load %arg10[%c0_13, %c0_14] : memref<1x32xf32, #tpu.memory_space<vmem>>, vector<1x32xf32>
    %c0_15 = arith.constant 0 : index
    %c0_16 = arith.constant 0 : index
    %8 = vector.load %arg11[%c0_15, %c0_16] : memref<32x32xbf16, #tpu.memory_space<vmem>>, vector<32x32xbf16>
    %c0_17 = arith.constant 0 : index
    %c0_18 = arith.constant 0 : index
    %9 = vector.load %arg12[%c0_17, %c0_18] : memref<1x32xf32, #tpu.memory_space<vmem>>, vector<1x32xf32>
    %c0_19 = arith.constant 0 : index
    %c0_20 = arith.constant 0 : index
    %10 = vector.load %arg13[%c0_19, %c0_20] : memref<1x32xf32, #tpu.memory_space<vmem>>, vector<1x32xf32>
    %c0_21 = arith.constant 0 : index
    %c0_22 = arith.constant 0 : index
    %11 = vector.load %arg14[%c0_21, %c0_22] : memref<1x32xf32, #tpu.memory_space<vmem>>, vector<1x32xf32>
    %c0_23 = arith.constant 0 : index
    %c0_24 = arith.constant 0 : index
    %12 = vector.load %arg15[%c0_23, %c0_24] : memref<32x32xbf16, #tpu.memory_space<vmem>>, vector<32x32xbf16>
    %c0_25 = arith.constant 0 : index
    %c0_26 = arith.constant 0 : index
    %13 = vector.load %arg16[%c0_25, %c0_26] : memref<1x32xf32, #tpu.memory_space<vmem>>, vector<1x32xf32>
    %c0_27 = arith.constant 0 : index
    %c0_28 = arith.constant 0 : index
    %14 = vector.load %arg17[%c0_27, %c0_28] : memref<32x32xbf16, #tpu.memory_space<vmem>>, vector<32x32xbf16>
    %c0_29 = arith.constant 0 : index
    %c0_30 = arith.constant 0 : index
    %15 = vector.load %arg18[%c0_29, %c0_30] : memref<1x32xf32, #tpu.memory_space<vmem>>, vector<1x32xf32>
    %c0_31 = arith.constant 0 : index
    %c0_32 = arith.constant 0 : index
    %16 = vector.load %arg19[%c0_31, %c0_32] : memref<32x32xbf16, #tpu.memory_space<vmem>>, vector<32x32xbf16>
    %c0_33 = arith.constant 0 : index
    %c0_34 = arith.constant 0 : index
    %17 = vector.load %arg20[%c0_33, %c0_34] : memref<1x32xf32, #tpu.memory_space<vmem>>, vector<1x32xf32>
    %c0_35 = arith.constant 0 : index
    %c0_36 = arith.constant 0 : index
    %18 = vector.load %arg21[%c0_35, %c0_36] : memref<32x32xbf16, #tpu.memory_space<vmem>>, vector<32x32xbf16>
    %c0_37 = arith.constant 0 : index
    %c0_38 = arith.constant 0 : index
    %19 = vector.load %arg22[%c0_37, %c0_38] : memref<1x32xf32, #tpu.memory_space<vmem>>, vector<1x32xf32>
    %c0_39 = arith.constant 0 : index
    %c0_40 = arith.constant 0 : index
    %20 = vector.load %arg23[%c0_39, %c0_40] : memref<1x32xf32, #tpu.memory_space<vmem>>, vector<1x32xf32>
    %c0_41 = arith.constant 0 : index
    %c0_42 = arith.constant 0 : index
    %21 = vector.load %arg24[%c0_41, %c0_42] : memref<1x32xf32, #tpu.memory_space<vmem>>, vector<1x32xf32>
    %c0_43 = arith.constant 0 : index
    %c0_44 = arith.constant 0 : index
    %22 = vector.load %arg25[%c0_43, %c0_44] : memref<32x128xbf16, #tpu.memory_space<vmem>>, vector<32x128xbf16>
    %c0_45 = arith.constant 0 : index
    %c0_46 = arith.constant 0 : index
    %23 = vector.load %arg26[%c0_45, %c0_46] : memref<1x128xf32, #tpu.memory_space<vmem>>, vector<1x128xf32>
    %c0_47 = arith.constant 0 : index
    %c0_48 = arith.constant 0 : index
    %24 = vector.load %arg27[%c0_47, %c0_48] : memref<128x32xbf16, #tpu.memory_space<vmem>>, vector<128x32xbf16>
    %c0_49 = arith.constant 0 : index
    %c0_50 = arith.constant 0 : index
    %25 = vector.load %arg28[%c0_49, %c0_50] : memref<1x32xf32, #tpu.memory_space<vmem>>, vector<1x32xf32>
    %c0_51 = arith.constant 0 : index
    %c0_52 = arith.constant 0 : index
    %c0_53 = arith.constant 0 : index
    %26 = vector.load %arg1[%c0_51, %c0_52, %c0_53] : memref<1x8x32xf32, #tpu.memory_space<vmem>>, vector<1x8x32xf32>
    %27 = vector.shape_cast %26 : vector<1x8x32xf32> to vector<8x32xf32>
    %c0_54 = arith.constant 0 : index
    %c0_55 = arith.constant 0 : index
    %c0_56 = arith.constant 0 : index
    %28 = vector.load %arg2[%c0_54, %c0_55, %c0_56] : memref<1x8x32xf32, #tpu.memory_space<vmem>>, vector<1x8x32xf32>
    %29 = vector.shape_cast %28 : vector<1x8x32xf32> to vector<8x32xf32>
    %cst = arith.constant dense<0.000000e+00> : vector<8xf32>
    %30 = vector.multi_reduction <add>, %27, %cst [1] : vector<8x32xf32> to vector<8xf32>
    %31 = vector.shape_cast %30 : vector<8xf32> to vector<8x1xf32>
    %cst_57 = arith.constant 3.200000e+01 : f32
    %32 = vector.broadcast %cst_57 : f32 to vector<8x1xf32>
    %33 = arith.divf %31, %32 : vector<8x1xf32>
    %34 = vector.broadcast %33 : vector<8x1xf32> to vector<8x32xf32>
    %35 = arith.subf %27, %34 : vector<8x32xf32>
    %36 = arith.mulf %35, %35 : vector<8x32xf32>
    %cst_58 = arith.constant dense<0.000000e+00> : vector<8xf32>
    %37 = vector.multi_reduction <add>, %36, %cst_58 [1] : vector<8x32xf32> to vector<8xf32>
    %38 = vector.shape_cast %37 : vector<8xf32> to vector<8x1xf32>
    %cst_59 = arith.constant 3.200000e+01 : f32
    %39 = vector.broadcast %cst_59 : f32 to vector<8x1xf32>
    %40 = arith.divf %38, %39 : vector<8x1xf32>
    %41 = vector.broadcast %33 : vector<8x1xf32> to vector<8x32xf32>
    %42 = arith.subf %27, %41 : vector<8x32xf32>
    %cst_60 = arith.constant 9.99999974E-6 : f32
    %43 = vector.broadcast %cst_60 : f32 to vector<8x1xf32>
    %44 = arith.addf %40, %43 : vector<8x1xf32>
    %45 = math.rsqrt %44 : vector<8x1xf32>
    %46 = vector.broadcast %45 : vector<8x1xf32> to vector<8x32xf32>
    %47 = arith.mulf %42, %46 : vector<8x32xf32>
    %48 = vector.broadcast %0 : vector<1x32xf32> to vector<8x32xf32>
    %49 = arith.mulf %47, %48 : vector<8x32xf32>
    %50 = vector.broadcast %1 : vector<1x32xf32> to vector<8x32xf32>
    %51 = arith.addf %49, %50 : vector<8x32xf32>
    %52 = arith.truncf %51 : vector<8x32xf32> to vector<8x32xbf16>
    %cst_61 = arith.constant dense<0.000000e+00> : vector<8x32xf32>
    %53 = tpu.matmul %52, %2, %cst_61 {dimension_numbers = #tpu.dot_dimension_numbers<[1], [0], [0], [1], [0, 0, 1, 1], [], []>} : vector<8x32xbf16>, vector<32x32xbf16>, vector<8x32xf32> -> vector<8x32xf32>
    %54 = vector.broadcast %3 : vector<1x32xf32> to vector<8x32xf32>
    %55 = arith.addf %53, %54 : vector<8x32xf32>
    %56 = arith.truncf %51 : vector<8x32xf32> to vector<8x32xbf16>
    %cst_62 = arith.constant dense<0.000000e+00> : vector<8x32xf32>
    %57 = tpu.matmul %56, %4, %cst_62 {dimension_numbers = #tpu.dot_dimension_numbers<[1], [0], [0], [1], [0, 0, 1, 1], [], []>} : vector<8x32xbf16>, vector<32x32xbf16>, vector<8x32xf32> -> vector<8x32xf32>
    %58 = vector.broadcast %5 : vector<1x32xf32> to vector<8x32xf32>
    %59 = arith.addf %57, %58 : vector<8x32xf32>
    %60 = arith.truncf %51 : vector<8x32xf32> to vector<8x32xbf16>
    %cst_63 = arith.constant dense<0.000000e+00> : vector<8x32xf32>
    %61 = tpu.matmul %60, %6, %cst_63 {dimension_numbers = #tpu.dot_dimension_numbers<[1], [0], [0], [1], [0, 0, 1, 1], [], []>} : vector<8x32xbf16>, vector<32x32xbf16>, vector<8x32xf32> -> vector<8x32xf32>
    %62 = vector.broadcast %7 : vector<1x32xf32> to vector<8x32xf32>
    %63 = arith.addf %61, %62 : vector<8x32xf32>
    %64 = vector.extract_strided_slice %55 {offsets = [0, 0], sizes = [8, 8], strides = [1, 1]} : vector<8x32xf32> to vector<8x8xf32>
    %65 = arith.truncf %64 : vector<8x8xf32> to vector<8x8xbf16>
    %66 = vector.extract_strided_slice %59 {offsets = [0, 0], sizes = [8, 8], strides = [1, 1]} : vector<8x32xf32> to vector<8x8xf32>
    %67 = arith.truncf %66 : vector<8x8xf32> to vector<8x8xbf16>
    %68 = vector.extract_strided_slice %63 {offsets = [0, 0], sizes = [8, 8], strides = [1, 1]} : vector<8x32xf32> to vector<8x8xf32>
    %69 = arith.truncf %68 : vector<8x8xf32> to vector<8x8xbf16>
    %cst_64 = arith.constant dense<0.000000e+00> : vector<8x8xf32>
    %70 = tpu.matmul %65, %67, %cst_64 {dimension_numbers = #tpu.dot_dimension_numbers<[1], [1], [0], [0], [0, 0, 1, 0], [], []>} : vector<8x8xbf16>, vector<8x8xbf16>, vector<8x8xf32> -> vector<8x8xf32>
    %cst_65 = arith.constant 0.353553385 : f32
    %71 = vector.broadcast %cst_65 : f32 to vector<8x8xf32>
    %72 = arith.mulf %70, %71 : vector<8x8xf32>
    %73 = tpu.iota {dimensions = array<i32: 0>} : vector<8x8xi32>
    %74 = tpu.iota {dimensions = array<i32: 1>} : vector<8x8xi32>
    %75 = arith.cmpi sle, %74, %73 : vector<8x8xi32>
    %cst_66 = arith.constant 0xFF800000 : f32
    %76 = vector.broadcast %cst_66 : f32 to vector<8x8xf32>
    %77 = arith.select %75, %72, %76 : vector<8x8xi1>, vector<8x8xf32>
    %cst_67 = arith.constant dense<0xFF800000> : vector<8xf32>
    %78 = vector.multi_reduction <maximumf>, %77, %cst_67 [1] : vector<8x8xf32> to vector<8xf32>
    %79 = vector.shape_cast %78 : vector<8xf32> to vector<8x1xf32>
    %80 = vector.broadcast %79 : vector<8x1xf32> to vector<8x8xf32>
    %81 = arith.subf %77, %80 : vector<8x8xf32>
    %82 = math.exp %81 : vector<8x8xf32>
    %cst_68 = arith.constant dense<0.000000e+00> : vector<8xf32>
    %83 = vector.multi_reduction <add>, %82, %cst_68 [1] : vector<8x8xf32> to vector<8xf32>
    %84 = vector.shape_cast %83 : vector<8xf32> to vector<8x1xf32>
    %85 = vector.broadcast %84 : vector<8x1xf32> to vector<8x8xf32>
    %86 = arith.divf %82, %85 : vector<8x8xf32>
    %87 = arith.truncf %86 : vector<8x8xf32> to vector<8x8xbf16>
    %cst_69 = arith.constant dense<0.000000e+00> : vector<8x8xf32>
    %88 = tpu.matmul %87, %69, %cst_69 {dimension_numbers = #tpu.dot_dimension_numbers<[1], [0], [0], [1], [0, 0, 1, 1], [], []>} : vector<8x8xbf16>, vector<8x8xbf16>, vector<8x8xf32> -> vector<8x8xf32>
    %89 = vector.extract_strided_slice %55 {offsets = [0, 8], sizes = [8, 8], strides = [1, 1]} : vector<8x32xf32> to vector<8x8xf32>
    %90 = arith.truncf %89 : vector<8x8xf32> to vector<8x8xbf16>
    %91 = vector.extract_strided_slice %59 {offsets = [0, 8], sizes = [8, 8], strides = [1, 1]} : vector<8x32xf32> to vector<8x8xf32>
    %92 = arith.truncf %91 : vector<8x8xf32> to vector<8x8xbf16>
    %93 = vector.extract_strided_slice %63 {offsets = [0, 8], sizes = [8, 8], strides = [1, 1]} : vector<8x32xf32> to vector<8x8xf32>
    %94 = arith.truncf %93 : vector<8x8xf32> to vector<8x8xbf16>
    %cst_70 = arith.constant dense<0.000000e+00> : vector<8x8xf32>
    %95 = tpu.matmul %90, %92, %cst_70 {dimension_numbers = #tpu.dot_dimension_numbers<[1], [1], [0], [0], [0, 0, 1, 0], [], []>} : vector<8x8xbf16>, vector<8x8xbf16>, vector<8x8xf32> -> vector<8x8xf32>
    %cst_71 = arith.constant 0.353553385 : f32
    %96 = vector.broadcast %cst_71 : f32 to vector<8x8xf32>
    %97 = arith.mulf %95, %96 : vector<8x8xf32>
    %98 = tpu.iota {dimensions = array<i32: 0>} : vector<8x8xi32>
    %99 = tpu.iota {dimensions = array<i32: 1>} : vector<8x8xi32>
    %100 = arith.cmpi sle, %99, %98 : vector<8x8xi32>
    %cst_72 = arith.constant 0xFF800000 : f32
    %101 = vector.broadcast %cst_72 : f32 to vector<8x8xf32>
    %102 = arith.select %100, %97, %101 : vector<8x8xi1>, vector<8x8xf32>
    %cst_73 = arith.constant dense<0xFF800000> : vector<8xf32>
    %103 = vector.multi_reduction <maximumf>, %102, %cst_73 [1] : vector<8x8xf32> to vector<8xf32>
    %104 = vector.shape_cast %103 : vector<8xf32> to vector<8x1xf32>
    %105 = vector.broadcast %104 : vector<8x1xf32> to vector<8x8xf32>
    %106 = arith.subf %102, %105 : vector<8x8xf32>
    %107 = math.exp %106 : vector<8x8xf32>
    %cst_74 = arith.constant dense<0.000000e+00> : vector<8xf32>
    %108 = vector.multi_reduction <add>, %107, %cst_74 [1] : vector<8x8xf32> to vector<8xf32>
    %109 = vector.shape_cast %108 : vector<8xf32> to vector<8x1xf32>
    %110 = vector.broadcast %109 : vector<8x1xf32> to vector<8x8xf32>
    %111 = arith.divf %107, %110 : vector<8x8xf32>
    %112 = arith.truncf %111 : vector<8x8xf32> to vector<8x8xbf16>
    %cst_75 = arith.constant dense<0.000000e+00> : vector<8x8xf32>
    %113 = tpu.matmul %112, %94, %cst_75 {dimension_numbers = #tpu.dot_dimension_numbers<[1], [0], [0], [1], [0, 0, 1, 1], [], []>} : vector<8x8xbf16>, vector<8x8xbf16>, vector<8x8xf32> -> vector<8x8xf32>
    %114 = vector.extract_strided_slice %55 {offsets = [0, 16], sizes = [8, 8], strides = [1, 1]} : vector<8x32xf32> to vector<8x8xf32>
    %115 = arith.truncf %114 : vector<8x8xf32> to vector<8x8xbf16>
    %116 = vector.extract_strided_slice %59 {offsets = [0, 16], sizes = [8, 8], strides = [1, 1]} : vector<8x32xf32> to vector<8x8xf32>
    %117 = arith.truncf %116 : vector<8x8xf32> to vector<8x8xbf16>
    %118 = vector.extract_strided_slice %63 {offsets = [0, 16], sizes = [8, 8], strides = [1, 1]} : vector<8x32xf32> to vector<8x8xf32>
    %119 = arith.truncf %118 : vector<8x8xf32> to vector<8x8xbf16>
    %cst_76 = arith.constant dense<0.000000e+00> : vector<8x8xf32>
    %120 = tpu.matmul %115, %117, %cst_76 {dimension_numbers = #tpu.dot_dimension_numbers<[1], [1], [0], [0], [0, 0, 1, 0], [], []>} : vector<8x8xbf16>, vector<8x8xbf16>, vector<8x8xf32> -> vector<8x8xf32>
    %cst_77 = arith.constant 0.353553385 : f32
    %121 = vector.broadcast %cst_77 : f32 to vector<8x8xf32>
    %122 = arith.mulf %120, %121 : vector<8x8xf32>
    %123 = tpu.iota {dimensions = array<i32: 0>} : vector<8x8xi32>
    %124 = tpu.iota {dimensions = array<i32: 1>} : vector<8x8xi32>
    %125 = arith.cmpi sle, %124, %123 : vector<8x8xi32>
    %cst_78 = arith.constant 0xFF800000 : f32
    %126 = vector.broadcast %cst_78 : f32 to vector<8x8xf32>
    %127 = arith.select %125, %122, %126 : vector<8x8xi1>, vector<8x8xf32>
    %cst_79 = arith.constant dense<0xFF800000> : vector<8xf32>
    %128 = vector.multi_reduction <maximumf>, %127, %cst_79 [1] : vector<8x8xf32> to vector<8xf32>
    %129 = vector.shape_cast %128 : vector<8xf32> to vector<8x1xf32>
    %130 = vector.broadcast %129 : vector<8x1xf32> to vector<8x8xf32>
    %131 = arith.subf %127, %130 : vector<8x8xf32>
    %132 = math.exp %131 : vector<8x8xf32>
    %cst_80 = arith.constant dense<0.000000e+00> : vector<8xf32>
    %133 = vector.multi_reduction <add>, %132, %cst_80 [1] : vector<8x8xf32> to vector<8xf32>
    %134 = vector.shape_cast %133 : vector<8xf32> to vector<8x1xf32>
    %135 = vector.broadcast %134 : vector<8x1xf32> to vector<8x8xf32>
    %136 = arith.divf %132, %135 : vector<8x8xf32>
    %137 = arith.truncf %136 : vector<8x8xf32> to vector<8x8xbf16>
    %cst_81 = arith.constant dense<0.000000e+00> : vector<8x8xf32>
    %138 = tpu.matmul %137, %119, %cst_81 {dimension_numbers = #tpu.dot_dimension_numbers<[1], [0], [0], [1], [0, 0, 1, 1], [], []>} : vector<8x8xbf16>, vector<8x8xbf16>, vector<8x8xf32> -> vector<8x8xf32>
    %139 = vector.extract_strided_slice %55 {offsets = [0, 24], sizes = [8, 8], strides = [1, 1]} : vector<8x32xf32> to vector<8x8xf32>
    %140 = arith.truncf %139 : vector<8x8xf32> to vector<8x8xbf16>
    %141 = vector.extract_strided_slice %59 {offsets = [0, 24], sizes = [8, 8], strides = [1, 1]} : vector<8x32xf32> to vector<8x8xf32>
    %142 = arith.truncf %141 : vector<8x8xf32> to vector<8x8xbf16>
    %143 = vector.extract_strided_slice %63 {offsets = [0, 24], sizes = [8, 8], strides = [1, 1]} : vector<8x32xf32> to vector<8x8xf32>
    %144 = arith.truncf %143 : vector<8x8xf32> to vector<8x8xbf16>
    %cst_82 = arith.constant dense<0.000000e+00> : vector<8x8xf32>
    %145 = tpu.matmul %140, %142, %cst_82 {dimension_numbers = #tpu.dot_dimension_numbers<[1], [1], [0], [0], [0, 0, 1, 0], [], []>} : vector<8x8xbf16>, vector<8x8xbf16>, vector<8x8xf32> -> vector<8x8xf32>
    %cst_83 = arith.constant 0.353553385 : f32
    %146 = vector.broadcast %cst_83 : f32 to vector<8x8xf32>
    %147 = arith.mulf %145, %146 : vector<8x8xf32>
    %148 = tpu.iota {dimensions = array<i32: 0>} : vector<8x8xi32>
    %149 = tpu.iota {dimensions = array<i32: 1>} : vector<8x8xi32>
    %150 = arith.cmpi sle, %149, %148 : vector<8x8xi32>
    %cst_84 = arith.constant 0xFF800000 : f32
    %151 = vector.broadcast %cst_84 : f32 to vector<8x8xf32>
    %152 = arith.select %150, %147, %151 : vector<8x8xi1>, vector<8x8xf32>
    %cst_85 = arith.constant dense<0xFF800000> : vector<8xf32>
    %153 = vector.multi_reduction <maximumf>, %152, %cst_85 [1] : vector<8x8xf32> to vector<8xf32>
    %154 = vector.shape_cast %153 : vector<8xf32> to vector<8x1xf32>
    %155 = vector.broadcast %154 : vector<8x1xf32> to vector<8x8xf32>
    %156 = arith.subf %152, %155 : vector<8x8xf32>
    %157 = math.exp %156 : vector<8x8xf32>
    %cst_86 = arith.constant dense<0.000000e+00> : vector<8xf32>
    %158 = vector.multi_reduction <add>, %157, %cst_86 [1] : vector<8x8xf32> to vector<8xf32>
    %159 = vector.shape_cast %158 : vector<8xf32> to vector<8x1xf32>
    %160 = vector.broadcast %159 : vector<8x1xf32> to vector<8x8xf32>
    %161 = arith.divf %157, %160 : vector<8x8xf32>
    %162 = arith.truncf %161 : vector<8x8xf32> to vector<8x8xbf16>
    %cst_87 = arith.constant dense<0.000000e+00> : vector<8x8xf32>
    %163 = tpu.matmul %162, %144, %cst_87 {dimension_numbers = #tpu.dot_dimension_numbers<[1], [0], [0], [1], [0, 0, 1, 1], [], []>} : vector<8x8xbf16>, vector<8x8xbf16>, vector<8x8xf32> -> vector<8x8xf32>
    %164 = tpu.concatenate %88, %113, %138, %163 in 1 : vector<8x8xf32>, vector<8x8xf32>, vector<8x8xf32>, vector<8x8xf32> -> vector<8x32xf32>
    %165 = arith.truncf %164 : vector<8x32xf32> to vector<8x32xbf16>
    %cst_88 = arith.constant dense<0.000000e+00> : vector<8x32xf32>
    %166 = tpu.matmul %165, %8, %cst_88 {dimension_numbers = #tpu.dot_dimension_numbers<[1], [0], [0], [1], [0, 0, 1, 1], [], []>} : vector<8x32xbf16>, vector<32x32xbf16>, vector<8x32xf32> -> vector<8x32xf32>
    %167 = vector.broadcast %9 : vector<1x32xf32> to vector<8x32xf32>
    %168 = arith.addf %166, %167 : vector<8x32xf32>
    %169 = arith.addf %51, %168 : vector<8x32xf32>
    %cst_89 = arith.constant dense<0.000000e+00> : vector<8xf32>
    %170 = vector.multi_reduction <add>, %169, %cst_89 [1] : vector<8x32xf32> to vector<8xf32>
    %171 = vector.shape_cast %170 : vector<8xf32> to vector<8x1xf32>
    %cst_90 = arith.constant 3.200000e+01 : f32
    %172 = vector.broadcast %cst_90 : f32 to vector<8x1xf32>
    %173 = arith.divf %171, %172 : vector<8x1xf32>
    %174 = vector.broadcast %173 : vector<8x1xf32> to vector<8x32xf32>
    %175 = arith.subf %169, %174 : vector<8x32xf32>
    %176 = arith.mulf %175, %175 : vector<8x32xf32>
    %cst_91 = arith.constant dense<0.000000e+00> : vector<8xf32>
    %177 = vector.multi_reduction <add>, %176, %cst_91 [1] : vector<8x32xf32> to vector<8xf32>
    %178 = vector.shape_cast %177 : vector<8xf32> to vector<8x1xf32>
    %cst_92 = arith.constant 3.200000e+01 : f32
    %179 = vector.broadcast %cst_92 : f32 to vector<8x1xf32>
    %180 = arith.divf %178, %179 : vector<8x1xf32>
    %181 = vector.broadcast %173 : vector<8x1xf32> to vector<8x32xf32>
    %182 = arith.subf %169, %181 : vector<8x32xf32>
    %cst_93 = arith.constant 9.99999974E-6 : f32
    %183 = vector.broadcast %cst_93 : f32 to vector<8x1xf32>
    %184 = arith.addf %180, %183 : vector<8x1xf32>
    %185 = math.rsqrt %184 : vector<8x1xf32>
    %186 = vector.broadcast %185 : vector<8x1xf32> to vector<8x32xf32>
    %187 = arith.mulf %182, %186 : vector<8x32xf32>
    %188 = vector.broadcast %10 : vector<1x32xf32> to vector<8x32xf32>
    %189 = arith.mulf %187, %188 : vector<8x32xf32>
    %190 = vector.broadcast %11 : vector<1x32xf32> to vector<8x32xf32>
    %191 = arith.addf %189, %190 : vector<8x32xf32>
    %192 = arith.truncf %191 : vector<8x32xf32> to vector<8x32xbf16>
    %cst_94 = arith.constant dense<0.000000e+00> : vector<8x32xf32>
    %193 = tpu.matmul %192, %12, %cst_94 {dimension_numbers = #tpu.dot_dimension_numbers<[1], [0], [0], [1], [0, 0, 1, 1], [], []>} : vector<8x32xbf16>, vector<32x32xbf16>, vector<8x32xf32> -> vector<8x32xf32>
    %194 = vector.broadcast %13 : vector<1x32xf32> to vector<8x32xf32>
    %195 = arith.addf %193, %194 : vector<8x32xf32>
    %196 = arith.truncf %29 : vector<8x32xf32> to vector<8x32xbf16>
    %cst_95 = arith.constant dense<0.000000e+00> : vector<8x32xf32>
    %197 = tpu.matmul %196, %14, %cst_95 {dimension_numbers = #tpu.dot_dimension_numbers<[1], [0], [0], [1], [0, 0, 1, 1], [], []>} : vector<8x32xbf16>, vector<32x32xbf16>, vector<8x32xf32> -> vector<8x32xf32>
    %198 = vector.broadcast %15 : vector<1x32xf32> to vector<8x32xf32>
    %199 = arith.addf %197, %198 : vector<8x32xf32>
    %200 = arith.truncf %29 : vector<8x32xf32> to vector<8x32xbf16>
    %cst_96 = arith.constant dense<0.000000e+00> : vector<8x32xf32>
    %201 = tpu.matmul %200, %16, %cst_96 {dimension_numbers = #tpu.dot_dimension_numbers<[1], [0], [0], [1], [0, 0, 1, 1], [], []>} : vector<8x32xbf16>, vector<32x32xbf16>, vector<8x32xf32> -> vector<8x32xf32>
    %202 = vector.broadcast %17 : vector<1x32xf32> to vector<8x32xf32>
    %203 = arith.addf %201, %202 : vector<8x32xf32>
    %204 = vector.extract_strided_slice %195 {offsets = [0, 0], sizes = [8, 8], strides = [1, 1]} : vector<8x32xf32> to vector<8x8xf32>
    %205 = arith.truncf %204 : vector<8x8xf32> to vector<8x8xbf16>
    %206 = vector.extract_strided_slice %199 {offsets = [0, 0], sizes = [8, 8], strides = [1, 1]} : vector<8x32xf32> to vector<8x8xf32>
    %207 = arith.truncf %206 : vector<8x8xf32> to vector<8x8xbf16>
    %208 = vector.extract_strided_slice %203 {offsets = [0, 0], sizes = [8, 8], strides = [1, 1]} : vector<8x32xf32> to vector<8x8xf32>
    %209 = arith.truncf %208 : vector<8x8xf32> to vector<8x8xbf16>
    %cst_97 = arith.constant dense<0.000000e+00> : vector<8x8xf32>
    %210 = tpu.matmul %205, %207, %cst_97 {dimension_numbers = #tpu.dot_dimension_numbers<[1], [1], [0], [0], [0, 0, 1, 0], [], []>} : vector<8x8xbf16>, vector<8x8xbf16>, vector<8x8xf32> -> vector<8x8xf32>
    %cst_98 = arith.constant 0.353553385 : f32
    %211 = vector.broadcast %cst_98 : f32 to vector<8x8xf32>
    %212 = arith.mulf %210, %211 : vector<8x8xf32>
    %cst_99 = arith.constant dense<0xFF800000> : vector<8xf32>
    %213 = vector.multi_reduction <maximumf>, %212, %cst_99 [1] : vector<8x8xf32> to vector<8xf32>
    %214 = vector.shape_cast %213 : vector<8xf32> to vector<8x1xf32>
    %215 = vector.broadcast %214 : vector<8x1xf32> to vector<8x8xf32>
    %216 = arith.subf %212, %215 : vector<8x8xf32>
    %217 = math.exp %216 : vector<8x8xf32>
    %cst_100 = arith.constant dense<0.000000e+00> : vector<8xf32>
    %218 = vector.multi_reduction <add>, %217, %cst_100 [1] : vector<8x8xf32> to vector<8xf32>
    %219 = vector.shape_cast %218 : vector<8xf32> to vector<8x1xf32>
    %220 = vector.broadcast %219 : vector<8x1xf32> to vector<8x8xf32>
    %221 = arith.divf %217, %220 : vector<8x8xf32>
    %222 = arith.truncf %221 : vector<8x8xf32> to vector<8x8xbf16>
    %cst_101 = arith.constant dense<0.000000e+00> : vector<8x8xf32>
    %223 = tpu.matmul %222, %209, %cst_101 {dimension_numbers = #tpu.dot_dimension_numbers<[1], [0], [0], [1], [0, 0, 1, 1], [], []>} : vector<8x8xbf16>, vector<8x8xbf16>, vector<8x8xf32> -> vector<8x8xf32>
    %224 = vector.extract_strided_slice %195 {offsets = [0, 8], sizes = [8, 8], strides = [1, 1]} : vector<8x32xf32> to vector<8x8xf32>
    %225 = arith.truncf %224 : vector<8x8xf32> to vector<8x8xbf16>
    %226 = vector.extract_strided_slice %199 {offsets = [0, 8], sizes = [8, 8], strides = [1, 1]} : vector<8x32xf32> to vector<8x8xf32>
    %227 = arith.truncf %226 : vector<8x8xf32> to vector<8x8xbf16>
    %228 = vector.extract_strided_slice %203 {offsets = [0, 8], sizes = [8, 8], strides = [1, 1]} : vector<8x32xf32> to vector<8x8xf32>
    %229 = arith.truncf %228 : vector<8x8xf32> to vector<8x8xbf16>
    %cst_102 = arith.constant dense<0.000000e+00> : vector<8x8xf32>
    %230 = tpu.matmul %225, %227, %cst_102 {dimension_numbers = #tpu.dot_dimension_numbers<[1], [1], [0], [0], [0, 0, 1, 0], [], []>} : vector<8x8xbf16>, vector<8x8xbf16>, vector<8x8xf32> -> vector<8x8xf32>
    %cst_103 = arith.constant 0.353553385 : f32
    %231 = vector.broadcast %cst_103 : f32 to vector<8x8xf32>
    %232 = arith.mulf %230, %231 : vector<8x8xf32>
    %cst_104 = arith.constant dense<0xFF800000> : vector<8xf32>
    %233 = vector.multi_reduction <maximumf>, %232, %cst_104 [1] : vector<8x8xf32> to vector<8xf32>
    %234 = vector.shape_cast %233 : vector<8xf32> to vector<8x1xf32>
    %235 = vector.broadcast %234 : vector<8x1xf32> to vector<8x8xf32>
    %236 = arith.subf %232, %235 : vector<8x8xf32>
    %237 = math.exp %236 : vector<8x8xf32>
    %cst_105 = arith.constant dense<0.000000e+00> : vector<8xf32>
    %238 = vector.multi_reduction <add>, %237, %cst_105 [1] : vector<8x8xf32> to vector<8xf32>
    %239 = vector.shape_cast %238 : vector<8xf32> to vector<8x1xf32>
    %240 = vector.broadcast %239 : vector<8x1xf32> to vector<8x8xf32>
    %241 = arith.divf %237, %240 : vector<8x8xf32>
    %242 = arith.truncf %241 : vector<8x8xf32> to vector<8x8xbf16>
    %cst_106 = arith.constant dense<0.000000e+00> : vector<8x8xf32>
    %243 = tpu.matmul %242, %229, %cst_106 {dimension_numbers = #tpu.dot_dimension_numbers<[1], [0], [0], [1], [0, 0, 1, 1], [], []>} : vector<8x8xbf16>, vector<8x8xbf16>, vector<8x8xf32> -> vector<8x8xf32>
    %244 = vector.extract_strided_slice %195 {offsets = [0, 16], sizes = [8, 8], strides = [1, 1]} : vector<8x32xf32> to vector<8x8xf32>
    %245 = arith.truncf %244 : vector<8x8xf32> to vector<8x8xbf16>
    %246 = vector.extract_strided_slice %199 {offsets = [0, 16], sizes = [8, 8], strides = [1, 1]} : vector<8x32xf32> to vector<8x8xf32>
    %247 = arith.truncf %246 : vector<8x8xf32> to vector<8x8xbf16>
    %248 = vector.extract_strided_slice %203 {offsets = [0, 16], sizes = [8, 8], strides = [1, 1]} : vector<8x32xf32> to vector<8x8xf32>
    %249 = arith.truncf %248 : vector<8x8xf32> to vector<8x8xbf16>
    %cst_107 = arith.constant dense<0.000000e+00> : vector<8x8xf32>
    %250 = tpu.matmul %245, %247, %cst_107 {dimension_numbers = #tpu.dot_dimension_numbers<[1], [1], [0], [0], [0, 0, 1, 0], [], []>} : vector<8x8xbf16>, vector<8x8xbf16>, vector<8x8xf32> -> vector<8x8xf32>
    %cst_108 = arith.constant 0.353553385 : f32
    %251 = vector.broadcast %cst_108 : f32 to vector<8x8xf32>
    %252 = arith.mulf %250, %251 : vector<8x8xf32>
    %cst_109 = arith.constant dense<0xFF800000> : vector<8xf32>
    %253 = vector.multi_reduction <maximumf>, %252, %cst_109 [1] : vector<8x8xf32> to vector<8xf32>
    %254 = vector.shape_cast %253 : vector<8xf32> to vector<8x1xf32>
    %255 = vector.broadcast %254 : vector<8x1xf32> to vector<8x8xf32>
    %256 = arith.subf %252, %255 : vector<8x8xf32>
    %257 = math.exp %256 : vector<8x8xf32>
    %cst_110 = arith.constant dense<0.000000e+00> : vector<8xf32>
    %258 = vector.multi_reduction <add>, %257, %cst_110 [1] : vector<8x8xf32> to vector<8xf32>
    %259 = vector.shape_cast %258 : vector<8xf32> to vector<8x1xf32>
    %260 = vector.broadcast %259 : vector<8x1xf32> to vector<8x8xf32>
    %261 = arith.divf %257, %260 : vector<8x8xf32>
    %262 = arith.truncf %261 : vector<8x8xf32> to vector<8x8xbf16>
    %cst_111 = arith.constant dense<0.000000e+00> : vector<8x8xf32>
    %263 = tpu.matmul %262, %249, %cst_111 {dimension_numbers = #tpu.dot_dimension_numbers<[1], [0], [0], [1], [0, 0, 1, 1], [], []>} : vector<8x8xbf16>, vector<8x8xbf16>, vector<8x8xf32> -> vector<8x8xf32>
    %264 = vector.extract_strided_slice %195 {offsets = [0, 24], sizes = [8, 8], strides = [1, 1]} : vector<8x32xf32> to vector<8x8xf32>
    %265 = arith.truncf %264 : vector<8x8xf32> to vector<8x8xbf16>
    %266 = vector.extract_strided_slice %199 {offsets = [0, 24], sizes = [8, 8], strides = [1, 1]} : vector<8x32xf32> to vector<8x8xf32>
    %267 = arith.truncf %266 : vector<8x8xf32> to vector<8x8xbf16>
    %268 = vector.extract_strided_slice %203 {offsets = [0, 24], sizes = [8, 8], strides = [1, 1]} : vector<8x32xf32> to vector<8x8xf32>
    %269 = arith.truncf %268 : vector<8x8xf32> to vector<8x8xbf16>
    %cst_112 = arith.constant dense<0.000000e+00> : vector<8x8xf32>
    %270 = tpu.matmul %265, %267, %cst_112 {dimension_numbers = #tpu.dot_dimension_numbers<[1], [1], [0], [0], [0, 0, 1, 0], [], []>} : vector<8x8xbf16>, vector<8x8xbf16>, vector<8x8xf32> -> vector<8x8xf32>
    %cst_113 = arith.constant 0.353553385 : f32
    %271 = vector.broadcast %cst_113 : f32 to vector<8x8xf32>
    %272 = arith.mulf %270, %271 : vector<8x8xf32>
    %cst_114 = arith.constant dense<0xFF800000> : vector<8xf32>
    %273 = vector.multi_reduction <maximumf>, %272, %cst_114 [1] : vector<8x8xf32> to vector<8xf32>
    %274 = vector.shape_cast %273 : vector<8xf32> to vector<8x1xf32>
    %275 = vector.broadcast %274 : vector<8x1xf32> to vector<8x8xf32>
    %276 = arith.subf %272, %275 : vector<8x8xf32>
    %277 = math.exp %276 : vector<8x8xf32>
    %cst_115 = arith.constant dense<0.000000e+00> : vector<8xf32>
    %278 = vector.multi_reduction <add>, %277, %cst_115 [1] : vector<8x8xf32> to vector<8xf32>
    %279 = vector.shape_cast %278 : vector<8xf32> to vector<8x1xf32>
    %280 = vector.broadcast %279 : vector<8x1xf32> to vector<8x8xf32>
    %281 = arith.divf %277, %280 : vector<8x8xf32>
    %282 = arith.truncf %281 : vector<8x8xf32> to vector<8x8xbf16>
    %cst_116 = arith.constant dense<0.000000e+00> : vector<8x8xf32>
    %283 = tpu.matmul %282, %269, %cst_116 {dimension_numbers = #tpu.dot_dimension_numbers<[1], [0], [0], [1], [0, 0, 1, 1], [], []>} : vector<8x8xbf16>, vector<8x8xbf16>, vector<8x8xf32> -> vector<8x8xf32>
    %284 = tpu.concatenate %223, %243, %263, %283 in 1 : vector<8x8xf32>, vector<8x8xf32>, vector<8x8xf32>, vector<8x8xf32> -> vector<8x32xf32>
    %285 = arith.truncf %284 : vector<8x32xf32> to vector<8x32xbf16>
    %cst_117 = arith.constant dense<0.000000e+00> : vector<8x32xf32>
    %286 = tpu.matmul %285, %18, %cst_117 {dimension_numbers = #tpu.dot_dimension_numbers<[1], [0], [0], [1], [0, 0, 1, 1], [], []>} : vector<8x32xbf16>, vector<32x32xbf16>, vector<8x32xf32> -> vector<8x32xf32>
    %287 = vector.broadcast %19 : vector<1x32xf32> to vector<8x32xf32>
    %288 = arith.addf %286, %287 : vector<8x32xf32>
    %289 = arith.addf %191, %288 : vector<8x32xf32>
    %cst_118 = arith.constant dense<0.000000e+00> : vector<8xf32>
    %290 = vector.multi_reduction <add>, %289, %cst_118 [1] : vector<8x32xf32> to vector<8xf32>
    %291 = vector.shape_cast %290 : vector<8xf32> to vector<8x1xf32>
    %cst_119 = arith.constant 3.200000e+01 : f32
    %292 = vector.broadcast %cst_119 : f32 to vector<8x1xf32>
    %293 = arith.divf %291, %292 : vector<8x1xf32>
    %294 = vector.broadcast %293 : vector<8x1xf32> to vector<8x32xf32>
    %295 = arith.subf %289, %294 : vector<8x32xf32>
    %296 = arith.mulf %295, %295 : vector<8x32xf32>
    %cst_120 = arith.constant dense<0.000000e+00> : vector<8xf32>
    %297 = vector.multi_reduction <add>, %296, %cst_120 [1] : vector<8x32xf32> to vector<8xf32>
    %298 = vector.shape_cast %297 : vector<8xf32> to vector<8x1xf32>
    %cst_121 = arith.constant 3.200000e+01 : f32
    %299 = vector.broadcast %cst_121 : f32 to vector<8x1xf32>
    %300 = arith.divf %298, %299 : vector<8x1xf32>
    %301 = vector.broadcast %293 : vector<8x1xf32> to vector<8x32xf32>
    %302 = arith.subf %289, %301 : vector<8x32xf32>
    %cst_122 = arith.constant 9.99999974E-6 : f32
    %303 = vector.broadcast %cst_122 : f32 to vector<8x1xf32>
    %304 = arith.addf %300, %303 : vector<8x1xf32>
    %305 = math.rsqrt %304 : vector<8x1xf32>
    %306 = vector.broadcast %305 : vector<8x1xf32> to vector<8x32xf32>
    %307 = arith.mulf %302, %306 : vector<8x32xf32>
    %308 = vector.broadcast %20 : vector<1x32xf32> to vector<8x32xf32>
    %309 = arith.mulf %307, %308 : vector<8x32xf32>
    %310 = vector.broadcast %21 : vector<1x32xf32> to vector<8x32xf32>
    %311 = arith.addf %309, %310 : vector<8x32xf32>
    %312 = arith.truncf %311 : vector<8x32xf32> to vector<8x32xbf16>
    %cst_123 = arith.constant dense<0.000000e+00> : vector<8x128xf32>
    %313 = tpu.matmul %312, %22, %cst_123 {dimension_numbers = #tpu.dot_dimension_numbers<[1], [0], [0], [1], [0, 0, 1, 1], [], []>} : vector<8x32xbf16>, vector<32x128xbf16>, vector<8x128xf32> -> vector<8x128xf32>
    %314 = vector.broadcast %23 : vector<1x128xf32> to vector<8x128xf32>
    %315 = arith.addf %313, %314 : vector<8x128xf32>
    %cst_124 = arith.constant 0.000000e+00 : f32
    %316 = vector.broadcast %cst_124 : f32 to vector<8x128xf32>
    %317 = arith.maximumf %315, %316 : vector<8x128xf32>
    %318 = arith.truncf %317 : vector<8x128xf32> to vector<8x128xbf16>
    %cst_125 = arith.constant dense<0.000000e+00> : vector<8x32xf32>
    %319 = tpu.matmul %318, %24, %cst_125 {dimension_numbers = #tpu.dot_dimension_numbers<[1], [0], [0], [1], [0, 0, 1, 1], [], []>} : vector<8x128xbf16>, vector<128x32xbf16>, vector<8x32xf32> -> vector<8x32xf32>
    %320 = vector.broadcast %25 : vector<1x32xf32> to vector<8x32xf32>
    %321 = arith.addf %319, %320 : vector<8x32xf32>
    %322 = arith.addf %311, %321 : vector<8x32xf32>
    %c0_126 = arith.constant 0 : index
    %c0_127 = arith.constant 0 : index
    %c0_128 = arith.constant 0 : index
    %323 = vector.load %arg29[%c0_126, %c0_127, %c0_128] : memref<1x8x32xf32, #tpu.memory_space<vmem>>, vector<1x8x32xf32>
    %324 = vector.shape_cast %323 : vector<1x8x32xf32> to vector<8x32xf32>
    %325 = vector.shape_cast %322 : vector<8x32xf32> to vector<1x8x32xf32>
    tpu.vector_store %arg29[%c0_126, %c0_127, %c0_128], %325 {strides = array<i32>} : memref<1x8x32xf32, #tpu.memory_space<vmem>>, vector<1x8x32xf32>,
    return
  }
  func.func @transform_0(%arg0: i32) -> (i32, i32, i32) {
    %c0_i32 = arith.constant 0 : i32
    %c0_i32_0 = arith.constant 0 : i32
    %c0_i32_1 = arith.constant 0 : i32
    return %arg0, %c0_i32, %c0_i32_0 : i32, i32, i32
  }
  func.func @transform_1(%arg0: i32) -> (i32, i32, i32) {
    %c0_i32 = arith.constant 0 : i32
    %c0_i32_0 = arith.constant 0 : i32
    %c0_i32_1 = arith.constant 0 : i32
    return %arg0, %c0_i32, %c0_i32_0 : i32, i32, i32
  }
  func.func @transform_2(%arg0: i32) -> (i32, i32) {
    %c0_i32 = arith.constant 0 : i32
    %c0_i32_0 = arith.constant 0 : i32
    %c0_i32_1 = arith.constant 0 : i32
    return %c0_i32, %c0_i32_0 : i32, i32
  }
  func.func @transform_3(%arg0: i32) -> (i32, i32) {
    %c0_i32 = arith.constant 0 : i32
    %c0_i32_0 = arith.constant 0 : i32
    %c0_i32_1 = arith.constant 0 : i32
    return %c0_i32, %c0_i32_0 : i32, i32
  }
  func.func @transform_4(%arg0: i32) -> (i32, i32) {
    %c0_i32 = arith.constant 0 : i32
    %c0_i32_0 = arith.constant 0 : i32
    %c0_i32_1 = arith.constant 0 : i32
    return %c0_i32, %c0_i32_0 : i32, i32
  }
  func.func @transform_5(%arg0: i32) -> (i32, i32) {
    %c0_i32 = arith.constant 0 : i32
    %c0_i32_0 = arith.constant 0 : i32
    %c0_i32_1 = arith.constant 0 : i32
    return %c0_i32, %c0_i32_0 : i32, i32
  }
  func.func @transform_6(%arg0: i32) -> (i32, i32) {
    %c0_i32 = arith.constant 0 : i32
    %c0_i32_0 = arith.constant 0 : i32
    %c0_i32_1 = arith.constant 0 : i32
    return %c0_i32, %c0_i32_0 : i32, i32
  }
  func.func @transform_7(%arg0: i32) -> (i32, i32) {
    %c0_i32 = arith.constant 0 : i32
    %c0_i32_0 = arith.constant 0 : i32
    %c0_i32_1 = arith.constant 0 : i32
    return %c0_i32, %c0_i32_0 : i32, i32
  }
  func.func @transform_8(%arg0: i32) -> (i32, i32) {
    %c0_i32 = arith.constant 0 : i32
    %c0_i32_0 = arith.constant 0 : i32
    %c0_i32_1 = arith.constant 0 : i32
    return %c0_i32, %c0_i32_0 : i32, i32
  }
  func.func @transform_9(%arg0: i32) -> (i32, i32) {
    %c0_i32 = arith.constant 0 : i32
    %c0_i32_0 = arith.constant 0 : i32
    %c0_i32_1 = arith.constant 0 : i32
    return %c0_i32, %c0_i32_0 : i32, i32
  }
  func.func @transform_10(%arg0: i32) -> (i32, i32) {
    %c0_i32 = arith.constant 0 : i32
    %c0_i32_0 = arith.constant 0 : i32
    %c0_i32_1 = arith.constant 0 : i32
    return %c0_i32, %c0_i32_0 : i32, i32
  }
  func.func @transform_11(%arg0: i32) -> (i32, i32) {
    %c0_i32 = arith.constant 0 : i32
    %c0_i32_0 = arith.constant 0 : i32
    %c0_i32_1 = arith.constant 0 : i32
    return %c0_i32, %c0_i32_0 : i32, i32
  }
  func.func @transform_12(%arg0: i32) -> (i32, i32) {
    %c0_i32 = arith.constant 0 : i32
    %c0_i32_0 = arith.constant 0 : i32
    %c0_i32_1 = arith.constant 0 : i32
    return %c0_i32, %c0_i32_0 : i32, i32
  }
  func.func @transform_13(%arg0: i32) -> (i32, i32) {
    %c0_i32 = arith.constant 0 : i32
    %c0_i32_0 = arith.constant 0 : i32
    %c0_i32_1 = arith.constant 0 : i32
    return %c0_i32, %c0_i32_0 : i32, i32
  }
  func.func @transform_14(%arg0: i32) -> (i32, i32) {
    %c0_i32 = arith.constant 0 : i32
    %c0_i32_0 = arith.constant 0 : i32
    %c0_i32_1 = arith.constant 0 : i32
    return %c0_i32, %c0_i32_0 : i32, i32
  }
  func.func @transform_15(%arg0: i32) -> (i32, i32) {
    %c0_i32 = arith.constant 0 : i32
    %c0_i32_0 = arith.constant 0 : i32
    %c0_i32_1 = arith.constant 0 : i32
    return %c0_i32, %c0_i32_0 : i32, i32
  }
  func.func @transform_16(%arg0: i32) -> (i32, i32) {
    %c0_i32 = arith.constant 0 : i32
    %c0_i32_0 = arith.constant 0 : i32
    %c0_i32_1 = arith.constant 0 : i32
    return %c0_i32, %c0_i32_0 : i32, i32
  }
  func.func @transform_17(%arg0: i32) -> (i32, i32) {
    %c0_i32 = arith.constant 0 : i32
    %c0_i32_0 = arith.constant 0 : i32
    %c0_i32_1 = arith.constant 0 : i32
    return %c0_i32, %c0_i32_0 : i32, i32
  }
  func.func @transform_18(%arg0: i32) -> (i32, i32) {
    %c0_i32 = arith.constant 0 : i32
    %c0_i32_0 = arith.constant 0 : i32
    %c0_i32_1 = arith.constant 0 : i32
    return %c0_i32, %c0_i32_0 : i32, i32
  }
  func.func @transform_19(%arg0: i32) -> (i32, i32) {
    %c0_i32 = arith.constant 0 : i32
    %c0_i32_0 = arith.constant 0 : i32
    %c0_i32_1 = arith.constant 0 : i32
    return %c0_i32, %c0_i32_0 : i32, i32
  }
  func.func @transform_20(%arg0: i32) -> (i32, i32) {
    %c0_i32 = arith.constant 0 : i32
    %c0_i32_0 = arith.constant 0 : i32
    %c0_i32_1 = arith.constant 0 : i32
    return %c0_i32, %c0_i32_0 : i32, i32
  }
  func.func @transform_21(%arg0: i32) -> (i32, i32) {
    %c0_i32 = arith.constant 0 : i32
    %c0_i32_0 = arith.constant 0 : i32
    %c0_i32_1 = arith.constant 0 : i32
    return %c0_i32, %c0_i32_0 : i32, i32
  }
  func.func @transform_22(%arg0: i32) -> (i32, i32) {
    %c0_i32 = arith.constant 0 : i32
    %c0_i32_0 = arith.constant 0 : i32
    %c0_i32_1 = arith.constant 0 : i32
    return %c0_i32, %c0_i32_0 : i32, i32
  }
  func.func @transform_23(%arg0: i32) -> (i32, i32) {
    %c0_i32 = arith.constant 0 : i32
    %c0_i32_0 = arith.constant 0 : i32
    %c0_i32_1 = arith.constant 0 : i32
    return %c0_i32, %c0_i32_0 : i32, i32
  }
  func.func @transform_24(%arg0: i32) -> (i32, i32) {
    %c0_i32 = arith.constant 0 : i32
    %c0_i32_0 = arith.constant 0 : i32
    %c0_i32_1 = arith.constant 0 : i32
    return %c0_i32, %c0_i32_0 : i32, i32
  }
  func.func @transform_25(%arg0: i32) -> (i32, i32) {
    %c0_i32 = arith.constant 0 : i32
    %c0_i32_0 = arith.constant 0 : i32
    %c0_i32_1 = arith.constant 0 : i32
    return %c0_i32, %c0_i32_0 : i32, i32
  }
  func.func @transform_26(%arg0: i32) -> (i32, i32) {
    %c0_i32 = arith.constant 0 : i32
    %c0_i32_0 = arith.constant 0 : i32
    %c0_i32_1 = arith.constant 0 : i32
    return %c0_i32, %c0_i32_0 : i32, i32
  }
  func.func @transform_27(%arg0: i32) -> (i32, i32) {
    %c0_i32 = arith.constant 0 : i32
    %c0_i32_0 = arith.constant 0 : i32
    %c0_i32_1 = arith.constant 0 : i32
    return %c0_i32, %c0_i32_0 : i32, i32
  }
  func.func @transform_28(%arg0: i32) -> (i32, i32, i32) {
    %c0_i32 = arith.constant 0 : i32
    %c0_i32_0 = arith.constant 0 : i32
    %c0_i32_1 = arith.constant 0 : i32
    return %arg0, %c0_i32, %c0_i32_0 : i32, i32, i32
  }
}

module attributes {stable_mosaic.version = 11 : i64} {
  func.func @head_kernel(%arg0: i32, %arg1: memref<1x8x32xf32, #tpu.memory_space<vmem>>, %arg2: memref<1x32xf32, #tpu.memory_space<vmem>>, %arg3: memref<1x32xf32, #tpu.memory_space<vmem>>, %arg4: memref<32x64xbf16, #tpu.memory_space<vmem>>, %arg5: memref<1x1x64xf32, #tpu.memory_space<vmem>>) attributes {dimension_semantics = [#tpu.dimension_semantics<parallel>], iteration_bounds = array<i64: 2>, scalar_prefetch = 0 : i64, scratch_operands = 0 : i64, tpu.core_type = #tpu.core_type<tc>, window_params = [{transform_indices = @transform_0, window_bounds = array<i64: 1, 8, 32>}, {pipeline_mode = #tpu.pipeline_mode<synchronous>, transform_indices = @transform_1, window_bounds = array<i64: 1, 32>}, {pipeline_mode = #tpu.pipeline_mode<synchronous>, transform_indices = @transform_2, window_bounds = array<i64: 1, 32>}, {pipeline_mode = #tpu.pipeline_mode<synchronous>, transform_indices = @transform_3, window_bounds = array<i64: 32, 64>}, {transform_indices = @transform_4, window_bounds = array<i64: 1, 1, 64>}]} {
    %c0 = arith.constant 0 : index
    %c7 = arith.constant 7 : index
    %c0_0 = arith.constant 0 : index
    %0 = vector.load %arg1[%c0, %c7, %c0_0] : memref<1x8x32xf32, #tpu.memory_space<vmem>>, vector<1x1x32xf32>
    %1 = vector.shape_cast %0 : vector<1x1x32xf32> to vector<1x32xf32>
    %c0_1 = arith.constant 0 : index
    %c0_2 = arith.constant 0 : index
    %2 = vector.load %arg2[%c0_1, %c0_2] : memref<1x32xf32, #tpu.memory_space<vmem>>, vector<1x32xf32>
    %c0_3 = arith.constant 0 : index
    %c0_4 = arith.constant 0 : index
    %3 = vector.load %arg3[%c0_3, %c0_4] : memref<1x32xf32, #tpu.memory_space<vmem>>, vector<1x32xf32>
    %cst = arith.constant dense<0.000000e+00> : vector<1xf32>
    %4 = vector.multi_reduction <add>, %1, %cst [1] : vector<1x32xf32> to vector<1xf32>
    %5 = vector.shape_cast %4 : vector<1xf32> to vector<1x1xf32>
    %cst_5 = arith.constant 3.200000e+01 : f32
    %6 = vector.broadcast %cst_5 : f32 to vector<1x1xf32>
    %7 = arith.divf %5, %6 : vector<1x1xf32>
    %8 = vector.broadcast %7 : vector<1x1xf32> to vector<1x32xf32>
    %9 = arith.subf %1, %8 : vector<1x32xf32>
    %10 = arith.mulf %9, %9 : vector<1x32xf32>
    %cst_6 = arith.constant dense<0.000000e+00> : vector<1xf32>
    %11 = vector.multi_reduction <add>, %10, %cst_6 [1] : vector<1x32xf32> to vector<1xf32>
    %12 = vector.shape_cast %11 : vector<1xf32> to vector<1x1xf32>
    %cst_7 = arith.constant 3.200000e+01 : f32
    %13 = vector.broadcast %cst_7 : f32 to vector<1x1xf32>
    %14 = arith.divf %12, %13 : vector<1x1xf32>
    %15 = vector.broadcast %7 : vector<1x1xf32> to vector<1x32xf32>
    %16 = arith.subf %1, %15 : vector<1x32xf32>
    %cst_8 = arith.constant 9.99999974E-6 : f32
    %17 = vector.broadcast %cst_8 : f32 to vector<1x1xf32>
    %18 = arith.addf %14, %17 : vector<1x1xf32>
    %19 = math.rsqrt %18 : vector<1x1xf32>
    %20 = vector.broadcast %19 : vector<1x1xf32> to vector<1x32xf32>
    %21 = arith.mulf %16, %20 : vector<1x32xf32>
    %22 = arith.mulf %21, %2 : vector<1x32xf32>
    %23 = arith.addf %22, %3 : vector<1x32xf32>
    %c0_9 = arith.constant 0 : index
    %c0_10 = arith.constant 0 : index
    %24 = vector.load %arg4[%c0_9, %c0_10] : memref<32x64xbf16, #tpu.memory_space<vmem>>, vector<32x64xbf16>
    %25 = arith.truncf %23 : vector<1x32xf32> to vector<1x32xbf16>
    %cst_11 = arith.constant dense<0.000000e+00> : vector<1x64xf32>
    %26 = tpu.matmul %25, %24, %cst_11 {dimension_numbers = #tpu.dot_dimension_numbers<[1], [0], [0], [1], [0, 0, 1, 1], [], []>} : vector<1x32xbf16>, vector<32x64xbf16>, vector<1x64xf32> -> vector<1x64xf32>
    %c0_12 = arith.constant 0 : index
    %c0_13 = arith.constant 0 : index
    %c0_14 = arith.constant 0 : index
    %27 = vector.load %arg5[%c0_12, %c0_13, %c0_14] : memref<1x1x64xf32, #tpu.memory_space<vmem>>, vector<1x1x64xf32>
    %28 = vector.shape_cast %27 : vector<1x1x64xf32> to vector<1x64xf32>
    %29 = vector.shape_cast %26 : vector<1x64xf32> to vector<1x1x64xf32>
    tpu.vector_store %arg5[%c0_12, %c0_13, %c0_14], %29 {strides = array<i32>} : memref<1x1x64xf32, #tpu.memory_space<vmem>>, vector<1x1x64xf32>,
    return
  }
  func.func @transform_0(%arg0: i32) -> (i32, i32, i32) {
    %c0_i32 = arith.constant 0 : i32
    %c0_i32_0 = arith.constant 0 : i32
    %c0_i32_1 = arith.constant 0 : i32
    return %arg0, %c0_i32, %c0_i32_0 : i32, i32, i32
  }
  func.func @transform_1(%arg0: i32) -> (i32, i32) {
    %c0_i32 = arith.constant 0 : i32
    %c0_i32_0 = arith.constant 0 : i32
    %c0_i32_1 = arith.constant 0 : i32
    return %c0_i32, %c0_i32_0 : i32, i32
  }
  func.func @transform_2(%arg0: i32) -> (i32, i32) {
    %c0_i32 = arith.constant 0 : i32
    %c0_i32_0 = arith.constant 0 : i32
    %c0_i32_1 = arith.constant 0 : i32
    return %c0_i32, %c0_i32_0 : i32, i32
  }
  func.func @transform_3(%arg0: i32) -> (i32, i32) {
    %c0_i32 = arith.constant 0 : i32
    %c0_i32_0 = arith.constant 0 : i32
    %c0_i32_1 = arith.constant 0 : i32
    return %c0_i32, %c0_i32_0 : i32, i32
  }
  func.func @transform_4(%arg0: i32) -> (i32, i32, i32) {
    %c0_i32 = arith.constant 0 : i32
    %c0_i32_0 = arith.constant 0 : i32
    %c0_i32_1 = arith.constant 0 : i32
    return %arg0, %c0_i32, %c0_i32_0 : i32, i32, i32
  }
}

</mosaic_0001>

<bundles_post_ra>
// kernel: transformer_forward.8
= control target key start
LH: loop header
LB: loop body
LE: loop exit
PB: predicated region body
PF: predicated region fallthrough
CT: control target
= control target key end

     0   :  { %s301_s12 = smov 0   ;;  %s327_s0 = inlined_call_operand.vmem [shape: f32[2,8,32], index: 0, kind: input, shape index: {}]   ;;  %s328_s1 = inlined_call_operand.vmem [shape: f32[1,32], index: 1, kind: input, shape index: {}]   ;;  %s329_s2 = inlined_call_operand.vmem [shape: f32[1,32], index: 2, kind: input, shape index: {}]   ;;  %s330_s3 = inlined_call_operand.vmem [shape: f32[2,8,32], index: 3, kind: output, shape index: {}]  }
   0x1 LB: > { %s252_s13 = sadd.s32 4294967295, %s279_s12   ;;  %p256_p0 = scmp.ge.s32.totalorder %s279_s12, 1  ;;  %s279_s12 = sphi %s301_s12, %s13_s12  }
   0x2   : > { %p136_p1 = scmp.lt.s32.totalorder %s279_s12, 3 }
   0x4   : > { %p137_p2 = pnand %p256_p0, %p136_p1 }
   0x5   : > { %p158_p3 = scmp.lt.s32.totalorder (!%p137_p2), %s252_s13, 1  ;;  %vm169_vm0 = vcmask (!%p137_p2), 261120   ;;  %v259_v11 = vld [vmem:[%s328_s1] ss:$0 sm:$0xff] (!%p137_p2) }
   0x6   : > { %140 = sbr.rel (%p137_p2) target bundleno = 331 (0x14b), region = 32  ;;  %v260_v13 = vld [vmem:[%s329_s2] ss:$0 sm:$0xff] (!%p137_p2) }
   0xd   : > { %s332_s13 = smov (!%p158_p3, %s252_s13), 1 }
   0xe   : > { %s257_s14 = sshll.u32 %s332_s13, 3 }
   0xf   : > { %s161_s17 = scalar_lea.vmem %s327_s0, %s257_s14  ;;  %s165_s24 = scalar_lea.vmem %s330_s3, %s257_s14 }
  0x10   : > { %v166_v0 = vld [vmem:[%s161_s17] sm:$0xff] }
  0x11   : > { %v170_v1 = vsel %vm169_vm0, %v166_v0, 0.0 }
  0x12   : > { %171 = vadd.xlane.f32.xlu0 %v170_v1 }
  0x9f   : > { %v172_v2 = vpop.xlane.xlu0 %171 }
  0xa0   : > { %v174_v3 = vmul.f32 0.03125, %v172_v2 }
  0xa2   : > { %v175_v4 = vsub.f32 %v166_v0, %v174_v3 }
  0xa4   : > { %v176_v5 = vmul.f32 %v175_v4, %v175_v4 }
  0xa6   : > { %v177_v6 = vsel %vm169_vm0, %v176_v5, 0.0 }
  0xa7   : > { %178 = vadd.xlane.f32.xlu0 %v177_v6 }
 0x134   : > { %v179_v7 = vpop.xlane.xlu0 %178 }
 0x135   : > { %v180_v8 = vmul.f32 0.03125, %v179_v7 }
 0x137   : > { %v181_v9 = vadd.f32 1e-05, %v180_v8 }
 0x139   : > { %271 = vrsqrt.f32 %v181_v9 }
 0x143   : > { %v272_v10 = vpop.eup %271 }
 0x144   : > { %v183_v12 = vmul.f32 %v272_v10, %v175_v4 }
 0x146   : > { %v190_v14 = vmul.f32 %v259_v11, %v183_v12 }
 0x148   : > { %v197_v15 = vadd.f32 %v260_v13, %v190_v14 }
 0x14a   : > { %198 = vst.msk [vmem:[%s165_s24] sm:$0xff] %vm169_vm0, %v197_v15 }
 0x14b PF: > { %s13_s12 = sadd.s32 1, %s279_s12  }
 0x14c   : > { %p10_p4 = scmp.ge.s32.totalorder %s13_s12, 4  }
 0x14e   :  { %12 = sbr.rel (!%p10_p4) target bundleno = 1 (0x1), region = 62 }

// kernel: transformer_forward.6
= control target key start
LH: loop header
LB: loop body
LE: loop exit
PB: predicated region body
PF: predicated region fallthrough
CT: control target
= control target key end

     0   :  { %s1923_s24 = smov 0   ;;  %s2145_s0 = inlined_call_operand.vmem [shape: f32[2,8,32], index: 0, kind: input, shape index: {}]   ;;  %s2146_s1 = inlined_call_operand.vmem [shape: f32[1,32], index: 1, kind: input, shape index: {}]   ;;  %s2147_s2 = inlined_call_operand.vmem [shape: f32[1,32], index: 2, kind: input, shape index: {}]   ;;  %s2148_s3 = inlined_call_operand.vmem [shape: bf16[32,32], index: 3, kind: input, shape index: {}]   ;;  %s2149_s4 = inlined_call_operand.vmem [shape: f32[1,32], index: 4, kind: input, shape index: {}]   ;;  %s2150_s5 = inlined_call_operand.vmem [shape: bf16[32,32], index: 5, kind: input, shape index: {}]   ;;  %s2151_s6 = inlined_call_operand.vmem [shape: f32[1,32], index: 6, kind: input, shape index: {}]   ;;  %s2152_s7 = inlined_call_operand.vmem [shape: bf16[32,32], index: 7, kind: input, shape index: {}]   ;;  %s2153_s8 = inlined_call_operand.vmem [shape: f32[1,32], index: 8, kind: input, shape index: {}]   ;;  %s2154_s9 = inlined_call_operand.vmem [shape: bf16[32,32], index: 9, kind: input, shape index: {}]   ;;  %s2155_s10 = inlined_call_operand.vmem [shape: f32[1,32], index: 10, kind: input, shape index: {}]   ;;  %s2156_s11 = inlined_call_operand.vmem [shape: f32[1,32], index: 11, kind: input, shape index: {}]   ;;  %s2157_s12 = inlined_call_operand.vmem [shape: f32[1,32], index: 12, kind: input, shape index: {}]   ;;  %s2158_s13 = inlined_call_operand.vmem [shape: bf16[32,128], index: 13, kind: input, shape index: {}]   ;;  %s2159_s14 = inlined_call_operand.vmem [shape: f32[1,128], index: 14, kind: input, shape index: {}]   ;;  %s2160_s15 = inlined_call_operand.vmem [shape: bf16[128,32], index: 15, kind: input, shape index: {}]   ;;  %s2161_s16 = inlined_call_operand.vmem [shape: f32[1,32], index: 16, kind: input, shape index: {}]   ;;  %s2162_s17 = inlined_call_operand.vmem [shape: f32[2,8,32], index: 17, kind: output, shape index: {}]  }
   0x1   :  { %2163 = sst [smem:[#allocation2_spill]] %s2145_s0 }
   0x2   :  { %2164 = sst [smem:[#allocation3_spill]] %s2146_s1 }
   0x3 LB: > { %s1565_s25 = sadd.s32 4294967295, %s1823_s24   ;;  %p1569_p0 = scmp.ge.s32.totalorder %s1823_s24, 1  ;;  %s1823_s24 = sphi %s1923_s24, %s27_s24  }
   0x4   : > { %p486_p1 = scmp.lt.s32.totalorder %s1823_s24, 3 }
   0x6   : > { %p487_p2 = pnand %p1569_p0, %p486_p1 }
   0x7   : > { %p536_p3 = scmp.lt.s32.totalorder (!%p487_p2), %s1565_s25, 1  ;;  %vm592_vm0 = vcmask (!%p487_p2), 261120   ;;  %s2165_s29 = sld [smem:[#allocation2_spill]] (!%p487_p2)  ;;  %v1779_v7 = vld [vmem:[%s2148_s3] sm:$0xff] (!%p487_p2)   ;;  %v1825_v8 = vmov (!%p487_p2), 0.0   ;;  %v1780_v9 = vld [vmem:[%s2148_s3 + $0x8] sm:$0xff] (!%p487_p2)  }
   0x8   : > { %490 = sbr.rel (%p487_p2) target bundleno = 2560 (0xa00), region = 88  ;;  %1655 = vmatprep.subr.bf16.mxu0 (!%p487_p2), %v1825_v8  ;;  %1679 = vmatprep.subr.bf16.mxu1 (!%p487_p2), %v1825_v8  ;;  %vm1826_vm1 = vmmov (!%p487_p2), 0   ;;  %s2166_s22 = sld [smem:[#allocation3_spill]] (!%p487_p2)  ;;  %v1573_v16 = vld [vmem:[%s2147_s2] ss:$0 sm:$0xff] (!%p487_p2)  ;;  %v1782_v21 = vld [vmem:[%s2150_s5 + $0x8] sm:$0xff] (!%p487_p2)  }
   0x9   : > { %1656 = vmatpush3.bf16.msra.mxu0 (!%p487_p2), %v1779_v7  ;;  %1659 = vmatprep.mubr.msk.bf16.mxu0 (!%p487_p2), %vm1826_vm1, %v1825_v8  ;;  %v1781_v19 = vld [vmem:[%s2150_s5] sm:$0xff] (!%p487_p2)   ;;  %v1784_v23 = vld [vmem:[%s2152_s7 + $0x8] sm:$0xff] (!%p487_p2)   ;;  %vm802_vm2 = vcmask (!%p487_p2), 64512   ;;  %s1827_s28 = smov (!%p487_p2), 112   ;;  %vm865_vm3 = vcmask (!%p487_p2), 1043456   ;;  %s1829_s18 = smov (!%p487_p2), 104  }
   0xa   : > { %1657 = vmatprep.subr.bf16.mxu0 (!%p487_p2), %v1825_v8  ;;  %1681 = vmatprep.mubr.msk.bf16.mxu1 (!%p487_p2), %vm1826_vm1, %v1825_v8  ;;  %v1783_v22 = vld [vmem:[%s2152_s7] sm:$0xff] (!%p487_p2)   ;;  %s1830_s20 = smov (!%p487_p2), 8   ;;  %s1831_s21 = smov (!%p487_p2), 16   ;;  %vm1258_vm4 = vcmask (!%p487_p2), 130048   ;;  %vm1260_vm5 = vcmask (!%p487_p2), 195584  }
   0xb   : > { %v1578_v28 = vld [vmem:[%s2151_s6] ss:$0 sm:$0xff] (!%p487_p2)  ;;  %s1832_s27 = smov (!%p487_p2), 24  }
   0xc   : > { %v1574_v29 = vld [vmem:[%s2149_s4] ss:$0 sm:$0xff] (!%p487_p2) }
   0xd   : > { %1658 = vmatpush3.bf16.msra.mxu0 (!%p487_p2), %v1780_v9  ;;  %v1582_v38 = vld [vmem:[%s2153_s8] ss:$0 sm:$0xff] (!%p487_p2) }
   0xe   : > { %1663 = vmatprep.subr.bf16.mxu0 (!%p487_p2), %v1825_v8  ;;  %v1572_v14 = vld [vmem:[%s2166_s22] ss:$0 sm:$0xff] (!%p487_p2) }
   0xf   : > { %s2168_s25 = smov (!%p536_p3, %s1565_s25), 1 }
  0x10   : > { %s1570_s26 = sshll.u32 %s2168_s25, 3 }
  0x11   : > { %s539_s0 = scalar_lea.vmem %s2165_s29, %s1570_s26  ;;  %s1828_s29 = smov 120  }
  0x12   : > { %v591_v0 = vld [vmem:[%s539_s0] sm:$0xff] }
  0x13   : > { %v593_v1 = vsel %vm592_vm0, %v591_v0, 0.0 }
  0x14   : > { %594 = vadd.xlane.f32.xlu0 %v593_v1 }
  0xa1   : > { %v595_v2 = vpop.xlane.xlu0 %594 }
  0xa2   : > { %v597_v3 = vmul.f32 0.03125, %v595_v2 }
  0xa4   : > { %v598_v4 = vsub.f32 %v591_v0, %v597_v3 }
  0xa6   : > { %v599_v5 = vmul.f32 %v598_v4, %v598_v4 }
  0xa8   : > { %v600_v6 = vsel %vm592_vm0, %v599_v5, 0.0 }
  0xa9   : > { %601 = vadd.xlane.f32.xlu0 %v600_v6 }
 0x136   : > { %v602_v10 = vpop.xlane.xlu0 %601 }
 0x137   : > { %v603_v11 = vmul.f32 0.03125, %v602_v10 }
 0x139   : > { %v604_v12 = vadd.f32 1e-05, %v603_v11 }
 0x13b   : > { %1797 = vrsqrt.f32 %v604_v12 }
 0x145   : > { %v1798_v13 = vpop.eup %1797 }
 0x146   : > { %v606_v15 = vmul.f32 %v1798_v13, %v598_v4 }
 0x148   : > { %v613_v17 = vmul.f32 %v1572_v14, %v606_v15 }
 0x14a   : > { %v1961_v18 = vadd.f32 %v1573_v16, %v613_v17 }
 0x14c   : > { %v621_v20 = vpack.c.bf16 %v1961_v18, %v1961_v18 }
 0x14e   : > { %1660 = vmatmul.mubr.msk.bf16.vlgmr.msra.gmra.mrb[0].mxu0 %vm592_vm0, %v621_v20 }
 0x14f   : > { %1664 = vmatpush3.bf16.msra.mxu0 %v1781_v19  ;;  %1667 = vmatprep.mubr.msk.bf16.mxu0 %vm1826_vm1, %v1825_v8 }
 0x150   : > { %1665 = vmatprep.subr.bf16.mxu0 %v1825_v8 }
 0x153   : > { %1666 = vmatpush3.bf16.msra.mxu0 %v1782_v21 }
 0x154   : > { %1671 = vmatprep.subr.bf16.mxu0 %v1825_v8 }
 0x156   : > { %1668 = vmatmul.mubr.msk.bf16.vlgmr.msra.gmra.mrb[4].mxu0 %vm592_vm0, %v621_v20 }
 0x157   : > { %1672 = vmatpush3.bf16.msra.mxu0 %v1783_v22  ;;  %1675 = vmatprep.mubr.msk.bf16.mxu0 %vm1826_vm1, %v1825_v8 }
 0x158   : > { %1673 = vmatprep.subr.bf16.mxu0 %v1825_v8 }
 0x15b   : > { %1674 = vmatpush3.bf16.msra.mxu0 %v1784_v23 }
 0x15c   : > { %1685 = vmatprep.subr.bf16.mxu0 %v1825_v8 }
 0x15e   : > { %1676 = vmatmul.mubr.msk.bf16.vlgmr.msra.gmra.mrb[8].mxu0 %vm592_vm0, %v621_v20 }
 0x15f   : > { %1687 = vmatprep.mubr.msk.bf16.mxu0 %vm1826_vm1, %v1825_v8 }
 0x221   : > { %v677_v24 = vpop.f32.mrb[0].mxu0 }
 0x222   : > { %v1661_v25 = vpop.f32.mrb[1].mxu0  ;;  %v678_v34 = vadd.f32 %v1574_v29, %v677_v24 }
 0x223   : > { %v680_v26 = vpop.f32.mrb[2].mxu0 }
 0x224   : > { %v1662_v27 = vpop.f32.mrb[3].mxu0  ;;  %v799_v39 = vpack.c.bf16 %v678_v34, %v678_v34 }
 0x229   : > { %v735_v30 = vpop.f32.mrb[4].mxu0 }
 0x22a   : > { %v736_v31 = vadd.f32 %v1578_v28, %v735_v30  ;;  %v1669_v32 = vpop.f32.mrb[5].mxu0 }
 0x22b   : > { %v738_v33 = vpop.f32.mrb[6].mxu0 }
 0x22c   : > { %v800_v35 = vpack.c.bf16 %v736_v31, %v736_v31  ;;  %v1670_v36 = vpop.f32.mrb[7].mxu0 }
 0x22e   : > { %1025 = vrot.lane.b32.xlu0 %v800_v35, %s1827_s28  ;;  %913 = vrot.lane.b32.xlu1 %v800_v35, %s1828_s29  ;;  %v807_v37 = vsel %vm802_vm2, %v800_v35, 0 }
 0x22f   : > { %1680 = vmatpush3.bf16.xpose.msra.mxu1 %v807_v37 }
 0x230   : > { %1691 = vmatprep.subr.bf16.mxu1 %v1825_v8 }
 0x231   : > { %v793_v40 = vpop.f32.mrb[8].mxu0 }
 0x232   : > { %v794_v41 = vadd.f32 %v1582_v38, %v793_v40  ;;  %910 = vrot.lane.b32.xlu1 %v799_v39, %s1828_s29  ;;  %v1677_v42 = vpop.f32.mrb[9].mxu0 }
 0x233   : > { %v796_v43 = vpop.f32.mrb[10].mxu0 }
 0x234   : > { %v2004_v44 = vpack.c.bf16 %v794_v41, %v794_v41  ;;  %v1678_v45 = vpop.f32.mrb[11].mxu0 }
 0x236   : > { %1023 = vrot.lane.b32.xlu1 %v799_v39, %s1827_s28  ;;  %1682 = vmatmul.mubr.msk.bf16.vlgmr.msra.gmra.mrb[0].mxu1 %vm802_vm2, %v799_v39  ;;  %v867_v46 = vsel %vm865_vm3, %v2004_v44, 0 }
 0x237   : > { %1686 = vmatpush3.bf16.msra.mxu0 %v867_v46  ;;  %1693 = vmatprep.mubr.msk.bf16.mxu1 %vm1826_vm1, %v1825_v8 }
 0x238   : > { %1697 = vmatprep.subr.bf16.mxu0 %v1825_v8 }
 0x23a   : > { %1136 = vrot.lane.b32.xlu1 %v800_v35, %s1829_s18 }
 0x23e   : > { %1134 = vrot.lane.b32.xlu1 %v799_v39, %s1829_s18 }
 0x2a0   : > { %v914_v47 = vpop.permute.xlu1 %913  ;;  %v1026_v50 = vpop.permute.xlu0 %1025 }
 0x2a1   : > { %v919_v48 = vsel %vm802_vm2, %v914_v47, 0  ;;  %v1031_v52 = vsel %vm802_vm2, %v1026_v50, 0 }
 0x2a2   : > { %1692 = vmatpush3.bf16.xpose.msra.mxu1 %v919_v48 }
 0x2a3   : > { %1703 = vmatprep.subr.bf16.mxu1 %v1825_v8 }
 0x2a4   : > { %v911_v49 = vpop.permute.xlu1 %910 }
 0x2a8   : > { %v1024_v51 = vpop.permute.xlu1 %1023 }
 0x2a9   : > { %1694 = vmatmul.mubr.msk.bf16.vlgmr.msra.gmra.mrb[4].mxu1 %vm802_vm2, %v911_v49 }
 0x2aa   : > { %1704 = vmatpush3.bf16.xpose.msra.mxu1 %v1031_v52  ;;  %1705 = vmatprep.mubr.msk.bf16.mxu1 %vm1826_vm1, %v1825_v8 }
 0x2ab   : > { %1715 = vmatprep.subr.bf16.mxu1 %v1825_v8 }
 0x2ac   : > { %v1137_v53 = vpop.permute.xlu1 %1136 }
 0x2ad   : > { %v1142_v54 = vsel %vm802_vm2, %v1137_v53, 0 }
 0x2b0   : > { %v1135_v55 = vpop.permute.xlu1 %1134 }
 0x2b1   : > { %1706 = vmatmul.mubr.msk.bf16.vlgmr.msra.gmra.mrb[8].mxu1 %vm802_vm2, %v1024_v51 }
 0x2b2   : > { %1716 = vmatpush3.bf16.xpose.msra.mxu1 %v1142_v54  ;;  %1717 = vmatprep.mubr.msk.bf16.mxu1 %vm1826_vm1, %v1825_v8 }
 0x2b3   : > { %1727 = vmatprep.subr.bf16.mxu1 %v1825_v8 }
 0x2b9   : > { %1718 = vmatmul.mubr.msk.bf16.vlgmr.msra.gmra.mrb[12].mxu1 %vm802_vm2, %v1135_v55 }
 0x2ba   : > { %1731 = vmatprep.mubr.msk.bf16.mxu1 %vm1826_vm1, %v1825_v8 }
 0x309   : > { %v843_v56 = vpop.f32.mrb[0].mxu1 }
 0x30a   : > { %v849_v57 = vmul.f32 0.35355338, %v843_v56  ;;  %v1683_v58 = vpop.f32.mrb[1].mxu1 }
 0x30b   : > { %v846_v59 = vpop.f32.mrb[2].mxu1 }
 0x30c   : > { %v1684_v60 = vpop.f32.mrb[3].mxu1  ;;  %v850_v61 = vsel %vm802_vm2, %v849_v57, -inf }
 0x30d   : > { %851 = vmax.xlane.f32.xlu1 %v850_v61 }
 0x37c   : > { %v955_v62 = vpop.f32.mrb[4].mxu1 }
 0x37d   : > { %v961_v63 = vmul.f32 0.35355338, %v955_v62  ;;  %v1695_v0 = vpop.f32.mrb[5].mxu1 }
 0x37e   : > { %v958_v1 = vpop.f32.mrb[6].mxu1  ;;  %v1785_v0 = vld [vmem:[%s2154_s9] sm:$0xff]  }
 0x37f   : > { %v1696_v2 = vpop.f32.mrb[7].mxu1  ;;  %v962_v3 = vsel %vm802_vm2, %v961_v63, -inf  ;;  %1728 = vmatpush3.bf16.msra.mxu1 %v1785_v0 }
 0x380   : > { %963 = vmax.xlane.f32.xlu0 %v962_v3  ;;  %1729 = vmatprep.subr.bf16.mxu1 %v1825_v8 }
 0x384   : > { %v1067_v4 = vpop.f32.mrb[8].mxu1 }
 0x385   : > { %v1073_v5 = vmul.f32 0.35355338, %v1067_v4  ;;  %v1707_v6 = vpop.f32.mrb[9].mxu1 }
 0x386   : > { %v1070_v7 = vpop.f32.mrb[10].mxu1 }
 0x387   : > { %v1708_v9 = vpop.f32.mrb[11].mxu1  ;;  %v1074_v10 = vsel %vm802_vm2, %v1073_v5, -inf }
 0x388   : > { %1075 = vmax.xlane.f32.xlu1 %v1074_v10  ;;  %v1786_v10 = vld [vmem:[%s2154_s9 + $0x8] sm:$0xff]  }
 0x389   : > { %1730 = vmatpush3.bf16.msra.mxu1 %v1786_v10 }
 0x38a   : > { %1743 = vmatprep.subr.bf16.mxu1 %v1825_v8 }
 0x38c   : > { %v1178_v11 = vpop.f32.mrb[12].mxu1 }
 0x38d   : > { %v1184_v12 = vmul.f32 0.35355338, %v1178_v11  ;;  %v1719_v13 = vpop.f32.mrb[13].mxu1 }
 0x38e   : > { %v1181_v14 = vpop.f32.mrb[14].mxu1 }
 0x38f   : > { %v1720_v15 = vpop.f32.mrb[15].mxu1  ;;  %v1185_v16 = vsel %vm802_vm2, %v1184_v12, -inf }
 0x390   : > { %1186 = vmax.xlane.f32.xlu1 %v1185_v16 }
 0x39a   : > { %v852_v17 = vpop.xlane.xlu1 %851 }
 0x39b   : > { %v853_v19 = vsub.f32 %v849_v57, %v852_v17 }
 0x39d   : > { %v854_v20 = vmul.f32 1.442695, %v853_v19 }
 0x39f   : > { %1799 = vpow2.f32 %v854_v20 }
 0x3a9   : > { %v1800_v21 = vpop.eup %1799 }
 0x3aa   : > { %v856_v22 = vsel %vm802_vm2, %v1800_v21, 0.0 }
 0x3ab   : > { %857 = vadd.xlane.f32.xlu0 %v856_v22 }
 0x40d   : > { %v964_v23 = vpop.xlane.xlu0 %963 }
 0x40e   : > { %v965_v24 = vsub.f32 %v961_v63, %v964_v23  ;;  %v1594_v23 = vld [vmem:[%s2155_s10] ss:$0 sm:$0xff] }
 0x410   : > { %v966_v25 = vmul.f32 1.442695, %v965_v24 }
 0x412   : > { %1801 = vpow2.f32 %v966_v25 }
 0x415   : > { %v1076_v26 = vpop.xlane.xlu1 %1075 }
 0x416   : > { %v1077_v27 = vsub.f32 %v1073_v5, %v1076_v26 }
 0x418   : > { %v1078_v28 = vmul.f32 1.442695, %v1077_v27 }
 0x41a   : > { %1803 = vpow2.f32 %v1078_v28 }
 0x41c   : > { %v1802_v29 = vpop.eup %1801 }
 0x41d   : > { %v968_v30 = vsel %vm802_vm2, %v1802_v29, 0.0  ;;  %v1187_v34 = vpop.xlane.xlu1 %1186 }
 0x41e   : > { %969 = vadd.xlane.f32.xlu1 %v968_v30  ;;  %v1188_v35 = vsub.f32 %v1184_v12, %v1187_v34 }
 0x420   : > { %v1189_v36 = vmul.f32 1.442695, %v1188_v35 }
 0x424   : > { %v1804_v31 = vpop.eup %1803 }
 0x425   : > { %v1080_v32 = vsel %vm802_vm2, %v1804_v31, 0.0 }
 0x426   : > { %1081 = vadd.xlane.f32.xlu0 %v1080_v32 }
 0x42f   : > { %1086 = vrot.lane.b32.xlu1 %v2004_v44, %s1827_s28 }
 0x438   : > { %v858_v33 = vpop.xlane.xlu0 %857 }
 0x439   : > { %1805 = vrcp.f32 %v858_v33 }
 0x43a   : > { %1807 = vpow2.f32 %v1189_v36  ;;  %v1787_v36 = vld [vmem:[%s2158_s13] sm:$0xff]  }
 0x43c   : > { %975 = vrot.lane.b32.xlu0 %v2004_v44, %s1828_s29 }
 0x443   : > { %v1806_v37 = vpop.eup %1805 }
 0x444   : > { %v860_v38 = vmul.f32 %v1806_v37, %v1800_v21  ;;  %v1808_v40 = vpop.eup %1807  ;;  %v1789_v37 = vld [vmem:[%s2160_s15] sm:$0xff]  }
 0x445   : > { %v1191_v41 = vsel %vm802_vm2, %v1808_v40, 0.0 }
 0x446   : > { %v861_v39 = vpack.c.bf16 %v860_v38, %v860_v38  ;;  %v1790_v38 = vld [vmem:[%s2160_s15 + $0x8] sm:$0xff]  }
 0x448   : > { %1688 = vmatmul.mubr.msk.bf16.vlgmr.msra.gmra.mrb[12].mxu0 %vm802_vm2, %v861_v39  ;;  %v1791_v39 = vld [vmem:[%s2160_s15 + $0x10] sm:$0xff]  }
 0x449   : > { %1699 = vmatprep.mubr.msk.bf16.mxu0 %vm1826_vm1, %v1825_v8 }
 0x453   : > { %1192 = vadd.xlane.f32.xlu1 %v1191_v41  ;;  %v1793_v41 = vld [vmem:[%s2160_s15 + $0x20] sm:$0xff]  }
 0x464   : > { %1197 = vrot.lane.b32.xlu1 %v2004_v44, %s1829_s18 }
 0x4ab   : > { %v970_v42 = vpop.xlane.xlu1 %969 }
 0x4ac   : > { %1809 = vrcp.f32 %v970_v42  ;;  %v1794_v42 = vld [vmem:[%s2160_s15 + $0x28] sm:$0xff]  }
 0x4af   : > { %v1087_v49 = vpop.permute.xlu1 %1086 }
 0x4b0   : > { %v1092_v51 = vsel %vm865_vm3, %v1087_v49, 0 }
 0x4b3   : > { %v1082_v43 = vpop.xlane.xlu0 %1081 }
 0x4b4   : > { %1811 = vrcp.f32 %v1082_v43 }
 0x4b6   : > { %v1810_v45 = vpop.eup %1809 }
 0x4b7   : > { %v972_v46 = vmul.f32 %v1810_v45, %v1802_v29  ;;  %v976_v47 = vpop.permute.xlu0 %975 }
 0x4b8   : > { %v981_v48 = vsel %vm865_vm3, %v976_v47, 0 }
 0x4b9   : > { %1698 = vmatpush3.bf16.msra.mxu0 %v981_v48  ;;  %v973_v50 = vpack.c.bf16 %v972_v46, %v972_v46  ;;  %v1598_v48 = vld [vmem:[%s2156_s11] ss:$0 sm:$0xff] }
 0x4ba   : > { %1709 = vmatprep.subr.bf16.mxu0 %v1825_v8 }
 0x4bc   : > { %1700 = vmatmul.mubr.msk.bf16.vlgmr.msra.gmra.mrb[16].mxu0 %vm802_vm2, %v973_v50  ;;  %v1599_v50 = vld [vmem:[%s2157_s12] ss:$0 sm:$0xff] }
 0x4bd   : > { %1710 = vmatpush3.bf16.msra.mxu0 %v1092_v51  ;;  %1711 = vmatprep.mubr.msk.bf16.mxu0 %vm1826_vm1, %v1825_v8 }
 0x4be   : > { %v1812_v44 = vpop.eup %1811  ;;  %1721 = vmatprep.subr.bf16.mxu0 %v1825_v8 }
 0x4bf   : > { %v1084_v52 = vmul.f32 %v1812_v44, %v1804_v31 }
 0x4c1   : > { %v1085_v53 = vpack.c.bf16 %v1084_v52, %v1084_v52 }
 0x4c4   : > { %1712 = vmatmul.mubr.msk.bf16.vlgmr.msra.gmra.mrb[20].mxu0 %vm802_vm2, %v1085_v53  ;;  %v1795_v53 = vld [vmem:[%s2160_s15 + $0x30] sm:$0xff]  }
 0x4c5   : > { %1723 = vmatprep.mubr.msk.bf16.mxu0 %vm1826_vm1, %v1825_v8 }
 0x4e0   : > { %v1193_v54 = vpop.xlane.xlu1 %1192 }
 0x4e1   : > { %1813 = vrcp.f32 %v1193_v54  ;;  %v1796_v54 = vld [vmem:[%s2160_s15 + $0x38] sm:$0xff]  }
 0x4e4   : > { %v1198_v55 = vpop.permute.xlu1 %1197 }
 0x4e5   : > { %v1203_v56 = vsel %vm865_vm3, %v1198_v55, 0  ;;  %v1600_v55 = vld [vmem:[%s2159_s14] ss:$0 sm:$0xff] }
 0x4e6   : > { %1722 = vmatpush3.bf16.msra.mxu0 %v1203_v56 }
 0x4e7   : > { %1735 = vmatprep.subr.bf16.mxu0 %v1825_v8 }
 0x4eb   : > { %v1814_v57 = vpop.eup %1813 }
 0x4ec   : > { %v1195_v58 = vmul.f32 %v1814_v57, %v1808_v40  ;;  %v1792_v40 = vld [vmem:[%s2160_s15 + $0x18] sm:$0xff]  }
 0x4ee   : > { %v1196_v59 = vpack.c.bf16 %v1195_v58, %v1195_v58 }
 0x4f0   : > { %1724 = vmatmul.mubr.msk.bf16.vlgmr.msra.gmra.mrb[24].mxu0 %vm802_vm2, %v1196_v59 }
 0x4f1   : > { %1739 = vmatprep.mubr.msk.bf16.mxu0 %vm1826_vm1, %v1825_v8  ;;  %1736 = vmatpush3.bf16.msra.mxu0 %v1787_v36 }
 0x4f2   : > { %1737 = vmatprep.subr.bf16.mxu0 %v1825_v8 }
 0x51b   : > { %v903_v60 = vpop.f32.mrb[12].mxu0 }
 0x51c   : > { %v1689_v61 = vpop.f32.mrb[13].mxu0 }
 0x51d   : > { %v906_v62 = vpop.f32.mrb[14].mxu0 }
 0x51e   : > { %v1690_v63 = vpop.f32.mrb[15].mxu0 }
 0x58f   : > { %v1017_v1 = vpop.f32.mrb[16].mxu0 }
 0x590   : > { %1246 = vrot.lane.b32.xlu0 %v1017_v1, %s1830_s20  ;;  %v1701_v2 = vpop.f32.mrb[17].mxu0 }
 0x591   : > { %v1020_v3 = vpop.f32.mrb[18].mxu0 }
 0x592   : > { %v1702_v4 = vpop.f32.mrb[19].mxu0 }
 0x597   : > { %v1128_v5 = vpop.f32.mrb[20].mxu0 }
 0x598   : > { %1250 = vrot.lane.b32.xlu1 %v1128_v5, %s1831_s21  ;;  %v1713_v6 = vpop.f32.mrb[21].mxu0  ;;  %s543_s21 = scalar_lea.vmem %s2162_s17, %s1570_s26 }
 0x599   : > { %v1131_v7 = vpop.f32.mrb[22].mxu0 }
 0x59a   : > { %v1714_v9 = vpop.f32.mrb[23].mxu0 }
 0x5c3   : > { %v1239_v11 = vpop.f32.mrb[24].mxu0 }
 0x5c4   : > { %1254 = vrot.lane.b32.xlu0 %v1239_v11, %s1832_s27  ;;  %v1725_v12 = vpop.f32.mrb[25].mxu0 }
 0x5c5   : > { %v1242_v13 = vpop.f32.mrb[26].mxu0 }
 0x5c6   : > { %v1726_v14 = vpop.f32.mrb[27].mxu0 }
 0x602   : > { %v1247_v15 = vpop.permute.xlu0 %1246 }
 0x603   : > { %v1257_v17 = vsel %vm802_vm2, %v903_v60, %v1247_v15 }
 0x60a   : > { %v1251_v16 = vpop.permute.xlu1 %1250 }
 0x60b   : > { %v1259_v19 = vsel %vm1258_vm4, %v1257_v17, %v1251_v16 }
 0x636   : > { %v1255_v20 = vpop.permute.xlu0 %1254 }
 0x637   : > { %v1261_v21 = vsel %vm1260_vm5, %v1259_v19, %v1255_v20 }
 0x638   : > { %v1262_v22 = vpack.c.bf16 %v1261_v21, %v1261_v21 }
 0x63a   : > { %1732 = vmatmul.mubr.msk.bf16.vlgmr.msra.gmra.mrb[16].mxu1 %vm592_vm0, %v1262_v22 }
 0x63b   : > { %1759 = vmatprep.mubr.msk.bf16.mxu1 %vm1826_vm1, %v1825_v8  ;;  %1744 = vmatpush3.bf16.msra.mxu1 %v1789_v37 }
 0x63c   : > { %1745 = vmatprep.subr.bf16.mxu1 %v1825_v8 }
 0x63f   : > { %1746 = vmatpush3.bf16.msra.mxu1 %v1790_v38 }
 0x640   : > { %1747 = vmatprep.subr.bf16.mxu1 %v1825_v8 }
 0x643   : > { %1748 = vmatpush3.bf16.msra.mxu1 %v1791_v39 }
 0x644   : > { %1749 = vmatprep.subr.bf16.mxu1 %v1825_v8 }
 0x647   : > { %1750 = vmatpush3.bf16.msra.mxu1 %v1792_v40 }
 0x648   : > { %1751 = vmatprep.subr.bf16.mxu1 %v1825_v8 }
 0x64b   : > { %1752 = vmatpush3.bf16.msra.mxu1 %v1793_v41 }
 0x64c   : > { %1753 = vmatprep.subr.bf16.mxu1 %v1825_v8 }
 0x64f   : > { %1754 = vmatpush3.bf16.msra.mxu1 %v1794_v42 }
 0x650   : > { %1755 = vmatprep.subr.bf16.mxu1 %v1825_v8 }
 0x653   : > { %1756 = vmatpush3.bf16.msra.mxu1 %v1795_v53 }
 0x654   : > { %1757 = vmatprep.subr.bf16.mxu1 %v1825_v8  ;;  %v1604_v8 = vld [vmem:[%s2161_s16] ss:$0 sm:$0xff] }
 0x657   : > { %1758 = vmatpush3.bf16.msra.mxu1 %v1796_v54 }
 0x70d   : > { %v1318_v24 = vpop.f32.mrb[16].mxu1 }
 0x70e   : > { %v1319_v25 = vadd.f32 %v1594_v23, %v1318_v24  ;;  %v1733_v26 = vpop.f32.mrb[17].mxu1 }
 0x70f   : > { %v1321_v27 = vpop.f32.mrb[18].mxu1 }
 0x710   : > { %v2078_v28 = vadd.f32 %v1319_v25, %v1961_v18  ;;  %v1734_v29 = vpop.f32.mrb[19].mxu1  ;;  %v1788_v18 = vld [vmem:[%s2158_s13 + $0x8] sm:$0xff]  }
 0x711   : > { %1738 = vmatpush3.bf16.msra.mxu0 %v1788_v18 }
 0x712   : > { %v1325_v30 = vsel %vm592_vm0, %v2078_v28, 0.0 }
 0x713   : > { %1326 = vadd.xlane.f32.xlu1 %v1325_v30 }
 0x7a0   : > { %v1327_v31 = vpop.xlane.xlu1 %1326 }
 0x7a1   : > { %v1328_v32 = vmul.f32 0.03125, %v1327_v31 }
 0x7a3   : > { %v1329_v33 = vsub.f32 %v2078_v28, %v1328_v32 }
 0x7a5   : > { %v1330_v34 = vmul.f32 %v1329_v33, %v1329_v33 }
 0x7a7   : > { %v1331_v35 = vsel %vm592_vm0, %v1330_v34, 0.0 }
 0x7a8   : > { %1332 = vadd.xlane.f32.xlu0 %v1331_v35 }
 0x835   : > { %v1333_v43 = vpop.xlane.xlu0 %1332 }
 0x836   : > { %v1334_v45 = vmul.f32 0.03125, %v1333_v43 }
 0x838   : > { %v1335_v46 = vadd.f32 1e-05, %v1334_v45 }
 0x83a   : > { %1815 = vrsqrt.f32 %v1335_v46 }
 0x844   : > { %v1816_v47 = vpop.eup %1815 }
 0x845   : > { %v1337_v49 = vmul.f32 %v1816_v47, %v1329_v33 }
 0x847   : > { %v1344_v51 = vmul.f32 %v1598_v48, %v1337_v49 }
 0x849   : > { %v1351_v44 = vadd.f32 %v1599_v50, %v1344_v51 }
 0x84b   : > { %v1352_v52 = vpack.c.bf16 %v1351_v44, %v1351_v44 }
 0x84d   : > { %1740 = vmatmul.mubr.msk.bf16.vlgmr.msra.gmra.mrb[28].mxu0 %vm592_vm0, %v1352_v52 }
 0x920   : > { %v1408_v56 = vpop.f32.mrb[28].mxu0 }
 0x921   : > { %v1409_v57 = vadd.f32 %v1600_v55, %v1408_v56  ;;  %v1741_v58 = vpop.f32.mrb[29].mxu0 }
 0x922   : > { %v1411_v59 = vpop.f32.mrb[30].mxu0 }
 0x923   : > { %v1414_v60 = vmax.f32 %v1409_v57, 0.0  ;;  %v1742_v61 = vpop.f32.mrb[31].mxu0 }
 0x925   : > { %v1415_v62 = vpack.c.bf16 %v1414_v60, %v1414_v60 }
 0x927   : > { %1760 = vmatmul.mubr.bf16.vlgmr.msra.gmra.mrb[20].mxu1 %v1415_v62 }
 0x9fa   : > { %v1504_v63 = vpop.f32.mrb[20].mxu1 }
 0x9fb   : > { %v1505_v0 = vadd.f32 %v1604_v8, %v1504_v63  ;;  %v1761_v1 = vpop.f32.mrb[21].mxu1 }
 0x9fc   : > { %v1507_v2 = vpop.f32.mrb[22].mxu1 }
 0x9fd   : > { %v1510_v3 = vadd.f32 %v1505_v0, %v2078_v28  ;;  %v1762_v4 = vpop.f32.mrb[23].mxu1 }
 0x9ff   : > { %1511 = vst.msk [vmem:[%s543_s21] sm:$0xff] %vm592_vm0, %v1510_v3 }
 0xa00 PF: > { %s27_s24 = sadd.s32 1, %s1823_s24  }
 0xa01   : > { %p24_p4 = scmp.ge.s32.totalorder %s27_s24, 4  }
 0xa03   :  { %26 = sbr.rel (!%p24_p4) target bundleno = 3 (0x3), region = 118 }

// kernel: transformer_forward.11
= control target key start
LH: loop header
LB: loop body
LE: loop exit
PB: predicated region body
PF: predicated region fallthrough
CT: control target
= control target key end

     0   :  { %9 = vsyncpa [#allocation3], 0  ;;  %s615_s0 = inlined_call_operand.vmem [shape: f32[2,8,32], index: 0, kind: input, shape index: {}]   ;;  %s616_s1 = inlined_call_operand.vmem [shape: f32[1,32], index: 1, kind: input, shape index: {}]   ;;  %s617_s2 = inlined_call_operand.vmem [shape: f32[1,32], index: 2, kind: input, shape index: {}]   ;;  %s618_s3 = inlined_call_operand.vmem [shape: bf16[32,64], index: 3, kind: input, shape index: {}]   ;;  %s619_s4 = inlined_call_operand.hbm [shape: f32[2,1,64], index: 4, kind: output, shape index: {}]  }
   0x1   :  { %11 = vsyncpa [#allocation3 + $0x1], 0  ;;  %s503_s15 = smov 0   ;;  %s505_s16 = smov 0  }
   0x2   :  { %s507_s17 = smov 0   ;;  %s509_s18 = smov 0  }
   0x3 LB: > { %s524_s19 = sadd.s32 4294967295, %s473_s18   ;;  %s344_s20 = sadd.s32 4294967294, %s473_s18   ;;  %s473_s18 = sphi %s509_s18, %s625_s18   ;;  %s469_s17 = sphi %s507_s17, %s624_s17   ;;  %s465_s16 = sphi %s505_s16, %s623_s16   ;;  %s461_s15 = sphi %s503_s15, %s622_s15  }
   0x4   : > { %s528_s21 = sadd.s32 1, %s473_s18   ;;  %s113_s22 = sadd.s32 1, %s469_s17 }
   0x5   : > { %s110_s23 = ssub.s32 %s473_s18, %s528_s21  ;;  %p123_p0 = scmp.ne.s32.totalorder %s469_s17, %s465_s16 }
   0x6   : > { %p111_p1 = scmp.eq.s32.totalorder %s110_s23, 0  ;;  %p124_p2 = scmp.eq.s32.totalorder %s524_s19, 1 }
   0x7   : > { %p129_p3 = scmp.ne.s32.totalorder %s465_s16, %s461_s15  ;;  %p130_p4 = scmp.eq.s32.totalorder %s344_s20, 1 }
   0x8   : > { %s539_s24 = scalar_select %p111_p1, %s469_s17, %s113_s22  }
   0x9   : > { %p541_p5 = por %p124_p2, %p123_p0  ;;  %p545_p6 = por %p130_p4, %p129_p3 }
   0xa   : > { %p347_p7 = scmp.ge.s32.totalorder %s473_s18, 1  ;;  %p164_p8 = scmp.lt.s32.totalorder %s473_s18, 3 }
   0xc   : > { %p165_p9 = pnand %p347_p7, %p164_p8 }
   0xd   : > { %p188_p10 = scmp.lt.s32.totalorder (!%p165_p9), %s524_s19, 1  ;;  %vm196_vm0 = vcmask (!%p165_p9), 253952   ;;  %v407_v7 = vld [vmem:[%s618_s3] sm:$0xff] (!%p165_p9)   ;;  %v475_v8 = vmov (!%p165_p9), 0.0   ;;  %v408_v9 = vld [vmem:[%s618_s3 + $0x8] sm:$0xff] (!%p165_p9)   ;;  %vm476_vm1 = vmmov (!%p165_p9), 0  }
   0xe   : > { %168 = sbr.rel (%p165_p9) target bundleno = 568 (0x238), region = 36  ;;  %358 = vmatprep.subr.bf16.mxu0 (!%p165_p9), %v475_v8  ;;  %362 = vmatprep.mubr.msk.bf16.mxu0 (!%p165_p9), %vm476_vm1, %v475_v8  ;;  %v194_v14 = vld [vmem:[%s616_s1] sm:$0x1] (!%p165_p9)  ;;  %vm230_vm2 = vcmask (!%p165_p9), 261120   ;;  %s186_s14 = sand.u32 (!%p165_p9), 1, %s465_s16   ;;  %vm274_vm3 = vcmask (!%p165_p9), 516096  }
   0xf   : > { %359 = vmatpush3.bf16.msra.mxu0 (!%p165_p9), %v407_v7  ;;  %v195_v16 = vld [vmem:[%s617_s2] sm:$0x1] (!%p165_p9)  ;;  %s352_s20 = sshll.u32 (!%p165_p9), %s524_s19, 4  ;;  %s187_s22 = scalar_lea.vmem (!%p165_p9), [#allocation2], %s186_s14 }
  0x10   : > { %360 = vmatprep.subr.bf16.mxu0 (!%p165_p9), %v475_v8  ;;  %s289_s23 = sshll.u32 (!%p165_p9), %s187_s22, 4  ;;  %s573_s29 = scalar_lea.hbm (!%p165_p9), %s619_s4, %s352_s20  ;;  %s575_s23 = int_to_ptr.vmem [resolvable:$true] %s289_s23 }
  0x11   : > { %s277_s30 = scalar_lea.sflag (!%p165_p9), [#allocation3], %s186_s14 }
  0x13   : > { %361 = vmatpush3.bf16.msra.mxu0 (!%p165_p9), %v408_v9 }
  0x15   : > { %s189_s27 = scalar_select %p188_p10, %s524_s19, 1 }
  0x16   : > { %s477_s19 = smov [#allocation2]  }
  0x17   : > { %s348_s28 = sshll.u32 %s189_s27, 3  ;;  %s415_s6 = sshll.u32 %s477_s19, 4  ;;  %s416_s6 = int_to_ptr.vmem [resolvable:$false] %s415_s6 }
  0x18   : > { %s191_s5 = scalar_lea.vmem %s615_s0, %s348_s28  ;;  %s417_s7 = scalar_lea.vmem %s416_s6, 32 }
  0x19   : > { %v193_v0 = vld [vmem:[%s191_s5 + $0x7] sm:$0x1]  ;;  %s411_s5 = scalar_lea.vmem %s575_s23, 16  ;;  %p418_p0 = scmp.lt.s32.totalorder %s575_s23, %s416_s6 }
  0x1a   : > { %v197_v1 = vsel %vm196_vm0, %v193_v0, 0.0  ;;  %p412_p11 = scmp.ne.s32.totalorder %s575_s23, %s411_s5  ;;  %p419_p1 = scmp.lt.s32.totalorder %s417_s7, %s411_s5 }
  0x1b   : > { %198 = vadd.xlane.f32.xlu0 %v197_v1 }
  0x1c   : > { %p413_p12 = pnand %p412_p11, %p541_p5  ;;  %p420_p2 = por %p419_p1, %p418_p0 }
  0x1e   : > { %p414_p13 = pneg %p413_p12 }
  0x20   : > { %p421_p3 = pnand %p420_p2, %p414_p13 }
  0xa8   : > { %v199_v2 = vpop.xlane.xlu0 %198 }
  0xa9   : > { %v201_v3 = vmul.f32 0.03125, %v199_v2 }
  0xab   : > { %v202_v4 = vsub.f32 %v193_v0, %v201_v3 }
  0xad   : > { %v203_v5 = vmul.f32 %v202_v4, %v202_v4 }
  0xaf   : > { %v204_v6 = vsel %vm196_vm0, %v203_v5, 0.0 }
  0xb0   : > { %205 = vadd.xlane.f32.xlu0 %v204_v6 }
 0x13d   : > { %v206_v10 = vpop.xlane.xlu0 %205 }
 0x13e   : > { %v207_v11 = vmul.f32 0.03125, %v206_v10 }
 0x140   : > { %v208_v12 = vadd.f32 1e-05, %v207_v11 }
 0x142   : > { %409 = vrsqrt.f32 %v208_v12 }
 0x14c   : > { %v410_v13 = vpop.eup %409 }
 0x14d   : > { %v210_v15 = vmul.f32 %v410_v13, %v202_v4 }
 0x14f   : > { %v211_v17 = vmul.f32 %v210_v15, %v194_v14 }
 0x151   : > { %v212_v18 = vadd.f32 %v211_v17, %v195_v16 }
 0x153   : > { %v217_v19 = vpack.c.bf16 %v212_v18, %v212_v18 }
 0x155   : > { %363 = vmatmul.mubr.msk.bf16.vlgmr.msra.gmra.mrb[0].mxu0 %vm230_vm2, %v217_v19 }
 0x228   : > { %v268_v20 = vpop.f32.mrb[0].mxu0 }
 0x229   : > { %275 = vst.msk [vmem:[%s187_s22] sm:$0x1] %vm274_vm3, %v268_v20  ;;  %v364_v21 = vpop.f32.mrb[1].mxu0 }
 0x22a   : > { %v271_v22 = vpop.f32.mrb[2].mxu0 }
 0x22b   : > { %424 = shalt.err (!%p421_p3)
}
 0x22c   : > { %s425_s8 = scalar_lea.hbm %s573_s29, 16  ;;  %s429_s11 = scalar_lea.hbm %s619_s4, 32 }
 0x22d   : > { %p426_p4 = scmp.ne.s32.totalorder %s573_s29, %s425_s8  ;;  %p430_p9 = scmp.lt.u32.totalorder %s573_s29, %s619_s4 }
 0x22e   : > { %p431_p10 = scmp.lt.u32.totalorder %s429_s11, %s425_s8  ;;  %p433_p12 = scmp.lt.u32.totalorder %s425_s8, %s573_s29 }
 0x22f   : > { %p427_p7 = pnand %p426_p4, %p541_p5 }
 0x230   : > { %p432_p11 = por %p431_p10, %p430_p9 }
 0x231   : > { %p428_p8 = pneg %p427_p7 }
 0x232   : > { %p434_p13 = por %p433_p12, %p432_p11 }
 0x234   : > { %p435_p0 = pnand %p434_p13, %p428_p8 }
 0x236   : > { %438 = shalt.err (!%p435_p0)
}
 0x237   : > { %366 = dma.vmem_to_hbm [thread:$0]  (%p541_p5), %s575_s23, 16, %s573_s29, %s277_s30   ;;  %v365_v23 = vpop.f32.mrb[3].mxu0 }
 0x238 PF: > { %p372_p1 = scmp.ge.s32.totalorder %s473_s18, 2  ;;  %s301_s14 = sand.u32 1, %s461_s15  }
 0x239   : > { %s302_s20 = scalar_lea.sflag [#allocation3], %s301_s14 }
 0x23a   : > { %p369_p2 = pnand %p372_p1, %p545_p6 }
 0x23c   : > { %456 = dma.done.wait (!%p369_p2), %s302_s20, 16  }
 0x23d   : > { %458 = vsyncadd (!%p369_p2), %s302_s20, 4294967280  ;;  %p14_p3 = scmp.ge.s32.totalorder %s528_s21, 4   ;;  %s622_s15 = smov %s465_s16 }
 0x23e   : > { %s623_s16 = smov %s469_s17  ;;  %s624_s17 = smov %s539_s24 }
 0x23f   : > { %s625_s18 = smov %s528_s21  ;;  %16 = sbr.rel (!%p14_p3) target bundleno = 3 (0x3), region = 71 }
 0x246   :  { %306 = vsyncpa [#allocation3], 1 }
 0x247   :  { %308 = vsyncpa [#allocation3 + $0x1], 1 }

// kernel: transformer_forward.9
= control target key start
LH: loop header
LB: loop body
LE: loop exit
PB: predicated region body
PF: predicated region fallthrough
CT: control target
= control target key end

     0   :  { %s4226_s0 = inlined_call_operand.vmem [shape: f32[2,8,32], index: 0, kind: input, shape index: {}]   ;;  %s4227_s1 = inlined_call_operand.vmem [shape: f32[2,8,32], index: 1, kind: input, shape index: {}]   ;;  %s4228_s2 = inlined_call_operand.vmem [shape: f32[1,32], index: 2, kind: input, shape index: {}]   ;;  %s4229_s3 = inlined_call_operand.vmem [shape: f32[1,32], index: 3, kind: input, shape index: {}]   ;;  %s4230_s4 = inlined_call_operand.vmem [shape: bf16[32,32], index: 4, kind: input, shape index: {}]   ;;  %s4231_s5 = inlined_call_operand.vmem [shape: f32[1,32], index: 5, kind: input, shape index: {}]   ;;  %s4232_s6 = inlined_call_operand.vmem [shape: bf16[32,32], index: 6, kind: input, shape index: {}]   ;;  %s4233_s7 = inlined_call_operand.vmem [shape: f32[1,32], index: 7, kind: input, shape index: {}]   ;;  %s4234_s8 = inlined_call_operand.vmem [shape: bf16[32,32], index: 8, kind: input, shape index: {}]   ;;  %s4235_s9 = inlined_call_operand.vmem [shape: f32[1,32], index: 9, kind: input, shape index: {}]   ;;  %s4236_s10 = inlined_call_operand.vmem [shape: bf16[32,32], index: 10, kind: input, shape index: {}]   ;;  %s4237_s11 = inlined_call_operand.vmem [shape: f32[1,32], index: 11, kind: input, shape index: {}]   ;;  %s4238_s12 = inlined_call_operand.vmem [shape: f32[1,32], index: 12, kind: input, shape index: {}]   ;;  %s4239_s13 = inlined_call_operand.vmem [shape: f32[1,32], index: 13, kind: input, shape index: {}]   ;;  %s4240_s14 = inlined_call_operand.vmem [shape: bf16[32,32], index: 14, kind: input, shape index: {}]   ;;  %s4241_s15 = inlined_call_operand.vmem [shape: f32[1,32], index: 15, kind: input, shape index: {}]   ;;  %s4242_s16 = inlined_call_operand.vmem [shape: bf16[32,32], index: 16, kind: input, shape index: {}]   ;;  %s4243_s17 = inlined_call_operand.hbm [shape: f32[1,32], index: 17, kind: input, shape index: {}]   ;;  %s4244_s18 = inlined_call_operand.vmem [shape: bf16[32,32], index: 18, kind: input, shape index: {}]   ;;  %s4245_s19 = inlined_call_operand.hbm [shape: f32[1,32], index: 19, kind: input, shape index: {}]   ;;  %s4246_s20 = inlined_call_operand.vmem [shape: bf16[32,32], index: 20, kind: input, shape index: {}]   ;;  %s4247_s21 = inlined_call_operand.hbm [shape: f32[1,32], index: 21, kind: input, shape index: {}]   ;;  %s4248_s22 = inlined_call_operand.hbm [shape: f32[1,32], index: 22, kind: input, shape index: {}]   ;;  %s4249_s23 = inlined_call_operand.hbm [shape: f32[1,32], index: 23, kind: input, shape index: {}]   ;;  %s4250_s24 = inlined_call_operand.vmem [shape: bf16[32,128], index: 24, kind: input, shape index: {}]   ;;  %s4251_s25 = inlined_call_operand.hbm [shape: f32[1,128], index: 25, kind: input, shape index: {}]   ;;  %s4252_s26 = inlined_call_operand.vmem [shape: bf16[128,32], index: 26, kind: input, shape index: {}]   ;;  %s4253_s27 = inlined_call_operand.hbm [shape: f32[1,32], index: 27, kind: input, shape index: {}]   ;;  %s4254_s28 = inlined_call_operand.vmem [shape: f32[2,8,32], index: 28, kind: output, shape index: {}]  }
   0x1   :  { %4265 = sst [smem:[#allocation18_spill]] %s4226_s0 }
   0x2   :  { %4266 = sst [smem:[#allocation19_spill]] %s4227_s1 }
   0x3   :  { %4267 = sst [smem:[#allocation20_spill]] %s4228_s2 }
   0x4   :  { %4268 = sst [smem:[#allocation21_spill]] %s4229_s3 }
   0x5   :  { %4269 = sst [smem:[#allocation22_spill]] %s4230_s4 }
   0x6   :  { %4270 = sst [smem:[#allocation23_spill]] %s4231_s5 }
   0x7   :  { %4271 = sst [smem:[#allocation24_spill]] %s4232_s6 }
   0x8   :  { %4272 = sst [smem:[#allocation25_spill]] %s4233_s7 }
   0x9   :  { %4273 = sst [smem:[#allocation26_spill]] %s4234_s8 }
   0xa   :  { %4274 = sst [smem:[#allocation27_spill]] %s4235_s9 }
   0xb   :  { %4275 = sst [smem:[#allocation28_spill]] %s4236_s10 }
   0xc   :  { %4276 = sst [smem:[#allocation29_spill]] %s4237_s11 }
   0xd   :  { %4277 = sst [smem:[#allocation30_spill]] %s4238_s12 }
   0xe   :  { %4278 = sst [smem:[#allocation31_spill]] %s4252_s26 }
   0xf   :  { %4279 = sst [smem:[#allocation32_spill]] %s4254_s28 }
  0x10   :  { %33 = vsyncpa [#allocation3], 0 }
  0x11   :  { %34 = vsyncpa [#allocation5], 0 }
  0x12   :  { %35 = vsyncpa [#allocation8], 0 }
  0x13   :  { %36 = vsyncpa [#allocation11], 0  ;;  %s3689_s8 = smov 0  }
  0x14 LB: > { %4280 = sst [smem:[#allocation17_spill]] %s3527_s8  ;;  %s3529_s5 = smov [#allocation4]   ;;  %s3527_s8 = sphi %s3689_s8, %s42_s8  }
  0x15   : > { %s743_s9 = sshll.u32 %s3529_s5, 4  ;;  %s3695_s30 = sadd.s32 4294967295, %s3527_s8   ;;  %s3700_s9 = int_to_ptr.vmem [resolvable:$true] %s743_s9 }
  0x16   : > { %p2813_p0 = scmp.ge.s32.totalorder %s3527_s8, 1  ;;  %p671_p1 = scmp.lt.s32.totalorder %s3527_s8, 3 }
  0x17   : > { %p4261_p2 = scmp.eq.s32.totalorder %s3695_s30, 0  ;;  %s3530_s6 = smov [#allocation7]  }
  0x18   : > { %p3702_p3 = pnand %p2813_p0, %p671_p1  ;;  %s768_s10 = sshll.u32 %s3530_s6, 4  ;;  %s3708_s10 = int_to_ptr.vmem [resolvable:$true] %s768_s10 }
  0x19   : > { %s3531_s0 = smov [#allocation10]   ;;  %s3532_s2 = smov [#allocation2]  }
  0x1a   : > { %s4281_s3 = scalar_select %p3702_p3, 1, 0 }
  0x1b   : > { %p3186_p4 = pneg %p3702_p3  ;;  %s793_s11 = sshll.u32 %s3531_s0, 4  ;;  %s3716_s11 = int_to_ptr.vmem [resolvable:$true] %s793_s11 }
  0x1c   : > { %s729_s7 = sshll.u32 %s3532_s2, 4  ;;  %s3309_s4 = scalar_lea.hbm %s4245_s19, 16  ;;  %s3718_s7 = int_to_ptr.vmem [resolvable:$true] %s729_s7 }
  0x1d   : > { %p3712_p5 = pnand %p4261_p2, %p3186_p4  ;;  %p3310_p6 = scmp.ne.s32.totalorder %s4245_s19, %s3309_s4 }
  0x1e   : > { %p3316_p10 = scmp.lt.u32.totalorder %s3309_s4, %s4245_s19 }
  0x1f   : > { %p3728_p7 = pneg %p3712_p5 }
  0x21   : > { %p3312_p8 = pnand %p3728_p7, %p3310_p6 }
  0x23   : > { %p3313_p9 = pneg %p3312_p8 }
  0x25   : > { %p3318_p11 = pnand %p3316_p10, %p3313_p9 }
  0x27   : > { %3321 = shalt.err (!%p3318_p11)
}
  0x28   : > { %s3322_s12 = scalar_lea.vmem %s3700_s9, 16  ;;  %s3329_s1 = scalar_lea.vmem %s3700_s9, 32 }
  0x29   : > { %p3323_p12 = scmp.ne.s32.totalorder %s3700_s9, %s3322_s12  ;;  %p3330_p1 = scmp.lt.s32.totalorder %s3700_s9, %s3700_s9 }
  0x2a   : > { %p3331_p4 = scmp.lt.s32.totalorder %s3329_s1, %s3322_s12 }
  0x2b   : > { %p3325_p13 = pnand %p3323_p12, %p3728_p7 }
  0x2c   : > { %p3332_p6 = por %p3331_p4, %p3330_p1 }
  0x2d   : > { %p3326_p0 = pneg %p3325_p13 }
  0x2f   : > { %p3333_p8 = pnand %p3332_p6, %p3326_p0 }
  0x31   : > { %3336 = shalt.err (!%p3333_p8)
}
  0x32   : > { %3192 = dma.hbm_to_vmem [thread:$0]  (!%p3712_p5), %s4245_s19, 16, %s3700_s9, [#allocation5]  }
  0x33   : > { %s3337_s2 = scalar_lea.hbm %s4248_s22, 16 }
  0x34   : > { %p3338_p9 = scmp.ne.s32.totalorder %s4248_s22, %s3337_s2  ;;  %p3344_p12 = scmp.lt.u32.totalorder %s3337_s2, %s4248_s22 }
  0x36   : > { %p3340_p10 = pnand %p3338_p9, %p3728_p7 }
  0x38   : > { %p3341_p11 = pneg %p3340_p10 }
  0x3a   : > { %p3346_p13 = pnand %p3344_p12, %p3341_p11 }
  0x3c   : > { %3349 = shalt.err (!%p3346_p13)
}
  0x3d   : > { %s3350_s9 = scalar_lea.vmem %s3708_s10, 16  ;;  %s3357_s26 = scalar_lea.vmem %s3708_s10, 32 }
  0x3e   : > { %p3351_p0 = scmp.ne.s32.totalorder %s3708_s10, %s3350_s9  ;;  %p3358_p6 = scmp.lt.s32.totalorder %s3708_s10, %s3708_s10 }
  0x3f   : > { %p3359_p8 = scmp.lt.s32.totalorder %s3357_s26, %s3350_s9 }
  0x40   : > { %p3353_p1 = pnand %p3351_p0, %p3728_p7 }
  0x41   : > { %p3360_p9 = por %p3359_p8, %p3358_p6 }
  0x42   : > { %p3354_p4 = pneg %p3353_p1 }
  0x44   : > { %p3361_p10 = pnand %p3360_p9, %p3354_p4 }
  0x46   : > { %3364 = shalt.err (!%p3361_p10)
}
  0x47   : > { %3198 = dma.hbm_to_vmem [thread:$0]  (!%p3712_p5), %s4248_s22, 16, %s3708_s10, [#allocation8]  }
  0x48   : > { %s3365_s6 = scalar_lea.hbm %s4251_s25, 16 }
  0x49   : > { %p3366_p11 = scmp.ne.s32.totalorder %s4251_s25, %s3365_s6  ;;  %p3372_p0 = scmp.lt.u32.totalorder %s3365_s6, %s4251_s25 }
  0x4b   : > { %p3368_p12 = pnand %p3366_p11, %p3728_p7 }
  0x4d   : > { %p3369_p13 = pneg %p3368_p12 }
  0x4f   : > { %p3374_p1 = pnand %p3372_p0, %p3369_p13 }
  0x51   : > { %3377 = shalt.err (!%p3374_p1)
}
  0x52   : > { %s3378_s10 = scalar_lea.vmem %s3716_s11, 16  ;;  %s3385_s26 = scalar_lea.vmem %s3716_s11, 32 }
  0x53   : > { %p3379_p4 = scmp.ne.s32.totalorder %s3716_s11, %s3378_s10  ;;  %p3386_p9 = scmp.lt.s32.totalorder %s3716_s11, %s3716_s11 }
  0x54   : > { %p3387_p10 = scmp.lt.s32.totalorder %s3385_s26, %s3378_s10 }
  0x55   : > { %p3381_p6 = pnand %p3379_p4, %p3728_p7 }
  0x56   : > { %p3388_p11 = por %p3387_p10, %p3386_p9 }
  0x57   : > { %p3382_p8 = pneg %p3381_p6 }
  0x59   : > { %p3389_p12 = pnand %p3388_p11, %p3382_p8 }
  0x5b   : > { %3392 = shalt.err (!%p3389_p12)
}
  0x5c   : > { %3204 = dma.hbm_to_vmem [thread:$0]  (!%p3712_p5), %s4251_s25, 16, %s3716_s11, [#allocation11]  }
  0x5d   : > { %s3393_s6 = scalar_lea.hbm %s4243_s17, 16 }
  0x5e   : > { %p3394_p13 = scmp.ne.s32.totalorder %s4243_s17, %s3393_s6  ;;  %p3400_p4 = scmp.lt.u32.totalorder %s3393_s6, %s4243_s17 }
  0x60   : > { %p3396_p0 = pnand %p3394_p13, %p3728_p7 }
  0x62   : > { %p3397_p1 = pneg %p3396_p0 }
  0x64   : > { %p3402_p6 = pnand %p3400_p4, %p3397_p1 }
  0x66   : > { %3405 = shalt.err (!%p3402_p6)
}
  0x67   : > { %s3406_s11 = scalar_lea.vmem %s3718_s7, 16  ;;  %s3413_s10 = scalar_lea.vmem %s3718_s7, 32 }
  0x68   : > { %p3407_p8 = scmp.ne.s32.totalorder %s3718_s7, %s3406_s11  ;;  %p3414_p11 = scmp.lt.s32.totalorder %s3718_s7, %s3718_s7 }
  0x69   : > { %p3415_p12 = scmp.lt.s32.totalorder %s3413_s10, %s3406_s11 }
  0x6a   : > { %p3409_p9 = pnand %p3407_p8, %p3728_p7 }
  0x6b   : > { %p3416_p13 = por %p3415_p12, %p3414_p11 }
  0x6c   : > { %p3410_p10 = pneg %p3409_p9 }
  0x6e   : > { %p3417_p0 = pnand %p3416_p13, %p3410_p10 }
  0x70   : > { %3420 = shalt.err (!%p3417_p0)
}
  0x71   : > { %3189 = dma.hbm_to_vmem [thread:$0]  (!%p3712_p5), %s4243_s17, 16, %s3718_s7, [#allocation3]  }
  0x72   : > { %s3533_s8 = smov [#allocation6]   ;;  %s3534_s5 = smov [#allocation9]  }
  0x73   : > { %s757_s4 = sshll.u32 %s3533_s8, 4  ;;  %s779_s6 = sshll.u32 %s3534_s5, 4  ;;  %s758_s4 = int_to_ptr.vmem [resolvable:$true] %s757_s4  ;;  %s780_s6 = int_to_ptr.vmem [resolvable:$true] %s779_s6 }
  0x74   : > { %s3421_s1 = scalar_lea.hbm %s4247_s21, 16 }
  0x75   : > { %p3422_p1 = scmp.ne.s32.totalorder %s4247_s21, %s3421_s1  ;;  %p3428_p8 = scmp.lt.u32.totalorder %s3421_s1, %s4247_s21 }
  0x77   : > { %p3424_p4 = pnand %p3422_p1, %p3728_p7 }
  0x79   : > { %p3425_p6 = pneg %p3424_p4 }
  0x7b   : > { %p3430_p9 = pnand %p3428_p8, %p3425_p6 }
  0x7d   : > { %3433 = shalt.err (!%p3430_p9)
}
  0x7e   : > { %s3434_s7 = scalar_lea.vmem %s758_s4, 16  ;;  %s3441_s28 = scalar_lea.vmem %s758_s4, 32 }
  0x7f   : > { %p3435_p10 = scmp.ne.s32.totalorder %s758_s4, %s3434_s7  ;;  %p3442_p13 = scmp.lt.s32.totalorder %s758_s4, %s758_s4 }
  0x80   : > { %p3443_p0 = scmp.lt.s32.totalorder %s3441_s28, %s3434_s7 }
  0x81   : > { %p3437_p11 = pnand %p3435_p10, %p3728_p7 }
  0x82   : > { %p3444_p2 = por %p3443_p0, %p3442_p13 }
  0x83   : > { %p3438_p12 = pneg %p3437_p11 }
  0x85   : > { %p3445_p3 = pnand %p3444_p2, %p3438_p12 }
  0x87   : > { %3448 = shalt.err (!%p3445_p3)
}
  0x88   : > { %3195 = dma.hbm_to_vmem [thread:$0]  (!%p3712_p5), %s4247_s21, 16, %s758_s4, [#allocation5]  }
  0x89   : > { %s3449_s1 = scalar_lea.hbm %s4249_s23, 16 }
  0x8a   : > { %p3450_p1 = scmp.ne.s32.totalorder %s4249_s23, %s3449_s1  ;;  %p3456_p3 = scmp.lt.u32.totalorder %s3449_s1, %s4249_s23 }
  0x8c   : > { %p3452_p4 = pnand %p3450_p1, %p3728_p7 }
  0x8e   : > { %p3453_p2 = pneg %p3452_p4 }
  0x90   : > { %p3458_p6 = pnand %p3456_p3, %p3453_p2 }
  0x92   : > { %3461 = shalt.err (!%p3458_p6)
}
  0x93   : > { %s3462_s7 = scalar_lea.vmem %s780_s6, 16  ;;  %s3469_s4 = scalar_lea.vmem %s780_s6, 32 }
  0x94   : > { %p3463_p8 = scmp.ne.s32.totalorder %s780_s6, %s3462_s7  ;;  %p3470_p11 = scmp.lt.s32.totalorder %s780_s6, %s780_s6 }
  0x95   : > { %p3471_p12 = scmp.lt.s32.totalorder %s3469_s4, %s3462_s7 }
  0x96   : > { %p3465_p9 = pnand %p3463_p8, %p3728_p7 }
  0x97   : > { %p3472_p13 = por %p3471_p12, %p3470_p11 }
  0x98   : > { %p3466_p10 = pneg %p3465_p9 }
  0x9a   : > { %p3473_p0 = pnand %p3472_p13, %p3466_p10 }
  0x9c   : > { %3476 = shalt.err (!%p3473_p0)
}
  0x9d   : > { %3201 = dma.hbm_to_vmem [thread:$0]  (!%p3712_p5), %s4249_s23, 16, %s780_s6, [#allocation8]  }
  0x9e   : > { %s3535_s5 = smov [#allocation12]   ;;  %s3477_s9 = scalar_lea.hbm %s4253_s27, 16 }
  0x9f   : > { %s807_s2 = sshll.u32 %s3535_s5, 4  ;;  %p3478_p1 = scmp.ne.s32.totalorder %s4253_s27, %s3477_s9  ;;  %s808_s2 = int_to_ptr.vmem [resolvable:$true] %s807_s2 }
  0xa0   : > { %p3484_p3 = scmp.lt.u32.totalorder %s3477_s9, %s4253_s27 }
  0xa1   : > { %p3480_p4 = pnand %p3478_p1, %p3728_p7 }
  0xa3   : > { %p3481_p2 = pneg %p3480_p4 }
  0xa5   : > { %p3486_p6 = pnand %p3484_p3, %p3481_p2 }
  0xa7   : > { %3489 = shalt.err (!%p3486_p6)
}
  0xa8   : > { %s3490_s6 = scalar_lea.vmem %s808_s2, 16  ;;  %s3497_s4 = scalar_lea.vmem %s808_s2, 32 }
  0xa9   : > { %p3491_p8 = scmp.ne.s32.totalorder %s808_s2, %s3490_s6  ;;  %p3498_p11 = scmp.lt.s32.totalorder %s808_s2, %s808_s2 }
  0xaa   : > { %p3499_p12 = scmp.lt.s32.totalorder %s3497_s4, %s3490_s6 }
  0xab   : > { %p3493_p9 = pnand %p3491_p8, %p3728_p7 }
  0xac   : > { %p3500_p13 = por %p3499_p12, %p3498_p11 }
  0xad   : > { %p3494_p10 = pneg %p3493_p9 }
  0xaf   : > { %p3501_p0 = pnand %p3500_p13, %p3494_p10 }
  0xb1   : > { %3504 = shalt.err (!%p3501_p0)
}
  0xb2   : > { %3207 = dma.hbm_to_vmem [thread:$0]  (!%p3712_p5), %s4253_s27, 16, %s808_s2, [#allocation11]  }
  0xb3   : > { %p4284_p1 = scmp.ne.s32.totalorder %s4281_s3, 0 }
  0xb4   : > { %p4285_p4 = scmp.eq.s32.totalorder (!%p4284_p1), %s3695_s30, 0 }
  0xb5   : > { %834 = sbr.rel (%p4284_p1) target bundleno = 4523 (0x11ab), region = 132 }
  0xbc   : > { %3510 = dma.done.wait (%p4285_p4), [#allocation3], 16   ;;  %p4286_p7 = pmov %p4285_p4 }
  0xbd   : > { %p4287_p2 = pmov %p4285_p4 }
  0xbe   : > { %3512 = vsyncadd (%p4286_p7), [#allocation3], 4294967280 }
  0xbf   : > { %3514 = dma.done.wait (%p4287_p2), [#allocation5], 32   ;;  %p4288_p3 = pmov %p4287_p2 }
  0xc0   : > { %p4289_p6 = pmov %p4287_p2 }
  0xc1   : > { %3516 = vsyncadd (%p4288_p3), [#allocation5], 4294967264 }
  0xc2   : > { %3518 = dma.done.wait (%p4289_p6), [#allocation8], 32   ;;  %p4290_p5 = pmov %p4287_p2 }
  0xc3   : > { %p4291_p8 = pmov %p4287_p2 }
  0xc4   : > { %3520 = vsyncadd (%p4290_p5), [#allocation8], 4294967264 }
  0xc5   : > { %3522 = dma.done.wait (%p4291_p8), [#allocation11], 32   ;;  %p4292_p9 = pmov %p4287_p2 }
  0xc6   : > { %p934_p10 = scmp.lt.s32.totalorder %s3695_s30, 1  ;;  %s4293_s5 = sld [smem:[#allocation18_spill]]  ;;  %vm1017_vm0 = vcmask 261120   ;;  %v3536_v8 = vmov 0.0   ;;  %vm3537_vm1 = vmmov 0   ;;  %vm1227_vm2 = vcmask 64512  }
  0xc7   : > { %3524 = vsyncadd (%p4292_p9), [#allocation11], 4294967264  ;;  %s4294_s1 = sld [smem:[#allocation22_spill]]  ;;  %2970 = vmatprep.subr.bf16.mxu0 %v3536_v8  ;;  %2994 = vmatprep.subr.bf16.mxu1 %v3536_v8  ;;  %s4295_s7 = sld [smem:[#allocation20_spill]]  ;;  %vm1296_vm3 = vcmask 1043456   ;;  %v1275_v56 = vlaneseq  ;;  %vm1692_vm5 = vcmask 130048  }
  0xc8   : > { %s4312_s30 = smov (!%p934_p10, %s3695_s30), 1  ;;  %2974 = vmatprep.mubr.msk.bf16.mxu0 %vm3537_vm1, %v3536_v8  ;;  %2996 = vmatprep.mubr.msk.bf16.mxu1 %vm3537_vm1, %v3536_v8  ;;  %s4296_s28 = sld [smem:[#allocation21_spill]]  ;;  %vm1694_vm6 = vcmask 195584  }
  0xc9   : > { %s3896_s3 = sshll.u32 %s4312_s30, 3  ;;  %s4297_s0 = sld [smem:[#allocation24_spill]]  ;;  %v1276_v57 = vshrl.u32 %v1275_v56, 7  ;;  %v1278_v58 = vand.u32 127, %v1275_v56 }
  0xca   : > { %s4298_s9 = sld [smem:[#allocation26_spill]]  ;;  %s4299_s6 = sld [smem:[#allocation25_spill]] }
  0xcb   : > { %s4300_s8 = sld [smem:[#allocation23_spill]]  ;;  %s3538_s29 = smov 112   ;;  %vm1279_vm4 = vcmp.le.s32.totalorder %v1278_v58, %v1276_v57 }
  0xcc   : > { %s937_s2 = scalar_lea.vmem %s4293_s5, %s3896_s3  ;;  %s3539_s5 = smov 120  }
  0xcd   : > { %v1015_v0 = vld [vmem:[%s937_s2] sm:$0xff]  ;;  %v3246_v9 = vld [vmem:[%s4294_s1 + $0x8] sm:$0xff]   ;;  %s4301_s30 = sld [smem:[#allocation27_spill]]  ;;  %s3540_s11 = smov 104  }
  0xce   : > { %v1018_v1 = vsel %vm1017_vm0, %v1015_v0, 0.0  ;;  %v3245_v7 = vld [vmem:[%s4294_s1] sm:$0xff]   ;;  %s4264_s4 = smov 16   ;;  %s4263_s2 = smov 24  }
  0xcf   : > { %1019 = vadd.xlane.f32.xlu0 %v1018_v1  ;;  %2971 = vmatpush3.bf16.msra.mxu0 %v3245_v7  ;;  %v2833_v14 = vld [vmem:[%s4295_s7] ss:$0 sm:$0xff]  ;;  %v3248_v21 = vld [vmem:[%s4297_s0 + $0x8] sm:$0xff]   ;;  %s4302_s7 = sld [smem:[#allocation28_spill]]  ;;  %s4303_s10 = sld [smem:[#allocation29_spill]] }
  0xd0   : > { %2972 = vmatprep.subr.bf16.mxu0 %v3536_v8  ;;  %v2834_v16 = vld [vmem:[%s4296_s28] ss:$0 sm:$0xff]  ;;  %v3250_v23 = vld [vmem:[%s4298_s9 + $0x8] sm:$0xff]   ;;  %s4307_s28 = smov 24  }
  0xd1   : > { %v3247_v19 = vld [vmem:[%s4297_s0] sm:$0xff]  }
  0xd2   : > { %v3249_v22 = vld [vmem:[%s4298_s9] sm:$0xff]  }
  0xd3   : > { %2973 = vmatpush3.bf16.msra.mxu0 %v3246_v9  ;;  %v2839_v28 = vld [vmem:[%s4299_s6] ss:$0 sm:$0xff]  ;;  %s3541_s6 = smov 8  }
  0xd4   : > { %2978 = vmatprep.subr.bf16.mxu0 %v3536_v8  ;;  %v2835_v29 = vld [vmem:[%s4300_s8] ss:$0 sm:$0xff]  ;;  %s4304_s8 = sld [smem:[#allocation19_spill]] }
  0xd5   : > { %v2843_v38 = vld [vmem:[%s4301_s30] ss:$0 sm:$0xff]  ;;  %s4305_s30 = sld [smem:[#allocation30_spill]] }
  0xda   : > { %s941_s12 = scalar_lea.vmem %s4304_s8, %s3896_s3 }
 0x15c   : > { %v1020_v2 = vpop.xlane.xlu0 %1019 }
 0x15d   : > { %v1022_v3 = vmul.f32 0.03125, %v1020_v2 }
 0x15f   : > { %v1023_v4 = vsub.f32 %v1015_v0, %v1022_v3 }
 0x161   : > { %v1024_v5 = vmul.f32 %v1023_v4, %v1023_v4 }
 0x163   : > { %v1025_v6 = vsel %vm1017_vm0, %v1024_v5, 0.0 }
 0x164   : > { %1026 = vadd.xlane.f32.xlu0 %v1025_v6 }
 0x1f1   : > { %v1027_v10 = vpop.xlane.xlu0 %1026 }
 0x1f2   : > { %v1028_v11 = vmul.f32 0.03125, %v1027_v10 }
 0x1f4   : > { %v1029_v12 = vadd.f32 1e-05, %v1028_v11 }
 0x1f6   : > { %3271 = vrsqrt.f32 %v1029_v12 }
 0x200   : > { %v3272_v13 = vpop.eup %3271 }
 0x201   : > { %v1031_v15 = vmul.f32 %v3272_v13, %v1023_v4 }
 0x203   : > { %v1038_v17 = vmul.f32 %v2833_v14, %v1031_v15 }
 0x205   : > { %v3924_v18 = vadd.f32 %v2834_v16, %v1038_v17 }
 0x207   : > { %v1046_v20 = vpack.c.bf16 %v3924_v18, %v3924_v18 }
 0x209   : > { %2975 = vmatmul.mubr.msk.bf16.vlgmr.msra.gmra.mrb[0].mxu0 %vm1017_vm0, %v1046_v20 }
 0x20a   : > { %2979 = vmatpush3.bf16.msra.mxu0 %v3247_v19  ;;  %2982 = vmatprep.mubr.msk.bf16.mxu0 %vm3537_vm1, %v3536_v8 }
 0x20b   : > { %2980 = vmatprep.subr.bf16.mxu0 %v3536_v8 }
 0x20e   : > { %2981 = vmatpush3.bf16.msra.mxu0 %v3248_v21 }
 0x20f   : > { %2986 = vmatprep.subr.bf16.mxu0 %v3536_v8 }
 0x211   : > { %2983 = vmatmul.mubr.msk.bf16.vlgmr.msra.gmra.mrb[4].mxu0 %vm1017_vm0, %v1046_v20 }
 0x212   : > { %2987 = vmatpush3.bf16.msra.mxu0 %v3249_v22  ;;  %2990 = vmatprep.mubr.msk.bf16.mxu0 %vm3537_vm1, %v3536_v8 }
 0x213   : > { %2988 = vmatprep.subr.bf16.mxu0 %v3536_v8 }
 0x216   : > { %2989 = vmatpush3.bf16.msra.mxu0 %v3250_v23 }
 0x217   : > { %3000 = vmatprep.subr.bf16.mxu0 %v3536_v8 }
 0x219   : > { %2991 = vmatmul.mubr.msk.bf16.vlgmr.msra.gmra.mrb[8].mxu0 %vm1017_vm0, %v1046_v20 }
 0x21a   : > { %3002 = vmatprep.mubr.msk.bf16.mxu0 %vm3537_vm1, %v3536_v8 }
 0x2dc   : > { %v1102_v24 = vpop.f32.mrb[0].mxu0 }
 0x2dd   : > { %v2976_v25 = vpop.f32.mrb[1].mxu0  ;;  %v1103_v34 = vadd.f32 %v2835_v29, %v1102_v24 }
 0x2de   : > { %v1105_v26 = vpop.f32.mrb[2].mxu0 }
 0x2df   : > { %v2977_v27 = vpop.f32.mrb[3].mxu0  ;;  %v1224_v39 = vpack.c.bf16 %v1103_v34, %v1103_v34 }
 0x2e4   : > { %v1160_v30 = vpop.f32.mrb[4].mxu0 }
 0x2e5   : > { %v1161_v31 = vadd.f32 %v2839_v28, %v1160_v30  ;;  %v2984_v32 = vpop.f32.mrb[5].mxu0 }
 0x2e6   : > { %v1163_v33 = vpop.f32.mrb[6].mxu0 }
 0x2e7   : > { %v1225_v35 = vpack.c.bf16 %v1161_v31, %v1161_v31  ;;  %v2985_v36 = vpop.f32.mrb[7].mxu0 }
 0x2e9   : > { %1457 = vrot.lane.b32.xlu0 %v1225_v35, %s3538_s29  ;;  %1344 = vrot.lane.b32.xlu1 %v1225_v35, %s3539_s5  ;;  %v1232_v37 = vsel %vm1227_vm2, %v1225_v35, 0 }
 0x2ea   : > { %2995 = vmatpush3.bf16.xpose.msra.mxu1 %v1232_v37 }
 0x2eb   : > { %3006 = vmatprep.subr.bf16.mxu1 %v3536_v8 }
 0x2ec   : > { %v1218_v40 = vpop.f32.mrb[8].mxu0 }
 0x2ed   : > { %v1219_v41 = vadd.f32 %v2843_v38, %v1218_v40  ;;  %1341 = vrot.lane.b32.xlu1 %v1224_v39, %s3539_s5  ;;  %v2992_v42 = vpop.f32.mrb[9].mxu0 }
 0x2ee   : > { %v1221_v43 = vpop.f32.mrb[10].mxu0 }
 0x2ef   : > { %v3967_v44 = vpack.c.bf16 %v1219_v41, %v1219_v41  ;;  %v2993_v45 = vpop.f32.mrb[11].mxu0 }
 0x2f1   : > { %1455 = vrot.lane.b32.xlu1 %v1224_v39, %s3538_s29  ;;  %2997 = vmatmul.mubr.msk.bf16.vlgmr.msra.gmra.mrb[0].mxu1 %vm1227_vm2, %v1224_v39  ;;  %v1298_v46 = vsel %vm1296_vm3, %v3967_v44, 0 }
 0x2f2   : > { %3001 = vmatpush3.bf16.msra.mxu0 %v1298_v46  ;;  %3008 = vmatprep.mubr.msk.bf16.mxu1 %vm3537_vm1, %v3536_v8 }
 0x2f3   : > { %3012 = vmatprep.subr.bf16.mxu0 %v3536_v8 }
 0x2f5   : > { %1569 = vrot.lane.b32.xlu1 %v1225_v35, %s3540_s11 }
 0x2f9   : > { %1567 = vrot.lane.b32.xlu1 %v1224_v39, %s3540_s11 }
 0x35b   : > { %v1345_v47 = vpop.permute.xlu1 %1344  ;;  %v1458_v50 = vpop.permute.xlu0 %1457 }
 0x35c   : > { %v1350_v48 = vsel %vm1227_vm2, %v1345_v47, 0  ;;  %v1463_v52 = vsel %vm1227_vm2, %v1458_v50, 0 }
 0x35d   : > { %3007 = vmatpush3.bf16.xpose.msra.mxu1 %v1350_v48 }
 0x35e   : > { %3018 = vmatprep.subr.bf16.mxu1 %v3536_v8 }
 0x35f   : > { %v1342_v49 = vpop.permute.xlu1 %1341 }
 0x363   : > { %v1456_v51 = vpop.permute.xlu1 %1455 }
 0x364   : > { %3009 = vmatmul.mubr.msk.bf16.vlgmr.msra.gmra.mrb[4].mxu1 %vm1227_vm2, %v1342_v49 }
 0x365   : > { %3019 = vmatpush3.bf16.xpose.msra.mxu1 %v1463_v52  ;;  %3020 = vmatprep.mubr.msk.bf16.mxu1 %vm3537_vm1, %v3536_v8 }
 0x366   : > { %3030 = vmatprep.subr.bf16.mxu1 %v3536_v8 }
 0x367   : > { %v1570_v53 = vpop.permute.xlu1 %1569 }
 0x368   : > { %v1575_v54 = vsel %vm1227_vm2, %v1570_v53, 0 }
 0x36b   : > { %v1568_v55 = vpop.permute.xlu1 %1567 }
 0x36c   : > { %3021 = vmatmul.mubr.msk.bf16.vlgmr.msra.gmra.mrb[8].mxu1 %vm1227_vm2, %v1456_v51 }
 0x36d   : > { %3031 = vmatpush3.bf16.xpose.msra.mxu1 %v1575_v54  ;;  %3032 = vmatprep.mubr.msk.bf16.mxu1 %vm3537_vm1, %v3536_v8 }
 0x36e   : > { %3042 = vmatprep.subr.bf16.mxu1 %v3536_v8 }
 0x374   : > { %3033 = vmatmul.mubr.msk.bf16.vlgmr.msra.gmra.mrb[12].mxu1 %vm1227_vm2, %v1568_v55 }
 0x375   : > { %3046 = vmatprep.mubr.msk.bf16.mxu1 %vm3537_vm1, %v3536_v8 }
 0x3c4   : > { %v1268_v59 = vpop.f32.mrb[0].mxu1 }
 0x3c5   : > { %v1274_v60 = vmul.f32 0.35355338, %v1268_v59  ;;  %v2998_v61 = vpop.f32.mrb[1].mxu1 }
 0x3c6   : > { %v1271_v62 = vpop.f32.mrb[2].mxu1 }
 0x3c7   : > { %v2999_v63 = vpop.f32.mrb[3].mxu1  ;;  %v1280_v0 = vsel %vm1279_vm4, %v1274_v60, -inf }
 0x3c8   : > { %v1281_v1 = vsel %vm1227_vm2, %v1280_v0, -inf }
 0x3c9   : > { %1282 = vmax.xlane.f32.xlu1 %v1281_v1 }
 0x437   : > { %v1386_v2 = vpop.f32.mrb[4].mxu1 }
 0x438   : > { %v1392_v3 = vmul.f32 0.35355338, %v1386_v2  ;;  %v3010_v4 = vpop.f32.mrb[5].mxu1 }
 0x439   : > { %v1389_v5 = vpop.f32.mrb[6].mxu1 }
 0x43a   : > { %v3011_v6 = vpop.f32.mrb[7].mxu1  ;;  %v1393_v7 = vsel %vm1279_vm4, %v1392_v3, -inf }
 0x43b   : > { %v1394_v9 = vsel %vm1227_vm2, %v1393_v7, -inf }
 0x43c   : > { %1395 = vmax.xlane.f32.xlu0 %v1394_v9 }
 0x43f   : > { %v1499_v10 = vpop.f32.mrb[8].mxu1 }
 0x440   : > { %v1505_v11 = vmul.f32 0.35355338, %v1499_v10  ;;  %v3022_v12 = vpop.f32.mrb[9].mxu1 }
 0x441   : > { %v1502_v13 = vpop.f32.mrb[10].mxu1 }
 0x442   : > { %v3023_v14 = vpop.f32.mrb[11].mxu1  ;;  %v1506_v15 = vsel %vm1279_vm4, %v1505_v11, -inf }
 0x443   : > { %v1507_v16 = vsel %vm1227_vm2, %v1506_v15, -inf }
 0x444   : > { %1508 = vmax.xlane.f32.xlu1 %v1507_v16 }
 0x447   : > { %v1611_v17 = vpop.f32.mrb[12].mxu1 }
 0x448   : > { %v1617_v19 = vmul.f32 0.35355338, %v1611_v17  ;;  %v3034_v20 = vpop.f32.mrb[13].mxu1  ;;  %v3252_v17 = vld [vmem:[%s4302_s7 + $0x8] sm:$0xff]  }
 0x449   : > { %v1614_v21 = vpop.f32.mrb[14].mxu1 }
 0x44a   : > { %v3035_v22 = vpop.f32.mrb[15].mxu1  ;;  %v1618_v23 = vsel %vm1279_vm4, %v1617_v19, -inf }
 0x44b   : > { %v1619_v24 = vsel %vm1227_vm2, %v1618_v23, -inf }
 0x44c   : > { %1620 = vmax.xlane.f32.xlu1 %v1619_v24 }
 0x456   : > { %v1283_v25 = vpop.xlane.xlu1 %1282 }
 0x457   : > { %v1284_v26 = vsub.f32 %v1280_v0, %v1283_v25 }
 0x459   : > { %v1285_v27 = vmul.f32 1.442695, %v1284_v26 }
 0x45b   : > { %3273 = vpow2.f32 %v1285_v27 }
 0x465   : > { %v3274_v28 = vpop.eup %3273 }
 0x466   : > { %v1287_v29 = vsel %vm1227_vm2, %v3274_v28, 0.0 }
 0x467   : > { %1288 = vadd.xlane.f32.xlu0 %v1287_v29 }
 0x4c9   : > { %v1396_v30 = vpop.xlane.xlu0 %1395 }
 0x4ca   : > { %v1397_v31 = vsub.f32 %v1393_v7, %v1396_v30  ;;  %v3251_v7 = vld [vmem:[%s4302_s7] sm:$0xff]  }
 0x4cb   : > { %3043 = vmatpush3.bf16.msra.mxu1 %v3251_v7  ;;  %v2855_v30 = vld [vmem:[%s4303_s10] ss:$0 sm:$0xff] }
 0x4cc   : > { %v1398_v32 = vmul.f32 1.442695, %v1397_v31  ;;  %3044 = vmatprep.subr.bf16.mxu1 %v3536_v8 }
 0x4ce   : > { %3275 = vpow2.f32 %v1398_v32 }
 0x4cf   : > { %3045 = vmatpush3.bf16.msra.mxu1 %v3252_v17 }
 0x4d0   : > { %3058 = vmatprep.subr.bf16.mxu1 %v3536_v8 }
 0x4d1   : > { %v1509_v33 = vpop.xlane.xlu1 %1508 }
 0x4d2   : > { %v1510_v34 = vsub.f32 %v1506_v15, %v1509_v33 }
 0x4d4   : > { %v1511_v35 = vmul.f32 1.442695, %v1510_v34 }
 0x4d6   : > { %3277 = vpow2.f32 %v1511_v35 }
 0x4d8   : > { %v3276_v36 = vpop.eup %3275 }
 0x4d9   : > { %v1400_v37 = vsel %vm1227_vm2, %v3276_v36, 0.0  ;;  %v1621_v41 = vpop.xlane.xlu1 %1620 }
 0x4da   : > { %1401 = vadd.xlane.f32.xlu1 %v1400_v37  ;;  %v1622_v42 = vsub.f32 %v1618_v23, %v1621_v41 }
 0x4dc   : > { %v1623_v43 = vmul.f32 1.442695, %v1622_v42 }
 0x4e0   : > { %v3278_v38 = vpop.eup %3277 }
 0x4e1   : > { %v1513_v39 = vsel %vm1227_vm2, %v3278_v38, 0.0 }
 0x4e2   : > { %1514 = vadd.xlane.f32.xlu0 %v1513_v39 }
 0x4eb   : > { %1519 = vrot.lane.b32.xlu1 %v3967_v44, %s3538_s29 }
 0x4f4   : > { %v1289_v40 = vpop.xlane.xlu0 %1288 }
 0x4f5   : > { %3279 = vrcp.f32 %v1289_v40 }
 0x4f6   : > { %3281 = vpow2.f32 %v1623_v43  ;;  %v3253_v43 = vld [vmem:[%s4242_s16] sm:$0xff]  }
 0x4f8   : > { %1407 = vrot.lane.b32.xlu0 %v3967_v44, %s3539_s5 }
 0x4ff   : > { %v3280_v45 = vpop.eup %3279 }
 0x500   : > { %v1291_v46 = vmul.f32 %v3280_v45, %v3274_v28  ;;  %v3282_v48 = vpop.eup %3281  ;;  %v1016_v45 = vld [vmem:[%s941_s12] sm:$0xff] }
 0x501   : > { %v1625_v49 = vsel %vm1227_vm2, %v3282_v48, 0.0 }
 0x502   : > { %v1292_v47 = vpack.c.bf16 %v1291_v46, %v1291_v46  ;;  %v1848_v46 = vpack.c.bf16 %v1016_v45, %v1016_v45 }
 0x504   : > { %3003 = vmatmul.mubr.msk.bf16.vlgmr.msra.gmra.mrb[12].mxu0 %vm1227_vm2, %v1292_v47  ;;  %v3255_v47 = vld [vmem:[%s4240_s14] sm:$0xff]  }
 0x505   : > { %3014 = vmatprep.mubr.msk.bf16.mxu0 %vm3537_vm1, %v3536_v8 }
 0x50f   : > { %1626 = vadd.xlane.f32.xlu1 %v1625_v49 }
 0x520   : > { %1631 = vrot.lane.b32.xlu1 %v3967_v44, %s3540_s11 }
 0x567   : > { %v1402_v50 = vpop.xlane.xlu1 %1401 }
 0x568   : > { %3283 = vrcp.f32 %v1402_v50 }
 0x56b   : > { %v1520_v56 = vpop.permute.xlu1 %1519 }
 0x56c   : > { %v1525_v58 = vsel %vm1296_vm3, %v1520_v56, 0 }
 0x56f   : > { %v1515_v51 = vpop.xlane.xlu0 %1514 }
 0x570   : > { %3285 = vrcp.f32 %v1515_v51 }
 0x572   : > { %v3284_v52 = vpop.eup %3283 }
 0x573   : > { %v1404_v53 = vmul.f32 %v3284_v52, %v3276_v36  ;;  %v1408_v54 = vpop.permute.xlu0 %1407 }
 0x574   : > { %v1413_v55 = vsel %vm1296_vm3, %v1408_v54, 0 }
 0x575   : > { %3013 = vmatpush3.bf16.msra.mxu0 %v1413_v55  ;;  %v1405_v57 = vpack.c.bf16 %v1404_v53, %v1404_v53  ;;  %v2859_v53 = vld [vmem:[%s4305_s30] ss:$0 sm:$0xff] }
 0x576   : > { %3024 = vmatprep.subr.bf16.mxu0 %v3536_v8  ;;  %v2860_v55 = vld [vmem:[%s4239_s13] ss:$0 sm:$0xff] }
 0x578   : > { %3015 = vmatmul.mubr.msk.bf16.vlgmr.msra.gmra.mrb[16].mxu0 %vm1227_vm2, %v1405_v57 }
 0x579   : > { %3025 = vmatpush3.bf16.msra.mxu0 %v1525_v58  ;;  %3026 = vmatprep.mubr.msk.bf16.mxu0 %vm3537_vm1, %v3536_v8 }
 0x57a   : > { %v3286_v44 = vpop.eup %3285  ;;  %3036 = vmatprep.subr.bf16.mxu0 %v3536_v8 }
 0x57b   : > { %v1517_v59 = vmul.f32 %v3286_v44, %v3278_v38  ;;  %v2865_v44 = vld [vmem:[#allocation2] ss:$0 sm:$0xff] }
 0x57d   : > { %v1518_v60 = vpack.c.bf16 %v1517_v59, %v1517_v59 }
 0x580   : > { %3027 = vmatmul.mubr.msk.bf16.vlgmr.msra.gmra.mrb[20].mxu0 %vm1227_vm2, %v1518_v60 }
 0x581   : > { %3038 = vmatprep.mubr.msk.bf16.mxu0 %vm3537_vm1, %v3536_v8 }
 0x59c   : > { %v1627_v61 = vpop.xlane.xlu1 %1626 }
 0x59d   : > { %3287 = vrcp.f32 %v1627_v61 }
 0x5a0   : > { %v1632_v62 = vpop.permute.xlu1 %1631 }
 0x5a1   : > { %v1637_v63 = vsel %vm1296_vm3, %v1632_v62, 0 }
 0x5a2   : > { %3037 = vmatpush3.bf16.msra.mxu0 %v1637_v63 }
 0x5a3   : > { %3050 = vmatprep.subr.bf16.mxu0 %v3536_v8 }
 0x5a7   : > { %v3288_v0 = vpop.eup %3287 }
 0x5a8   : > { %v1629_v1 = vmul.f32 %v3288_v0, %v3282_v48  ;;  %v3256_v48 = vld [vmem:[%s4240_s14 + $0x8] sm:$0xff]  }
 0x5aa   : > { %v1630_v2 = vpack.c.bf16 %v1629_v1, %v1629_v1 }
 0x5ac   : > { %3039 = vmatmul.mubr.msk.bf16.vlgmr.msra.gmra.mrb[24].mxu0 %vm1227_vm2, %v1630_v2  ;;  %v2861_v2 = vld [vmem:[%s4241_s15] ss:$0 sm:$0xff] }
 0x5ad   : > { %3054 = vmatprep.mubr.msk.bf16.mxu0 %vm3537_vm1, %v3536_v8  ;;  %3051 = vmatpush3.bf16.msra.mxu0 %v3255_v47 }
 0x5ae   : > { %3052 = vmatprep.subr.bf16.mxu0 %v3536_v8 }
 0x5b1   : > { %3053 = vmatpush3.bf16.msra.mxu0 %v3256_v48 }
 0x5b2   : > { %3066 = vmatprep.subr.bf16.mxu0 %v3536_v8 }
 0x5d7   : > { %v1334_v3 = vpop.f32.mrb[12].mxu0 }
 0x5d8   : > { %v3004_v4 = vpop.f32.mrb[13].mxu0 }
 0x5d9   : > { %v1337_v5 = vpop.f32.mrb[14].mxu0 }
 0x5da   : > { %v3005_v6 = vpop.f32.mrb[15].mxu0 }
 0x64b   : > { %v1449_v9 = vpop.f32.mrb[16].mxu0 }
 0x64c   : > { %1680 = vrot.lane.b32.xlu0 %v1449_v9, %s3541_s6  ;;  %v3016_v10 = vpop.f32.mrb[17].mxu0 }
 0x64d   : > { %v1452_v11 = vpop.f32.mrb[18].mxu0 }
 0x64e   : > { %v3017_v12 = vpop.f32.mrb[19].mxu0 }
 0x64f   : > { %v3257_v12 = vld [vmem:[%s4244_s18] sm:$0xff]  }
 0x653   : > { %v1561_v13 = vpop.f32.mrb[20].mxu0 }
 0x654   : > { %1684 = vrot.lane.b32.xlu1 %v1561_v13, %s4264_s4  ;;  %v3028_v14 = vpop.f32.mrb[21].mxu0  ;;  %v3258_v13 = vld [vmem:[%s4244_s18 + $0x8] sm:$0xff]  }
 0x655   : > { %v1564_v15 = vpop.f32.mrb[22].mxu0 }
 0x656   : > { %v3029_v16 = vpop.f32.mrb[23].mxu0 }
 0x67f   : > { %v1673_v19 = vpop.f32.mrb[24].mxu0 }
 0x680   : > { %1688 = vrot.lane.b32.xlu0 %v1673_v19, %s4263_s2  ;;  %v3040_v20 = vpop.f32.mrb[25].mxu0 }
 0x681   : > { %v1676_v21 = vpop.f32.mrb[26].mxu0 }
 0x682   : > { %v3041_v22 = vpop.f32.mrb[27].mxu0 }
 0x6be   : > { %v1681_v23 = vpop.permute.xlu0 %1680 }
 0x6bf   : > { %v1691_v25 = vsel %vm1227_vm2, %v1334_v3, %v1681_v23 }
 0x6c6   : > { %v1685_v24 = vpop.permute.xlu1 %1684 }
 0x6c7   : > { %v1693_v26 = vsel %vm1692_vm5, %v1691_v25, %v1685_v24 }
 0x6f2   : > { %v1689_v27 = vpop.permute.xlu0 %1688 }
 0x6f3   : > { %v1695_v28 = vsel %vm1694_vm6, %v1693_v26, %v1689_v27 }
 0x6f4   : > { %v1696_v29 = vpack.c.bf16 %v1695_v28, %v1695_v28 }
 0x6f6   : > { %3047 = vmatmul.mubr.msk.bf16.vlgmr.msra.gmra.mrb[16].mxu1 %vm1017_vm0, %v1696_v29 }
 0x6f7   : > { %3062 = vmatprep.mubr.msk.bf16.mxu1 %vm3537_vm1, %v3536_v8  ;;  %3059 = vmatpush3.bf16.msra.mxu1 %v3253_v43 }
 0x6f8   : > { %3060 = vmatprep.subr.bf16.mxu1 %v3536_v8 }
 0x7c9   : > { %v1752_v31 = vpop.f32.mrb[16].mxu1 }
 0x7ca   : > { %v1753_v32 = vadd.f32 %v2855_v30, %v1752_v31  ;;  %v3048_v33 = vpop.f32.mrb[17].mxu1 }
 0x7cb   : > { %v1755_v34 = vpop.f32.mrb[18].mxu1 }
 0x7cc   : > { %v3049_v35 = vpop.f32.mrb[19].mxu1  ;;  %v1758_v36 = vadd.f32 %v1753_v32, %v3924_v18  ;;  %v3254_v18 = vld [vmem:[%s4242_s16 + $0x8] sm:$0xff]  }
 0x7cd   : > { %3061 = vmatpush3.bf16.msra.mxu1 %v3254_v18 }
 0x7ce   : > { %v1759_v37 = vsel %vm1017_vm0, %v1758_v36, 0.0  ;;  %3074 = vmatprep.subr.bf16.mxu1 %v3536_v8 }
 0x7cf   : > { %1760 = vadd.xlane.f32.xlu1 %v1759_v37 }
 0x7d0   : > { %3063 = vmatmul.mubr.msk.bf16.vlgmr.msra.gmra.mrb[20].mxu1 %vm1017_vm0, %v1848_v46 }
 0x7d1   : > { %3076 = vmatprep.mubr.msk.bf16.mxu1 %vm3537_vm1, %v3536_v8 }
 0x85c   : > { %v1761_v38 = vpop.xlane.xlu1 %1760 }
 0x85d   : > { %v1762_v39 = vmul.f32 0.03125, %v1761_v38 }
 0x85f   : > { %v1763_v40 = vsub.f32 %v1758_v36, %v1762_v39 }
 0x861   : > { %v1764_v41 = vmul.f32 %v1763_v40, %v1763_v40 }
 0x863   : > { %v1765_v42 = vsel %vm1017_vm0, %v1764_v41, 0.0 }
 0x864   : > { %1766 = vadd.xlane.f32.xlu0 %v1765_v42 }
 0x8a3   : > { %v1904_v59 = vpop.f32.mrb[20].mxu1 }
 0x8a4   : > { %v1905_v60 = vadd.f32 %v2865_v44, %v1904_v59  ;;  %v3064_v61 = vpop.f32.mrb[21].mxu1 }
 0x8a5   : > { %v1907_v62 = vpop.f32.mrb[22].mxu1 }
 0x8a6   : > { %v1969_v63 = vpack.c.bf16 %v1905_v60, %v1905_v60  ;;  %v3065_v0 = vpop.f32.mrb[23].mxu1 }
 0x8a8   : > { %2080 = vrot.lane.b32.xlu0 %v1969_v63, %s3539_s5  ;;  %v1975_v1 = vsel %vm1227_vm2, %v1969_v63, 0 }
 0x8a9   : > { %3075 = vmatpush3.bf16.xpose.msra.mxu1 %v1975_v1 }
 0x8aa   : > { %3086 = vmatprep.subr.bf16.mxu1 %v3536_v8 }
 0x8f1   : > { %v1767_v49 = vpop.xlane.xlu0 %1766 }
 0x8f2   : > { %v1768_v50 = vmul.f32 0.03125, %v1767_v49  ;;  %v2869_v49 = vld [vmem:[#allocation4] ss:$0 sm:$0xff] }
 0x8f4   : > { %v1769_v51 = vadd.f32 1e-05, %v1768_v50 }
 0x8f6   : > { %3289 = vrsqrt.f32 %v1769_v51 }
 0x900   : > { %v3290_v52 = vpop.eup %3289 }
 0x901   : > { %v1771_v54 = vmul.f32 %v3290_v52, %v1763_v40 }
 0x903   : > { %v1778_v56 = vmul.f32 %v2859_v53, %v1771_v54 }
 0x905   : > { %v4081_v57 = vadd.f32 %v2860_v55, %v1778_v56 }
 0x907   : > { %v1786_v58 = vpack.c.bf16 %v4081_v57, %v4081_v57 }
 0x909   : > { %3055 = vmatmul.mubr.msk.bf16.vlgmr.msra.gmra.mrb[28].mxu0 %vm1017_vm0, %v1786_v58 }
 0x90a   : > { %3070 = vmatprep.mubr.msk.bf16.mxu0 %vm3537_vm1, %v3536_v8  ;;  %3067 = vmatpush3.bf16.msra.mxu0 %v3257_v12 }
 0x90b   : > { %3068 = vmatprep.subr.bf16.mxu0 %v3536_v8 }
 0x90e   : > { %3069 = vmatpush3.bf16.msra.mxu0 %v3258_v13 }
 0x90f   : > { %3080 = vmatprep.subr.bf16.mxu0 %v3536_v8 }
 0x911   : > { %3071 = vmatmul.mubr.msk.bf16.vlgmr.msra.gmra.mrb[32].mxu0 %vm1017_vm0, %v1848_v46 }
 0x912   : > { %3082 = vmatprep.mubr.msk.bf16.mxu0 %vm3537_vm1, %v3536_v8 }
 0x91a   : > { %v2081_v6 = vpop.permute.xlu0 %2080 }
 0x91b   : > { %v2086_v11 = vsel %vm1227_vm2, %v2081_v6, 0 }
 0x9dc   : > { %v1842_v3 = vpop.f32.mrb[28].mxu0 }
 0x9dd   : > { %v1843_v4 = vadd.f32 %v2861_v2, %v1842_v3  ;;  %v3056_v5 = vpop.f32.mrb[29].mxu0 }
 0x9de   : > { %v1845_v7 = vpop.f32.mrb[30].mxu0 }
 0x9df   : > { %v1968_v9 = vpack.c.bf16 %v1843_v4, %v1843_v4  ;;  %v3057_v10 = vpop.f32.mrb[31].mxu0 }
 0x9e1   : > { %2190 = vrot.lane.b32.xlu0 %v1968_v9, %s3538_s29  ;;  %2077 = vrot.lane.b32.xlu1 %v1968_v9, %s3539_s5 }
 0x9e2   : > { %3077 = vmatmul.mubr.msk.bf16.vlgmr.msra.gmra.mrb[24].mxu1 %vm1227_vm2, %v1968_v9 }
 0x9e3   : > { %3087 = vmatpush3.bf16.xpose.msra.mxu1 %v2086_v11  ;;  %3088 = vmatprep.mubr.msk.bf16.mxu1 %vm3537_vm1, %v3536_v8 }
 0x9e4   : > { %3098 = vmatprep.subr.bf16.mxu1 %v3536_v8  ;;  %v1962_v50 = vpop.f32.mrb[32].mxu0 }
 0x9e5   : > { %2301 = vrot.lane.b32.xlu0 %v1968_v9, %s3540_s11  ;;  %2192 = vrot.lane.b32.xlu1 %v1969_v63, %s3538_s29  ;;  %v1963_v51 = vadd.f32 %v2869_v49, %v1962_v50  ;;  %v3072_v52 = vpop.f32.mrb[33].mxu0 }
 0x9e6   : > { %v1965_v53 = vpop.f32.mrb[34].mxu0 }
 0x9e7   : > { %v3073_v54 = vpop.f32.mrb[35].mxu0  ;;  %v1970_v58 = vpack.c.bf16 %v1963_v51, %v1963_v51 }
 0x9e9   : > { %2303 = vrot.lane.b32.xlu1 %v1969_v63, %s3540_s11  ;;  %v2034_v44 = vsel %vm1296_vm3, %v1970_v58, 0 }
 0x9ea   : > { %3081 = vmatpush3.bf16.msra.mxu0 %v2034_v44 }
 0x9eb   : > { %3092 = vmatprep.subr.bf16.mxu0 %v3536_v8 }
 0xa53   : > { %v2078_v14 = vpop.permute.xlu1 %2077  ;;  %v2191_v19 = vpop.permute.xlu0 %2190 }
 0xa54   : > { %3089 = vmatmul.mubr.msk.bf16.vlgmr.msra.gmra.mrb[28].mxu1 %vm1227_vm2, %v2078_v14 }
 0xa55   : > { %3100 = vmatprep.mubr.msk.bf16.mxu1 %vm3537_vm1, %v3536_v8 }
 0xa57   : > { %v2193_v15 = vpop.permute.xlu1 %2192  ;;  %v2302_v21 = vpop.permute.xlu0 %2301 }
 0xa58   : > { %v2198_v16 = vsel %vm1227_vm2, %v2193_v15, 0 }
 0xa59   : > { %3099 = vmatpush3.bf16.xpose.msra.mxu1 %v2198_v16 }
 0xa5a   : > { %3110 = vmatprep.subr.bf16.mxu1 %v3536_v8 }
 0xa5b   : > { %v2304_v17 = vpop.permute.xlu1 %2303 }
 0xa5c   : > { %v2309_v20 = vsel %vm1227_vm2, %v2304_v17, 0 }
 0xa60   : > { %3101 = vmatmul.mubr.msk.bf16.vlgmr.msra.gmra.mrb[32].mxu1 %vm1227_vm2, %v2191_v19 }
 0xa61   : > { %3111 = vmatpush3.bf16.xpose.msra.mxu1 %v2309_v20  ;;  %3112 = vmatprep.mubr.msk.bf16.mxu1 %vm3537_vm1, %v3536_v8 }
 0xa62   : > { %3122 = vmatprep.subr.bf16.mxu1 %v3536_v8 }
 0xa68   : > { %3113 = vmatmul.mubr.msk.bf16.vlgmr.msra.gmra.mrb[36].mxu1 %vm1227_vm2, %v2302_v21 }
 0xa69   : > { %3126 = vmatprep.mubr.msk.bf16.mxu1 %vm3537_vm1, %v3536_v8 }
 0xab5   : > { %v2011_v22 = vpop.f32.mrb[24].mxu1 }
 0xab6   : > { %v2017_v23 = vmul.f32 0.35355338, %v2011_v22  ;;  %v3078_v24 = vpop.f32.mrb[25].mxu1 }
 0xab7   : > { %v2014_v25 = vpop.f32.mrb[26].mxu1 }
 0xab8   : > { %v3079_v26 = vpop.f32.mrb[27].mxu1  ;;  %v2018_v27 = vsel %vm1227_vm2, %v2017_v23, -inf }
 0xab9   : > { %2019 = vmax.xlane.f32.xlu1 %v2018_v27 }
 0xb27   : > { %v2122_v28 = vpop.f32.mrb[28].mxu1 }
 0xb28   : > { %v2128_v29 = vmul.f32 0.35355338, %v2122_v28  ;;  %v3090_v30 = vpop.f32.mrb[29].mxu1 }
 0xb29   : > { %v2125_v31 = vpop.f32.mrb[30].mxu1 }
 0xb2a   : > { %v3091_v32 = vpop.f32.mrb[31].mxu1  ;;  %v2129_v33 = vsel %vm1227_vm2, %v2128_v29, -inf }
 0xb2b   : > { %2130 = vmax.xlane.f32.xlu0 %v2129_v33 }
 0xb33   : > { %v2234_v34 = vpop.f32.mrb[32].mxu1 }
 0xb34   : > { %v2240_v35 = vmul.f32 0.35355338, %v2234_v34  ;;  %v3102_v36 = vpop.f32.mrb[33].mxu1 }
 0xb35   : > { %v2237_v37 = vpop.f32.mrb[34].mxu1 }
 0xb36   : > { %v3103_v38 = vpop.f32.mrb[35].mxu1  ;;  %v2241_v39 = vsel %vm1227_vm2, %v2240_v35, -inf }
 0xb37   : > { %2242 = vmax.xlane.f32.xlu0 %v2241_v39  ;;  %v3259_v38 = vld [vmem:[%s4246_s20] sm:$0xff]  }
 0xb38   : > { %3123 = vmatpush3.bf16.msra.mxu1 %v3259_v38 }
 0xb39   : > { %3124 = vmatprep.subr.bf16.mxu1 %v3536_v8 }
 0xb3b   : > { %v2345_v40 = vpop.f32.mrb[36].mxu1 }
 0xb3c   : > { %v2351_v41 = vmul.f32 0.35355338, %v2345_v40  ;;  %v3114_v42 = vpop.f32.mrb[37].mxu1 }
 0xb3d   : > { %v2348_v43 = vpop.f32.mrb[38].mxu1 }
 0xb3e   : > { %v3115_v45 = vpop.f32.mrb[39].mxu1  ;;  %v2352_v18 = vsel %vm1227_vm2, %v2351_v41, -inf }
 0xb3f   : > { %2353 = vmax.xlane.f32.xlu1 %v2352_v18 }
 0xb46   : > { %v2020_v46 = vpop.xlane.xlu1 %2019 }
 0xb47   : > { %v2021_v47 = vsub.f32 %v2017_v23, %v2020_v46 }
 0xb49   : > { %v2022_v48 = vmul.f32 1.442695, %v2021_v47  ;;  %v3260_v47 = vld [vmem:[%s4246_s20 + $0x8] sm:$0xff]  }
 0xb4a   : > { %3125 = vmatpush3.bf16.msra.mxu1 %v3260_v47 }
 0xb4b   : > { %3291 = vpow2.f32 %v2022_v48  ;;  %3138 = vmatprep.subr.bf16.mxu1 %v3536_v8 }
 0xb55   : > { %v3292_v55 = vpop.eup %3291 }
 0xb56   : > { %v2024_v56 = vsel %vm1227_vm2, %v3292_v55, 0.0 }
 0xb57   : > { %2025 = vadd.xlane.f32.xlu0 %v2024_v56 }
 0xbb8   : > { %v2131_v59 = vpop.xlane.xlu0 %2130 }
 0xbb9   : > { %v2132_v60 = vsub.f32 %v2128_v29, %v2131_v59  ;;  %v2881_v59 = vld [vmem:[#allocation6] ss:$0 sm:$0xff] }
 0xbbb   : > { %v2133_v61 = vmul.f32 1.442695, %v2132_v60 }
 0xbbd   : > { %3293 = vpow2.f32 %v2133_v61 }
 0xbc4   : > { %v2243_v62 = vpop.xlane.xlu0 %2242 }
 0xbc5   : > { %v2244_v63 = vsub.f32 %v2240_v35, %v2243_v62 }
 0xbc7   : > { %v3294_v0 = vpop.eup %3293  ;;  %v2245_v1 = vmul.f32 1.442695, %v2244_v63 }
 0xbc8   : > { %v2135_v2 = vsel %vm1227_vm2, %v3294_v0, 0.0 }
 0xbc9   : > { %3295 = vpow2.f32 %v2245_v1  ;;  %2136 = vadd.xlane.f32.xlu1 %v2135_v2 }
 0xbcc   : > { %v2354_v6 = vpop.xlane.xlu1 %2353 }
 0xbcd   : > { %v2355_v7 = vsub.f32 %v2351_v41, %v2354_v6 }
 0xbcf   : > { %v2356_v9 = vmul.f32 1.442695, %v2355_v7 }
 0xbd3   : > { %v3296_v3 = vpop.eup %3295 }
 0xbd4   : > { %v2247_v4 = vsel %vm1227_vm2, %v3296_v3, 0.0 }
 0xbd5   : > { %2248 = vadd.xlane.f32.xlu0 %v2247_v4 }
 0xbda   : > { %2253 = vrot.lane.b32.xlu1 %v1970_v58, %s3538_s29  ;;  %s4308_s29 = sld [smem:[#allocation31_spill]] }
 0xbe4   : > { %v2026_v5 = vpop.xlane.xlu0 %2025 }
 0xbe5   : > { %3297 = vrcp.f32 %v2026_v5 }
 0xbe6   : > { %3299 = vpow2.f32 %v2356_v9  ;;  %v3261_v9 = vld [vmem:[%s4250_s24] sm:$0xff]  }
 0xbeb   : > { %2142 = vrot.lane.b32.xlu0 %v1970_v58, %s3539_s5 }
 0xbef   : > { %v3298_v10 = vpop.eup %3297 }
 0xbf0   : > { %v2028_v11 = vmul.f32 %v3298_v10, %v3292_v55  ;;  %v3300_v13 = vpop.eup %3299  ;;  %v3262_v10 = vld [vmem:[%s4250_s24 + $0x8] sm:$0xff]  }
 0xbf1   : > { %v2358_v14 = vsel %vm1227_vm2, %v3300_v13, 0.0 }
 0xbf2   : > { %v2029_v12 = vpack.c.bf16 %v2028_v11, %v2028_v11  ;;  %v3264_v11 = vld [vmem:[%s4308_s29 + $0x8] sm:$0xff]  }
 0xbf4   : > { %3083 = vmatmul.mubr.msk.bf16.vlgmr.msra.gmra.mrb[36].mxu0 %vm1227_vm2, %v2029_v12  ;;  %v3265_v12 = vld [vmem:[%s4308_s29 + $0x10] sm:$0xff]  }
 0xbf5   : > { %3094 = vmatprep.mubr.msk.bf16.mxu0 %vm3537_vm1, %v3536_v8 }
 0xbfe   : > { %2359 = vadd.xlane.f32.xlu1 %v2358_v14  ;;  %v3267_v14 = vld [vmem:[%s4308_s29 + $0x20] sm:$0xff]  }
 0xc0f   : > { %2364 = vrot.lane.b32.xlu1 %v1970_v58, %s3540_s11  ;;  %s4306_s11 = smov 16  }
 0xc56   : > { %v2137_v15 = vpop.xlane.xlu1 %2136 }
 0xc57   : > { %3301 = vrcp.f32 %v2137_v15  ;;  %v3268_v15 = vld [vmem:[%s4308_s29 + $0x28] sm:$0xff]  }
 0xc5a   : > { %v2254_v22 = vpop.permute.xlu1 %2253 }
 0xc5b   : > { %v2259_v24 = vsel %vm1296_vm3, %v2254_v22, 0 }
 0xc61   : > { %v3302_v16 = vpop.eup %3301 }
 0xc62   : > { %v2249_v17 = vpop.xlane.xlu0 %2248  ;;  %v2139_v19 = vmul.f32 %v3302_v16, %v3294_v0 }
 0xc63   : > { %3303 = vrcp.f32 %v2249_v17 }
 0xc64   : > { %v2140_v23 = vpack.c.bf16 %v2139_v19, %v2139_v19 }
 0xc66   : > { %v2143_v20 = vpop.permute.xlu0 %2142 }
 0xc67   : > { %v2148_v21 = vsel %vm1296_vm3, %v2143_v20, 0 }
 0xc68   : > { %3093 = vmatpush3.bf16.msra.mxu0 %v2148_v21  ;;  %v2885_v21 = vld [vmem:[#allocation7] ss:$0 sm:$0xff] }
 0xc69   : > { %3104 = vmatprep.subr.bf16.mxu0 %v3536_v8 }
 0xc6b   : > { %3095 = vmatmul.mubr.msk.bf16.vlgmr.msra.gmra.mrb[40].mxu0 %vm1227_vm2, %v2140_v23  ;;  %v2886_v23 = vld [vmem:[#allocation9] ss:$0 sm:$0xff] }
 0xc6c   : > { %3105 = vmatpush3.bf16.msra.mxu0 %v2259_v24  ;;  %3106 = vmatprep.mubr.msk.bf16.mxu0 %vm3537_vm1, %v3536_v8 }
 0xc6d   : > { %v3304_v25 = vpop.eup %3303  ;;  %3116 = vmatprep.subr.bf16.mxu0 %v3536_v8 }
 0xc6e   : > { %v2251_v26 = vmul.f32 %v3304_v25, %v3296_v3 }
 0xc70   : > { %v2252_v27 = vpack.c.bf16 %v2251_v26, %v2251_v26 }
 0xc73   : > { %3107 = vmatmul.mubr.msk.bf16.vlgmr.msra.gmra.mrb[44].mxu0 %vm1227_vm2, %v2252_v27  ;;  %v3269_v27 = vld [vmem:[%s4308_s29 + $0x30] sm:$0xff]  }
 0xc74   : > { %3118 = vmatprep.mubr.msk.bf16.mxu0 %vm3537_vm1, %v3536_v8 }
 0xc8b   : > { %v2360_v28 = vpop.xlane.xlu1 %2359 }
 0xc8c   : > { %3305 = vrcp.f32 %v2360_v28  ;;  %v3270_v28 = vld [vmem:[%s4308_s29 + $0x38] sm:$0xff]  }
 0xc8f   : > { %v2365_v29 = vpop.permute.xlu1 %2364 }
 0xc90   : > { %v2370_v30 = vsel %vm1296_vm3, %v2365_v29, 0  ;;  %v2887_v29 = vld [vmem:[#allocation10] ss:$0 sm:$0xff] }
 0xc91   : > { %3117 = vmatpush3.bf16.msra.mxu0 %v2370_v30 }
 0xc92   : > { %3130 = vmatprep.subr.bf16.mxu0 %v3536_v8 }
 0xc96   : > { %v3306_v31 = vpop.eup %3305 }
 0xc97   : > { %v2362_v32 = vmul.f32 %v3306_v31, %v3300_v13  ;;  %v3266_v13 = vld [vmem:[%s4308_s29 + $0x18] sm:$0xff]  }
 0xc99   : > { %v2363_v33 = vpack.c.bf16 %v2362_v32, %v2362_v32 }
 0xc9b   : > { %3119 = vmatmul.mubr.msk.bf16.vlgmr.msra.gmra.mrb[48].mxu0 %vm1227_vm2, %v2363_v33 }
 0xc9c   : > { %3134 = vmatprep.mubr.msk.bf16.mxu0 %vm3537_vm1, %v3536_v8  ;;  %3131 = vmatpush3.bf16.msra.mxu0 %v3261_v9 }
 0xc9d   : > { %3132 = vmatprep.subr.bf16.mxu0 %v3536_v8 }
 0xca0   : > { %3133 = vmatpush3.bf16.msra.mxu0 %v3262_v10 }
 0xcc7   : > { %v2070_v34 = vpop.f32.mrb[36].mxu0 }
 0xcc8   : > { %v3084_v35 = vpop.f32.mrb[37].mxu0 }
 0xcc9   : > { %v2073_v36 = vpop.f32.mrb[38].mxu0 }
 0xcca   : > { %v3085_v37 = vpop.f32.mrb[39].mxu0 }
 0xccb   : > { %v2891_v37 = vld [vmem:[#allocation12] ss:$0 sm:$0xff] }
 0xd3e   : > { %v2184_v39 = vpop.f32.mrb[40].mxu0 }
 0xd3f   : > { %2413 = vrot.lane.b32.xlu0 %v2184_v39, %s3541_s6  ;;  %v3096_v40 = vpop.f32.mrb[41].mxu0  ;;  %s4309_s6 = sld [smem:[#allocation32_spill]] }
 0xd40   : > { %v2187_v41 = vpop.f32.mrb[42].mxu0 }
 0xd41   : > { %v3097_v42 = vpop.f32.mrb[43].mxu0 }
 0xd45   : > { %s945_s8 = scalar_lea.vmem %s4309_s6, %s3896_s3 }
 0xd46   : > { %v2295_v43 = vpop.f32.mrb[44].mxu0 }
 0xd47   : > { %2417 = vrot.lane.b32.xlu1 %v2295_v43, %s4306_s11  ;;  %v3108_v45 = vpop.f32.mrb[45].mxu0 }
 0xd48   : > { %v2298_v18 = vpop.f32.mrb[46].mxu0 }
 0xd49   : > { %v3109_v46 = vpop.f32.mrb[47].mxu0 }
 0xd6e   : > { %v2406_v48 = vpop.f32.mrb[48].mxu0 }
 0xd6f   : > { %2421 = vrot.lane.b32.xlu0 %v2406_v48, %s4307_s28  ;;  %v3120_v49 = vpop.f32.mrb[49].mxu0 }
 0xd70   : > { %v2409_v50 = vpop.f32.mrb[50].mxu0 }
 0xd71   : > { %v3121_v51 = vpop.f32.mrb[51].mxu0 }
 0xdb1   : > { %v2414_v52 = vpop.permute.xlu0 %2413 }
 0xdb2   : > { %v2424_v54 = vsel %vm1227_vm2, %v2070_v34, %v2414_v52 }
 0xdb9   : > { %v2418_v53 = vpop.permute.xlu1 %2417 }
 0xdba   : > { %v2425_v55 = vsel %vm1692_vm5, %v2424_v54, %v2418_v53 }
 0xde1   : > { %v2422_v56 = vpop.permute.xlu0 %2421 }
 0xde2   : > { %v2426_v58 = vsel %vm1694_vm6, %v2425_v55, %v2422_v56 }
 0xde3   : > { %v2427_v44 = vpack.c.bf16 %v2426_v58, %v2426_v58 }
 0xde5   : > { %3127 = vmatmul.mubr.msk.bf16.vlgmr.msra.gmra.mrb[40].mxu1 %vm1017_vm0, %v2427_v44 }
 0xde6   : > { %3154 = vmatprep.mubr.msk.bf16.mxu1 %vm3537_vm1, %v3536_v8 }
 0xeb8   : > { %v2483_v60 = vpop.f32.mrb[40].mxu1 }
 0xeb9   : > { %v2484_v61 = vadd.f32 %v2881_v59, %v2483_v60  ;;  %v3128_v62 = vpop.f32.mrb[41].mxu1 }
 0xeba   : > { %v2486_v63 = vpop.f32.mrb[42].mxu1 }
 0xebb   : > { %v3129_v0 = vpop.f32.mrb[43].mxu1  ;;  %v2489_v1 = vadd.f32 %v2484_v61, %v4081_v57  ;;  %v3263_v57 = vld [vmem:[%s4308_s29] sm:$0xff]  }
 0xebc   : > { %3139 = vmatpush3.bf16.msra.mxu1 %v3263_v57 }
 0xebd   : > { %v2490_v2 = vsel %vm1017_vm0, %v2489_v1, 0.0  ;;  %3140 = vmatprep.subr.bf16.mxu1 %v3536_v8 }
 0xebe   : > { %2491 = vadd.xlane.f32.xlu1 %v2490_v2 }
 0xec0   : > { %3141 = vmatpush3.bf16.msra.mxu1 %v3264_v11 }
 0xec1   : > { %3142 = vmatprep.subr.bf16.mxu1 %v3536_v8 }
 0xec4   : > { %3143 = vmatpush3.bf16.msra.mxu1 %v3265_v12 }
 0xec5   : > { %3144 = vmatprep.subr.bf16.mxu1 %v3536_v8 }
 0xec8   : > { %3145 = vmatpush3.bf16.msra.mxu1 %v3266_v13 }
 0xec9   : > { %3146 = vmatprep.subr.bf16.mxu1 %v3536_v8 }
 0xecc   : > { %3147 = vmatpush3.bf16.msra.mxu1 %v3267_v14 }
 0xecd   : > { %3148 = vmatprep.subr.bf16.mxu1 %v3536_v8 }
 0xed0   : > { %3149 = vmatpush3.bf16.msra.mxu1 %v3268_v15 }
 0xed1   : > { %3150 = vmatprep.subr.bf16.mxu1 %v3536_v8 }
 0xed4   : > { %3151 = vmatpush3.bf16.msra.mxu1 %v3269_v27 }
 0xed5   : > { %3152 = vmatprep.subr.bf16.mxu1 %v3536_v8 }
 0xed8   : > { %3153 = vmatpush3.bf16.msra.mxu1 %v3270_v28 }
 0xf4b   : > { %v2492_v3 = vpop.xlane.xlu1 %2491 }
 0xf4c   : > { %v2493_v4 = vmul.f32 0.03125, %v2492_v3 }
 0xf4e   : > { %v2494_v5 = vsub.f32 %v2489_v1, %v2493_v4 }
 0xf50   : > { %v2495_v6 = vmul.f32 %v2494_v5, %v2494_v5 }
 0xf52   : > { %v2496_v7 = vsel %vm1017_vm0, %v2495_v6, 0.0 }
 0xf53   : > { %2497 = vadd.xlane.f32.xlu0 %v2496_v7 }
 0xfe0   : > { %v2498_v16 = vpop.xlane.xlu0 %2497 }
 0xfe1   : > { %v2499_v17 = vmul.f32 0.03125, %v2498_v16 }
 0xfe3   : > { %v2500_v19 = vadd.f32 1e-05, %v2499_v17 }
 0xfe5   : > { %3307 = vrsqrt.f32 %v2500_v19 }
 0xfef   : > { %v3308_v20 = vpop.eup %3307 }
 0xff0   : > { %v2502_v22 = vmul.f32 %v3308_v20, %v2494_v5 }
 0xff2   : > { %v2509_v24 = vmul.f32 %v2885_v21, %v2502_v22 }
 0xff4   : > { %v2516_v25 = vadd.f32 %v2886_v23, %v2509_v24 }
 0xff6   : > { %v2517_v26 = vpack.c.bf16 %v2516_v25, %v2516_v25 }
 0xff8   : > { %3135 = vmatmul.mubr.msk.bf16.vlgmr.msra.gmra.mrb[52].mxu0 %vm1017_vm0, %v2517_v26 }
0x10cb   : > { %v2573_v30 = vpop.f32.mrb[52].mxu0 }
0x10cc   : > { %v2574_v31 = vadd.f32 %v2887_v29, %v2573_v30  ;;  %v3136_v32 = vpop.f32.mrb[53].mxu0 }
0x10cd   : > { %v2576_v33 = vpop.f32.mrb[54].mxu0 }
0x10ce   : > { %v2579_v34 = vmax.f32 %v2574_v31, 0.0  ;;  %v3137_v35 = vpop.f32.mrb[55].mxu0 }
0x10d0   : > { %v2580_v36 = vpack.c.bf16 %v2579_v34, %v2579_v34 }
0x10d2   : > { %3155 = vmatmul.mubr.bf16.vlgmr.msra.gmra.mrb[44].mxu1 %v2580_v36 }
0x11a5   : > { %v2669_v38 = vpop.f32.mrb[44].mxu1 }
0x11a6   : > { %v2670_v39 = vadd.f32 %v2891_v37, %v2669_v38  ;;  %v3156_v40 = vpop.f32.mrb[45].mxu1 }
0x11a7   : > { %v2672_v8 = vpop.f32.mrb[46].mxu1 }
0x11a8   : > { %v2675_v41 = vadd.f32 %v2670_v39, %v2516_v25  ;;  %v3157_v42 = vpop.f32.mrb[47].mxu1 }
0x11aa   : > { %2676 = vst.msk [vmem:[%s945_s8] sm:$0xff] %vm1017_vm0, %v2675_v41 }
0x11ab PF: > { %s4310_s12 = sld [smem:[#allocation17_spill]] }
0x11b1   : > { %s42_s8 = sadd.s32 1, %s4310_s12  }
0x11b2   : > { %p39_p11 = scmp.ge.s32.totalorder %s42_s8, 4  }
0x11b4   :  { %41 = sbr.rel (!%p39_p11) target bundleno = 20 (0x14), region = 194 }
0x11bb   :  { %2696 = vsyncpa [#allocation3], 1 }
0x11bc   :  { %2698 = vsyncpa [#allocation3 + $0x1], 1 }
0x11bd   :  { %2699 = vsyncpa [#allocation5], 1 }
0x11be   :  { %2700 = vsyncpa [#allocation8], 1 }
0x11bf   :  { %2701 = vsyncpa [#allocation11], 1 }

// kernel: transformer_forward.10
= control target key start
LH: loop header
LB: loop body
LE: loop exit
PB: predicated region body
PF: predicated region fallthrough
CT: control target
= control target key end

     0   :  { %s4149_s0 = inlined_call_operand.vmem [shape: f32[2,8,32], index: 0, kind: input, shape index: {}]   ;;  %s4150_s1 = inlined_call_operand.vmem [shape: f32[2,8,32], index: 1, kind: input, shape index: {}]   ;;  %s4151_s2 = inlined_call_operand.vmem [shape: f32[1,32], index: 2, kind: input, shape index: {}]   ;;  %s4152_s3 = inlined_call_operand.vmem [shape: f32[1,32], index: 3, kind: input, shape index: {}]   ;;  %s4153_s4 = inlined_call_operand.vmem [shape: bf16[32,32], index: 4, kind: input, shape index: {}]   ;;  %s4154_s5 = inlined_call_operand.vmem [shape: f32[1,32], index: 5, kind: input, shape index: {}]   ;;  %s4155_s6 = inlined_call_operand.vmem [shape: bf16[32,32], index: 6, kind: input, shape index: {}]   ;;  %s4156_s7 = inlined_call_operand.vmem [shape: f32[1,32], index: 7, kind: input, shape index: {}]   ;;  %s4157_s8 = inlined_call_operand.vmem [shape: bf16[32,32], index: 8, kind: input, shape index: {}]   ;;  %s4158_s9 = inlined_call_operand.vmem [shape: f32[1,32], index: 9, kind: input, shape index: {}]   ;;  %s4159_s10 = inlined_call_operand.vmem [shape: bf16[32,32], index: 10, kind: input, shape index: {}]   ;;  %s4160_s11 = inlined_call_operand.vmem [shape: f32[1,32], index: 11, kind: input, shape index: {}]   ;;  %s4161_s12 = inlined_call_operand.vmem [shape: f32[1,32], index: 12, kind: input, shape index: {}]   ;;  %s4162_s13 = inlined_call_operand.vmem [shape: f32[1,32], index: 13, kind: input, shape index: {}]   ;;  %s4163_s14 = inlined_call_operand.vmem [shape: bf16[32,32], index: 14, kind: input, shape index: {}]   ;;  %s4164_s15 = inlined_call_operand.vmem [shape: f32[1,32], index: 15, kind: input, shape index: {}]   ;;  %s4165_s16 = inlined_call_operand.vmem [shape: bf16[32,32], index: 16, kind: input, shape index: {}]   ;;  %s4166_s17 = inlined_call_operand.vmem [shape: f32[1,32], index: 17, kind: input, shape index: {}]   ;;  %s4167_s18 = inlined_call_operand.vmem [shape: bf16[32,32], index: 18, kind: input, shape index: {}]   ;;  %s4168_s19 = inlined_call_operand.hbm [shape: f32[1,32], index: 19, kind: input, shape index: {}]   ;;  %s4169_s20 = inlined_call_operand.vmem [shape: bf16[32,32], index: 20, kind: input, shape index: {}]   ;;  %s4170_s21 = inlined_call_operand.hbm [shape: f32[1,32], index: 21, kind: input, shape index: {}]   ;;  %s4171_s22 = inlined_call_operand.hbm [shape: f32[1,32], index: 22, kind: input, shape index: {}]   ;;  %s4172_s23 = inlined_call_operand.hbm [shape: f32[1,32], index: 23, kind: input, shape index: {}]   ;;  %s4173_s24 = inlined_call_operand.vmem [shape: bf16[32,128], index: 24, kind: input, shape index: {}]   ;;  %s4174_s25 = inlined_call_operand.hbm [shape: f32[1,128], index: 25, kind: input, shape index: {}]   ;;  %s4175_s26 = inlined_call_operand.vmem [shape: bf16[128,32], index: 26, kind: input, shape index: {}]   ;;  %s4176_s27 = inlined_call_operand.hbm [shape: f32[1,32], index: 27, kind: input, shape index: {}]   ;;  %s4177_s28 = inlined_call_operand.vmem [shape: f32[2,8,32], index: 28, kind: output, shape index: {}]  }
   0x1   :  { %4188 = sst [smem:[#allocation17_spill]] %s4149_s0 }
   0x2   :  { %4189 = sst [smem:[#allocation18_spill]] %s4150_s1 }
   0x3   :  { %4190 = sst [smem:[#allocation19_spill]] %s4151_s2 }
   0x4   :  { %4191 = sst [smem:[#allocation20_spill]] %s4152_s3 }
   0x5   :  { %4192 = sst [smem:[#allocation21_spill]] %s4153_s4 }
   0x6   :  { %4193 = sst [smem:[#allocation22_spill]] %s4154_s5 }
   0x7   :  { %4194 = sst [smem:[#allocation23_spill]] %s4155_s6 }
   0x8   :  { %4195 = sst [smem:[#allocation24_spill]] %s4156_s7 }
   0x9   :  { %4196 = sst [smem:[#allocation25_spill]] %s4157_s8 }
   0xa   :  { %4197 = sst [smem:[#allocation26_spill]] %s4158_s9 }
   0xb   :  { %4198 = sst [smem:[#allocation27_spill]] %s4159_s10 }
   0xc   :  { %4199 = sst [smem:[#allocation28_spill]] %s4160_s11 }
   0xd   :  { %4200 = sst [smem:[#allocation29_spill]] %s4161_s12 }
   0xe   :  { %4201 = sst [smem:[#allocation30_spill]] %s4175_s26 }
   0xf   :  { %4202 = sst [smem:[#allocation31_spill]] %s4177_s28 }
  0x10   :  { %33 = vsyncpa [#allocation3], 0 }
  0x11   :  { %34 = vsyncpa [#allocation5], 0 }
  0x12   :  { %35 = vsyncpa [#allocation8], 0 }
  0x13   :  { %36 = vsyncpa [#allocation11], 0  ;;  %s3627_s8 = smov 0  }
  0x14 LB: > { %4203 = sst [smem:[#allocation16_spill]] %s3466_s8  ;;  %s3468_s5 = smov [#allocation4]   ;;  %s3466_s8 = sphi %s3627_s8, %s42_s8  }
  0x15   : > { %s749_s9 = sshll.u32 %s3468_s5, 4  ;;  %s3633_s30 = sadd.s32 4294967295, %s3466_s8   ;;  %s3638_s9 = int_to_ptr.vmem [resolvable:$true] %s749_s9 }
  0x16   : > { %p2792_p0 = scmp.ge.s32.totalorder %s3466_s8, 1  ;;  %p671_p1 = scmp.lt.s32.totalorder %s3466_s8, 3 }
  0x17   : > { %p4184_p2 = scmp.eq.s32.totalorder %s3633_s30, 0  ;;  %s3469_s6 = smov [#allocation7]  }
  0x18   : > { %p3640_p3 = pnand %p2792_p0, %p671_p1  ;;  %s771_s10 = sshll.u32 %s3469_s6, 4  ;;  %s3646_s10 = int_to_ptr.vmem [resolvable:$true] %s771_s10 }
  0x19   : > { %s3470_s0 = smov [#allocation2]   ;;  %s3471_s2 = smov [#allocation6]  }
  0x1a   : > { %s4204_s3 = scalar_select %p3640_p3, 1, 0 }
  0x1b   : > { %p3159_p4 = pneg %p3640_p3  ;;  %s735_s11 = sshll.u32 %s3470_s0, 4  ;;  %s3654_s11 = int_to_ptr.vmem [resolvable:$true] %s735_s11 }
  0x1c   : > { %s760_s7 = sshll.u32 %s3471_s2, 4  ;;  %s3276_s4 = scalar_lea.hbm %s4170_s21, 16  ;;  %s3656_s7 = int_to_ptr.vmem [resolvable:$true] %s760_s7 }
  0x1d   : > { %p3650_p5 = pnand %p4184_p2, %p3159_p4  ;;  %p3277_p6 = scmp.ne.s32.totalorder %s4170_s21, %s3276_s4 }
  0x1e   : > { %p3283_p10 = scmp.lt.u32.totalorder %s3276_s4, %s4170_s21 }
  0x1f   : > { %p3666_p7 = pneg %p3650_p5 }
  0x21   : > { %p3279_p8 = pnand %p3666_p7, %p3277_p6 }
  0x23   : > { %p3280_p9 = pneg %p3279_p8 }
  0x25   : > { %p3285_p11 = pnand %p3283_p10, %p3280_p9 }
  0x27   : > { %3288 = shalt.err (!%p3285_p11)
}
  0x28   : > { %s3289_s12 = scalar_lea.vmem %s3638_s9, 16  ;;  %s3296_s1 = scalar_lea.vmem %s3638_s9, 32 }
  0x29   : > { %p3290_p12 = scmp.ne.s32.totalorder %s3638_s9, %s3289_s12  ;;  %p3297_p1 = scmp.lt.s32.totalorder %s3638_s9, %s3638_s9 }
  0x2a   : > { %p3298_p4 = scmp.lt.s32.totalorder %s3296_s1, %s3289_s12 }
  0x2b   : > { %p3292_p13 = pnand %p3290_p12, %p3666_p7 }
  0x2c   : > { %p3299_p6 = por %p3298_p4, %p3297_p1 }
  0x2d   : > { %p3293_p0 = pneg %p3292_p13 }
  0x2f   : > { %p3300_p8 = pnand %p3299_p6, %p3293_p0 }
  0x31   : > { %3303 = shalt.err (!%p3300_p8)
}
  0x32   : > { %3165 = dma.hbm_to_vmem [thread:$0]  (!%p3650_p5), %s4170_s21, 16, %s3638_s9, [#allocation5]  }
  0x33   : > { %s3304_s2 = scalar_lea.hbm %s4172_s23, 16 }
  0x34   : > { %p3305_p9 = scmp.ne.s32.totalorder %s4172_s23, %s3304_s2  ;;  %p3311_p12 = scmp.lt.u32.totalorder %s3304_s2, %s4172_s23 }
  0x36   : > { %p3307_p10 = pnand %p3305_p9, %p3666_p7 }
  0x38   : > { %p3308_p11 = pneg %p3307_p10 }
  0x3a   : > { %p3313_p13 = pnand %p3311_p12, %p3308_p11 }
  0x3c   : > { %3316 = shalt.err (!%p3313_p13)
}
  0x3d   : > { %s3317_s9 = scalar_lea.vmem %s3646_s10, 16  ;;  %s3324_s26 = scalar_lea.vmem %s3646_s10, 32 }
  0x3e   : > { %p3318_p0 = scmp.ne.s32.totalorder %s3646_s10, %s3317_s9  ;;  %p3325_p6 = scmp.lt.s32.totalorder %s3646_s10, %s3646_s10 }
  0x3f   : > { %p3326_p8 = scmp.lt.s32.totalorder %s3324_s26, %s3317_s9 }
  0x40   : > { %p3320_p1 = pnand %p3318_p0, %p3666_p7 }
  0x41   : > { %p3327_p9 = por %p3326_p8, %p3325_p6 }
  0x42   : > { %p3321_p4 = pneg %p3320_p1 }
  0x44   : > { %p3328_p10 = pnand %p3327_p9, %p3321_p4 }
  0x46   : > { %3331 = shalt.err (!%p3328_p10)
}
  0x47   : > { %3171 = dma.hbm_to_vmem [thread:$0]  (!%p3650_p5), %s4172_s23, 16, %s3646_s10, [#allocation8]  }
  0x48   : > { %s3332_s6 = scalar_lea.hbm %s4168_s19, 16 }
  0x49   : > { %p3333_p11 = scmp.ne.s32.totalorder %s4168_s19, %s3332_s6  ;;  %p3339_p0 = scmp.lt.u32.totalorder %s3332_s6, %s4168_s19 }
  0x4b   : > { %p3335_p12 = pnand %p3333_p11, %p3666_p7 }
  0x4d   : > { %p3336_p13 = pneg %p3335_p12 }
  0x4f   : > { %p3341_p1 = pnand %p3339_p0, %p3336_p13 }
  0x51   : > { %3344 = shalt.err (!%p3341_p1)
}
  0x52   : > { %s3345_s10 = scalar_lea.vmem %s3654_s11, 16  ;;  %s3352_s26 = scalar_lea.vmem %s3654_s11, 32 }
  0x53   : > { %p3346_p4 = scmp.ne.s32.totalorder %s3654_s11, %s3345_s10  ;;  %p3353_p9 = scmp.lt.s32.totalorder %s3654_s11, %s3654_s11 }
  0x54   : > { %p3354_p10 = scmp.lt.s32.totalorder %s3352_s26, %s3345_s10 }
  0x55   : > { %p3348_p6 = pnand %p3346_p4, %p3666_p7 }
  0x56   : > { %p3355_p11 = por %p3354_p10, %p3353_p9 }
  0x57   : > { %p3349_p8 = pneg %p3348_p6 }
  0x59   : > { %p3356_p12 = pnand %p3355_p11, %p3349_p8 }
  0x5b   : > { %3359 = shalt.err (!%p3356_p12)
}
  0x5c   : > { %3162 = dma.hbm_to_vmem [thread:$0]  (!%p3650_p5), %s4168_s19, 16, %s3654_s11, [#allocation3]  }
  0x5d   : > { %s3360_s6 = scalar_lea.hbm %s4171_s22, 16 }
  0x5e   : > { %p3361_p13 = scmp.ne.s32.totalorder %s4171_s22, %s3360_s6  ;;  %p3367_p4 = scmp.lt.u32.totalorder %s3360_s6, %s4171_s22 }
  0x60   : > { %p3363_p0 = pnand %p3361_p13, %p3666_p7 }
  0x62   : > { %p3364_p1 = pneg %p3363_p0 }
  0x64   : > { %p3369_p6 = pnand %p3367_p4, %p3364_p1 }
  0x66   : > { %3372 = shalt.err (!%p3369_p6)
}
  0x67   : > { %s3373_s11 = scalar_lea.vmem %s3656_s7, 16  ;;  %s3380_s10 = scalar_lea.vmem %s3656_s7, 32 }
  0x68   : > { %p3374_p8 = scmp.ne.s32.totalorder %s3656_s7, %s3373_s11  ;;  %p3381_p11 = scmp.lt.s32.totalorder %s3656_s7, %s3656_s7 }
  0x69   : > { %p3382_p12 = scmp.lt.s32.totalorder %s3380_s10, %s3373_s11 }
  0x6a   : > { %p3376_p9 = pnand %p3374_p8, %p3666_p7 }
  0x6b   : > { %p3383_p13 = por %p3382_p12, %p3381_p11 }
  0x6c   : > { %p3377_p10 = pneg %p3376_p9 }
  0x6e   : > { %p3384_p0 = pnand %p3383_p13, %p3377_p10 }
  0x70   : > { %3387 = shalt.err (!%p3384_p0)
}
  0x71   : > { %3168 = dma.hbm_to_vmem [thread:$0]  (!%p3650_p5), %s4171_s22, 16, %s3656_s7, [#allocation5]  }
  0x72   : > { %s3472_s8 = smov [#allocation9]   ;;  %s3473_s5 = smov [#allocation10]  }
  0x73   : > { %s785_s4 = sshll.u32 %s3472_s8, 4  ;;  %s799_s6 = sshll.u32 %s3473_s5, 4  ;;  %s786_s4 = int_to_ptr.vmem [resolvable:$true] %s785_s4  ;;  %s800_s6 = int_to_ptr.vmem [resolvable:$true] %s799_s6 }
  0x74   : > { %s3388_s1 = scalar_lea.hbm %s4174_s25, 16 }
  0x75   : > { %p3389_p1 = scmp.ne.s32.totalorder %s4174_s25, %s3388_s1  ;;  %p3395_p8 = scmp.lt.u32.totalorder %s3388_s1, %s4174_s25 }
  0x77   : > { %p3391_p4 = pnand %p3389_p1, %p3666_p7 }
  0x79   : > { %p3392_p6 = pneg %p3391_p4 }
  0x7b   : > { %p3397_p9 = pnand %p3395_p8, %p3392_p6 }
  0x7d   : > { %3400 = shalt.err (!%p3397_p9)
}
  0x7e   : > { %s3401_s7 = scalar_lea.vmem %s786_s4, 16  ;;  %s3408_s28 = scalar_lea.vmem %s786_s4, 32 }
  0x7f   : > { %p3402_p10 = scmp.ne.s32.totalorder %s786_s4, %s3401_s7  ;;  %p3409_p13 = scmp.lt.s32.totalorder %s786_s4, %s786_s4 }
  0x80   : > { %p3410_p0 = scmp.lt.s32.totalorder %s3408_s28, %s3401_s7 }
  0x81   : > { %p3404_p11 = pnand %p3402_p10, %p3666_p7 }
  0x82   : > { %p3411_p2 = por %p3410_p0, %p3409_p13 }
  0x83   : > { %p3405_p12 = pneg %p3404_p11 }
  0x85   : > { %p3412_p3 = pnand %p3411_p2, %p3405_p12 }
  0x87   : > { %3415 = shalt.err (!%p3412_p3)
}
  0x88   : > { %3174 = dma.hbm_to_vmem [thread:$0]  (!%p3650_p5), %s4174_s25, 16, %s786_s4, [#allocation8]  }
  0x89   : > { %s3416_s1 = scalar_lea.hbm %s4176_s27, 16 }
  0x8a   : > { %p3417_p1 = scmp.ne.s32.totalorder %s4176_s27, %s3416_s1  ;;  %p3423_p3 = scmp.lt.u32.totalorder %s3416_s1, %s4176_s27 }
  0x8c   : > { %p3419_p4 = pnand %p3417_p1, %p3666_p7 }
  0x8e   : > { %p3420_p2 = pneg %p3419_p4 }
  0x90   : > { %p3425_p6 = pnand %p3423_p3, %p3420_p2 }
  0x92   : > { %3428 = shalt.err (!%p3425_p6)
}
  0x93   : > { %s3429_s7 = scalar_lea.vmem %s800_s6, 16  ;;  %s3436_s4 = scalar_lea.vmem %s800_s6, 32 }
  0x94   : > { %p3430_p8 = scmp.ne.s32.totalorder %s800_s6, %s3429_s7  ;;  %p3437_p11 = scmp.lt.s32.totalorder %s800_s6, %s800_s6 }
  0x95   : > { %p3438_p12 = scmp.lt.s32.totalorder %s3436_s4, %s3429_s7 }
  0x96   : > { %p3432_p9 = pnand %p3430_p8, %p3666_p7 }
  0x97   : > { %p3439_p13 = por %p3438_p12, %p3437_p11 }
  0x98   : > { %p3433_p10 = pneg %p3432_p9 }
  0x9a   : > { %p3440_p0 = pnand %p3439_p13, %p3433_p10 }
  0x9c   : > { %3443 = shalt.err (!%p3440_p0)
}
  0x9d   : > { %3177 = dma.hbm_to_vmem [thread:$0]  (!%p3650_p5), %s4176_s27, 16, %s800_s6, [#allocation11]  }
  0x9e   : > { %p4207_p1 = scmp.ne.s32.totalorder %s4204_s3, 0 }
  0x9f   : > { %p4208_p4 = scmp.eq.s32.totalorder (!%p4207_p1), %s3633_s30, 0 }
  0xa0   : > { %826 = sbr.rel (%p4207_p1) target bundleno = 4502 (0x1196), region = 132 }
  0xa7   : > { %3449 = dma.done.wait (%p4208_p4), [#allocation3], 16   ;;  %p4209_p7 = pmov %p4208_p4 }
  0xa8   : > { %p4210_p2 = pmov %p4208_p4 }
  0xa9   : > { %3451 = vsyncadd (%p4209_p7), [#allocation3], 4294967280 }
  0xaa   : > { %3453 = dma.done.wait (%p4210_p2), [#allocation5], 32   ;;  %p4211_p3 = pmov %p4210_p2 }
  0xab   : > { %p4212_p6 = pmov %p4210_p2 }
  0xac   : > { %3455 = vsyncadd (%p4211_p3), [#allocation5], 4294967264 }
  0xad   : > { %3457 = dma.done.wait (%p4212_p6), [#allocation8], 32   ;;  %p4213_p5 = pmov %p4210_p2 }
  0xae   : > { %p4214_p8 = pmov %p4210_p2 }
  0xaf   : > { %3459 = vsyncadd (%p4213_p5), [#allocation8], 4294967264 }
  0xb0   : > { %3461 = dma.done.wait (%p4214_p8), [#allocation11], 16   ;;  %p4215_p9 = pmov %p4210_p2 }
  0xb1   : > { %p922_p10 = scmp.lt.s32.totalorder %s3633_s30, 1  ;;  %s4216_s6 = sld [smem:[#allocation17_spill]]  ;;  %vm1005_vm0 = vcmask 261120   ;;  %v3474_v8 = vmov 0.0   ;;  %vm3475_vm1 = vmmov 0   ;;  %vm1215_vm2 = vcmask 64512  }
  0xb2   : > { %3463 = vsyncadd (%p4215_p9), [#allocation11], 4294967280  ;;  %s4217_s12 = sld [smem:[#allocation21_spill]]  ;;  %2947 = vmatprep.subr.bf16.mxu0 %v3474_v8  ;;  %2971 = vmatprep.subr.bf16.mxu1 %v3474_v8  ;;  %s4218_s26 = sld [smem:[#allocation19_spill]]  ;;  %vm1284_vm3 = vcmask 1043456   ;;  %v1263_v56 = vlaneseq  ;;  %vm1680_vm5 = vcmask 130048  }
  0xb3   : > { %s4235_s30 = smov (!%p922_p10, %s3633_s30), 1  ;;  %2951 = vmatprep.mubr.msk.bf16.mxu0 %vm3475_vm1, %v3474_v8  ;;  %2973 = vmatprep.mubr.msk.bf16.mxu1 %vm3475_vm1, %v3474_v8  ;;  %s4219_s28 = sld [smem:[#allocation20_spill]]  ;;  %vm1682_vm6 = vcmask 195584  }
  0xb4   : > { %s3816_s3 = sshll.u32 %s4235_s30, 3  ;;  %s4220_s0 = sld [smem:[#allocation23_spill]]  ;;  %v1264_v57 = vshrl.u32 %v1263_v56, 7  ;;  %v1266_v58 = vand.u32 127, %v1263_v56 }
  0xb5   : > { %s4221_s1 = sld [smem:[#allocation25_spill]]  ;;  %s4222_s7 = sld [smem:[#allocation24_spill]] }
  0xb6   : > { %s4223_s8 = sld [smem:[#allocation22_spill]]  ;;  %s3476_s29 = smov 112   ;;  %vm1267_vm4 = vcmp.le.s32.totalorder %v1266_v58, %v1264_v57 }
  0xb7   : > { %s925_s5 = scalar_lea.vmem %s4216_s6, %s3816_s3  ;;  %s3477_s6 = smov 120  }
  0xb8   : > { %v1003_v0 = vld [vmem:[%s925_s5] sm:$0xff]  ;;  %v3213_v9 = vld [vmem:[%s4217_s12 + $0x8] sm:$0xff]   ;;  %s4224_s30 = sld [smem:[#allocation26_spill]]  ;;  %s3478_s9 = smov 104  }
  0xb9   : > { %v1006_v1 = vsel %vm1005_vm0, %v1003_v0, 0.0  ;;  %v3212_v7 = vld [vmem:[%s4217_s12] sm:$0xff]   ;;  %s4187_s4 = smov 16   ;;  %s4186_s5 = smov 24  }
  0xba   : > { %1007 = vadd.xlane.f32.xlu0 %v1006_v1  ;;  %2948 = vmatpush3.bf16.msra.mxu0 %v3212_v7  ;;  %v2810_v14 = vld [vmem:[%s4218_s26] ss:$0 sm:$0xff]  ;;  %v3215_v21 = vld [vmem:[%s4220_s0 + $0x8] sm:$0xff]   ;;  %s4225_s26 = sld [smem:[#allocation27_spill]]  ;;  %s4226_s11 = sld [smem:[#allocation28_spill]] }
  0xbb   : > { %2949 = vmatprep.subr.bf16.mxu0 %v3474_v8  ;;  %v2811_v16 = vld [vmem:[%s4219_s28] ss:$0 sm:$0xff]  ;;  %v3217_v23 = vld [vmem:[%s4221_s1 + $0x8] sm:$0xff]  }
  0xbc   : > { %v3214_v19 = vld [vmem:[%s4220_s0] sm:$0xff]  }
  0xbd   : > { %v3216_v22 = vld [vmem:[%s4221_s1] sm:$0xff]  }
  0xbe   : > { %2950 = vmatpush3.bf16.msra.mxu0 %v3213_v9  ;;  %v2816_v28 = vld [vmem:[%s4222_s7] ss:$0 sm:$0xff]  ;;  %s3479_s7 = smov 8  }
  0xbf   : > { %2955 = vmatprep.subr.bf16.mxu0 %v3474_v8  ;;  %v2812_v29 = vld [vmem:[%s4223_s8] ss:$0 sm:$0xff]  ;;  %s4227_s8 = sld [smem:[#allocation18_spill]] }
  0xc0   : > { %v2820_v38 = vld [vmem:[%s4224_s30] ss:$0 sm:$0xff]  ;;  %s4228_s30 = sld [smem:[#allocation29_spill]] }
  0xc5   : > { %s929_s2 = scalar_lea.vmem %s4227_s8, %s3816_s3 }
 0x147   : > { %v1008_v2 = vpop.xlane.xlu0 %1007 }
 0x148   : > { %v1010_v3 = vmul.f32 0.03125, %v1008_v2 }
 0x14a   : > { %v1011_v4 = vsub.f32 %v1003_v0, %v1010_v3 }
 0x14c   : > { %v1012_v5 = vmul.f32 %v1011_v4, %v1011_v4 }
 0x14e   : > { %v1013_v6 = vsel %vm1005_vm0, %v1012_v5, 0.0 }
 0x14f   : > { %1014 = vadd.xlane.f32.xlu0 %v1013_v6 }
 0x1dc   : > { %v1015_v10 = vpop.xlane.xlu0 %1014 }
 0x1dd   : > { %v1016_v11 = vmul.f32 0.03125, %v1015_v10 }
 0x1df   : > { %v1017_v12 = vadd.f32 1e-05, %v1016_v11 }
 0x1e1   : > { %3238 = vrsqrt.f32 %v1017_v12 }
 0x1eb   : > { %v3239_v13 = vpop.eup %3238 }
 0x1ec   : > { %v1019_v15 = vmul.f32 %v3239_v13, %v1011_v4 }
 0x1ee   : > { %v1026_v17 = vmul.f32 %v2810_v14, %v1019_v15 }
 0x1f0   : > { %v3844_v18 = vadd.f32 %v2811_v16, %v1026_v17 }
 0x1f2   : > { %v1034_v20 = vpack.c.bf16 %v3844_v18, %v3844_v18 }
 0x1f4   : > { %2952 = vmatmul.mubr.msk.bf16.vlgmr.msra.gmra.mrb[0].mxu0 %vm1005_vm0, %v1034_v20 }
 0x1f5   : > { %2956 = vmatpush3.bf16.msra.mxu0 %v3214_v19  ;;  %2959 = vmatprep.mubr.msk.bf16.mxu0 %vm3475_vm1, %v3474_v8 }
 0x1f6   : > { %2957 = vmatprep.subr.bf16.mxu0 %v3474_v8 }
 0x1f9   : > { %2958 = vmatpush3.bf16.msra.mxu0 %v3215_v21 }
 0x1fa   : > { %2963 = vmatprep.subr.bf16.mxu0 %v3474_v8 }
 0x1fc   : > { %2960 = vmatmul.mubr.msk.bf16.vlgmr.msra.gmra.mrb[4].mxu0 %vm1005_vm0, %v1034_v20 }
 0x1fd   : > { %2964 = vmatpush3.bf16.msra.mxu0 %v3216_v22  ;;  %2967 = vmatprep.mubr.msk.bf16.mxu0 %vm3475_vm1, %v3474_v8 }
 0x1fe   : > { %2965 = vmatprep.subr.bf16.mxu0 %v3474_v8 }
 0x201   : > { %2966 = vmatpush3.bf16.msra.mxu0 %v3217_v23 }
 0x202   : > { %2977 = vmatprep.subr.bf16.mxu0 %v3474_v8 }
 0x204   : > { %2968 = vmatmul.mubr.msk.bf16.vlgmr.msra.gmra.mrb[8].mxu0 %vm1005_vm0, %v1034_v20 }
 0x205   : > { %2979 = vmatprep.mubr.msk.bf16.mxu0 %vm3475_vm1, %v3474_v8 }
 0x2c7   : > { %v1090_v24 = vpop.f32.mrb[0].mxu0 }
 0x2c8   : > { %v2953_v25 = vpop.f32.mrb[1].mxu0  ;;  %v1091_v34 = vadd.f32 %v2812_v29, %v1090_v24 }
 0x2c9   : > { %v1093_v26 = vpop.f32.mrb[2].mxu0 }
 0x2ca   : > { %v2954_v27 = vpop.f32.mrb[3].mxu0  ;;  %v1212_v39 = vpack.c.bf16 %v1091_v34, %v1091_v34 }
 0x2cf   : > { %v1148_v30 = vpop.f32.mrb[4].mxu0 }
 0x2d0   : > { %v1149_v31 = vadd.f32 %v2816_v28, %v1148_v30  ;;  %v2961_v32 = vpop.f32.mrb[5].mxu0 }
 0x2d1   : > { %v1151_v33 = vpop.f32.mrb[6].mxu0 }
 0x2d2   : > { %v1213_v35 = vpack.c.bf16 %v1149_v31, %v1149_v31  ;;  %v2962_v36 = vpop.f32.mrb[7].mxu0 }
 0x2d4   : > { %1445 = vrot.lane.b32.xlu0 %v1213_v35, %s3476_s29  ;;  %1332 = vrot.lane.b32.xlu1 %v1213_v35, %s3477_s6  ;;  %v1220_v37 = vsel %vm1215_vm2, %v1213_v35, 0 }
 0x2d5   : > { %2972 = vmatpush3.bf16.xpose.msra.mxu1 %v1220_v37 }
 0x2d6   : > { %2983 = vmatprep.subr.bf16.mxu1 %v3474_v8 }
 0x2d7   : > { %v1206_v40 = vpop.f32.mrb[8].mxu0 }
 0x2d8   : > { %v1207_v41 = vadd.f32 %v2820_v38, %v1206_v40  ;;  %1329 = vrot.lane.b32.xlu1 %v1212_v39, %s3477_s6  ;;  %v2969_v42 = vpop.f32.mrb[9].mxu0 }
 0x2d9   : > { %v1209_v43 = vpop.f32.mrb[10].mxu0 }
 0x2da   : > { %v3887_v44 = vpack.c.bf16 %v1207_v41, %v1207_v41  ;;  %v2970_v45 = vpop.f32.mrb[11].mxu0 }
 0x2dc   : > { %1443 = vrot.lane.b32.xlu1 %v1212_v39, %s3476_s29  ;;  %2974 = vmatmul.mubr.msk.bf16.vlgmr.msra.gmra.mrb[0].mxu1 %vm1215_vm2, %v1212_v39  ;;  %v1286_v46 = vsel %vm1284_vm3, %v3887_v44, 0 }
 0x2dd   : > { %2978 = vmatpush3.bf16.msra.mxu0 %v1286_v46  ;;  %2985 = vmatprep.mubr.msk.bf16.mxu1 %vm3475_vm1, %v3474_v8 }
 0x2de   : > { %2989 = vmatprep.subr.bf16.mxu0 %v3474_v8 }
 0x2e0   : > { %1557 = vrot.lane.b32.xlu1 %v1213_v35, %s3478_s9 }
 0x2e4   : > { %1555 = vrot.lane.b32.xlu1 %v1212_v39, %s3478_s9 }
 0x346   : > { %v1333_v47 = vpop.permute.xlu1 %1332  ;;  %v1446_v50 = vpop.permute.xlu0 %1445 }
 0x347   : > { %v1338_v48 = vsel %vm1215_vm2, %v1333_v47, 0  ;;  %v1451_v52 = vsel %vm1215_vm2, %v1446_v50, 0 }
 0x348   : > { %2984 = vmatpush3.bf16.xpose.msra.mxu1 %v1338_v48 }
 0x349   : > { %2995 = vmatprep.subr.bf16.mxu1 %v3474_v8 }
 0x34a   : > { %v1330_v49 = vpop.permute.xlu1 %1329 }
 0x34e   : > { %v1444_v51 = vpop.permute.xlu1 %1443 }
 0x34f   : > { %2986 = vmatmul.mubr.msk.bf16.vlgmr.msra.gmra.mrb[4].mxu1 %vm1215_vm2, %v1330_v49 }
 0x350   : > { %2996 = vmatpush3.bf16.xpose.msra.mxu1 %v1451_v52  ;;  %2997 = vmatprep.mubr.msk.bf16.mxu1 %vm3475_vm1, %v3474_v8 }
 0x351   : > { %3007 = vmatprep.subr.bf16.mxu1 %v3474_v8 }
 0x352   : > { %v1558_v53 = vpop.permute.xlu1 %1557 }
 0x353   : > { %v1563_v54 = vsel %vm1215_vm2, %v1558_v53, 0 }
 0x356   : > { %v1556_v55 = vpop.permute.xlu1 %1555 }
 0x357   : > { %2998 = vmatmul.mubr.msk.bf16.vlgmr.msra.gmra.mrb[8].mxu1 %vm1215_vm2, %v1444_v51 }
 0x358   : > { %3008 = vmatpush3.bf16.xpose.msra.mxu1 %v1563_v54  ;;  %3009 = vmatprep.mubr.msk.bf16.mxu1 %vm3475_vm1, %v3474_v8 }
 0x359   : > { %3019 = vmatprep.subr.bf16.mxu1 %v3474_v8 }
 0x35f   : > { %3010 = vmatmul.mubr.msk.bf16.vlgmr.msra.gmra.mrb[12].mxu1 %vm1215_vm2, %v1556_v55 }
 0x360   : > { %3023 = vmatprep.mubr.msk.bf16.mxu1 %vm3475_vm1, %v3474_v8 }
 0x3af   : > { %v1256_v59 = vpop.f32.mrb[0].mxu1 }
 0x3b0   : > { %v1262_v60 = vmul.f32 0.35355338, %v1256_v59  ;;  %v2975_v61 = vpop.f32.mrb[1].mxu1 }
 0x3b1   : > { %v1259_v62 = vpop.f32.mrb[2].mxu1 }
 0x3b2   : > { %v2976_v63 = vpop.f32.mrb[3].mxu1  ;;  %v1268_v0 = vsel %vm1267_vm4, %v1262_v60, -inf }
 0x3b3   : > { %v1269_v1 = vsel %vm1215_vm2, %v1268_v0, -inf }
 0x3b4   : > { %1270 = vmax.xlane.f32.xlu1 %v1269_v1 }
 0x422   : > { %v1374_v2 = vpop.f32.mrb[4].mxu1 }
 0x423   : > { %v1380_v3 = vmul.f32 0.35355338, %v1374_v2  ;;  %v2987_v4 = vpop.f32.mrb[5].mxu1 }
 0x424   : > { %v1377_v5 = vpop.f32.mrb[6].mxu1 }
 0x425   : > { %v2988_v6 = vpop.f32.mrb[7].mxu1  ;;  %v1381_v7 = vsel %vm1267_vm4, %v1380_v3, -inf }
 0x426   : > { %v1382_v9 = vsel %vm1215_vm2, %v1381_v7, -inf }
 0x427   : > { %1383 = vmax.xlane.f32.xlu0 %v1382_v9 }
 0x42a   : > { %v1487_v10 = vpop.f32.mrb[8].mxu1 }
 0x42b   : > { %v1493_v11 = vmul.f32 0.35355338, %v1487_v10  ;;  %v2999_v12 = vpop.f32.mrb[9].mxu1 }
 0x42c   : > { %v1490_v13 = vpop.f32.mrb[10].mxu1 }
 0x42d   : > { %v3000_v14 = vpop.f32.mrb[11].mxu1  ;;  %v1494_v15 = vsel %vm1267_vm4, %v1493_v11, -inf }
 0x42e   : > { %v1495_v16 = vsel %vm1215_vm2, %v1494_v15, -inf }
 0x42f   : > { %1496 = vmax.xlane.f32.xlu1 %v1495_v16 }
 0x432   : > { %v1599_v17 = vpop.f32.mrb[12].mxu1 }
 0x433   : > { %v1605_v19 = vmul.f32 0.35355338, %v1599_v17  ;;  %v3011_v20 = vpop.f32.mrb[13].mxu1  ;;  %v3219_v17 = vld [vmem:[%s4225_s26 + $0x8] sm:$0xff]  }
 0x434   : > { %v1602_v21 = vpop.f32.mrb[14].mxu1 }
 0x435   : > { %v3012_v22 = vpop.f32.mrb[15].mxu1  ;;  %v1606_v23 = vsel %vm1267_vm4, %v1605_v19, -inf }
 0x436   : > { %v1607_v24 = vsel %vm1215_vm2, %v1606_v23, -inf }
 0x437   : > { %1608 = vmax.xlane.f32.xlu1 %v1607_v24 }
 0x441   : > { %v1271_v25 = vpop.xlane.xlu1 %1270 }
 0x442   : > { %v1272_v26 = vsub.f32 %v1268_v0, %v1271_v25 }
 0x444   : > { %v1273_v27 = vmul.f32 1.442695, %v1272_v26 }
 0x446   : > { %3240 = vpow2.f32 %v1273_v27 }
 0x450   : > { %v3241_v28 = vpop.eup %3240 }
 0x451   : > { %v1275_v29 = vsel %vm1215_vm2, %v3241_v28, 0.0 }
 0x452   : > { %1276 = vadd.xlane.f32.xlu0 %v1275_v29 }
 0x4b4   : > { %v1384_v30 = vpop.xlane.xlu0 %1383 }
 0x4b5   : > { %v1385_v31 = vsub.f32 %v1381_v7, %v1384_v30  ;;  %v3218_v7 = vld [vmem:[%s4225_s26] sm:$0xff]  }
 0x4b6   : > { %3020 = vmatpush3.bf16.msra.mxu1 %v3218_v7  ;;  %v2832_v30 = vld [vmem:[%s4226_s11] ss:$0 sm:$0xff] }
 0x4b7   : > { %v1386_v32 = vmul.f32 1.442695, %v1385_v31  ;;  %3021 = vmatprep.subr.bf16.mxu1 %v3474_v8 }
 0x4b9   : > { %3242 = vpow2.f32 %v1386_v32 }
 0x4ba   : > { %3022 = vmatpush3.bf16.msra.mxu1 %v3219_v17 }
 0x4bb   : > { %3035 = vmatprep.subr.bf16.mxu1 %v3474_v8 }
 0x4bc   : > { %v1497_v33 = vpop.xlane.xlu1 %1496 }
 0x4bd   : > { %v1498_v34 = vsub.f32 %v1494_v15, %v1497_v33 }
 0x4bf   : > { %v1499_v35 = vmul.f32 1.442695, %v1498_v34 }
 0x4c1   : > { %3244 = vpow2.f32 %v1499_v35 }
 0x4c3   : > { %v3243_v36 = vpop.eup %3242 }
 0x4c4   : > { %v1388_v37 = vsel %vm1215_vm2, %v3243_v36, 0.0  ;;  %v1609_v41 = vpop.xlane.xlu1 %1608 }
 0x4c5   : > { %1389 = vadd.xlane.f32.xlu1 %v1388_v37  ;;  %v1610_v42 = vsub.f32 %v1606_v23, %v1609_v41 }
 0x4c7   : > { %v1611_v43 = vmul.f32 1.442695, %v1610_v42 }
 0x4cb   : > { %v3245_v38 = vpop.eup %3244 }
 0x4cc   : > { %v1501_v39 = vsel %vm1215_vm2, %v3245_v38, 0.0 }
 0x4cd   : > { %1502 = vadd.xlane.f32.xlu0 %v1501_v39 }
 0x4d6   : > { %1507 = vrot.lane.b32.xlu1 %v3887_v44, %s3476_s29 }
 0x4df   : > { %v1277_v40 = vpop.xlane.xlu0 %1276 }
 0x4e0   : > { %3246 = vrcp.f32 %v1277_v40 }
 0x4e1   : > { %3248 = vpow2.f32 %v1611_v43  ;;  %v3220_v43 = vld [vmem:[%s4165_s16] sm:$0xff]  }
 0x4e3   : > { %1395 = vrot.lane.b32.xlu0 %v3887_v44, %s3477_s6 }
 0x4ea   : > { %v3247_v45 = vpop.eup %3246 }
 0x4eb   : > { %v1279_v46 = vmul.f32 %v3247_v45, %v3241_v28  ;;  %v3249_v48 = vpop.eup %3248  ;;  %v1004_v45 = vld [vmem:[%s929_s2] sm:$0xff]  ;;  %s4230_s2 = smov 24  }
 0x4ec   : > { %v1613_v49 = vsel %vm1215_vm2, %v3249_v48, 0.0 }
 0x4ed   : > { %v1280_v47 = vpack.c.bf16 %v1279_v46, %v1279_v46  ;;  %v1836_v46 = vpack.c.bf16 %v1004_v45, %v1004_v45 }
 0x4ef   : > { %2980 = vmatmul.mubr.msk.bf16.vlgmr.msra.gmra.mrb[12].mxu0 %vm1215_vm2, %v1280_v47  ;;  %v3222_v47 = vld [vmem:[%s4163_s14] sm:$0xff]  }
 0x4f0   : > { %2991 = vmatprep.mubr.msk.bf16.mxu0 %vm3475_vm1, %v3474_v8 }
 0x4fa   : > { %1614 = vadd.xlane.f32.xlu1 %v1613_v49 }
 0x50b   : > { %1619 = vrot.lane.b32.xlu1 %v3887_v44, %s3478_s9 }
 0x552   : > { %v1390_v50 = vpop.xlane.xlu1 %1389 }
 0x553   : > { %3250 = vrcp.f32 %v1390_v50 }
 0x556   : > { %v1508_v56 = vpop.permute.xlu1 %1507 }
 0x557   : > { %v1513_v58 = vsel %vm1284_vm3, %v1508_v56, 0 }
 0x55a   : > { %v1503_v51 = vpop.xlane.xlu0 %1502 }
 0x55b   : > { %3252 = vrcp.f32 %v1503_v51 }
 0x55d   : > { %v3251_v52 = vpop.eup %3250 }
 0x55e   : > { %v1392_v53 = vmul.f32 %v3251_v52, %v3243_v36  ;;  %v1396_v54 = vpop.permute.xlu0 %1395 }
 0x55f   : > { %v1401_v55 = vsel %vm1284_vm3, %v1396_v54, 0 }
 0x560   : > { %2990 = vmatpush3.bf16.msra.mxu0 %v1401_v55  ;;  %v1393_v57 = vpack.c.bf16 %v1392_v53, %v1392_v53  ;;  %v2836_v53 = vld [vmem:[%s4228_s30] ss:$0 sm:$0xff] }
 0x561   : > { %3001 = vmatprep.subr.bf16.mxu0 %v3474_v8  ;;  %v2837_v55 = vld [vmem:[%s4162_s13] ss:$0 sm:$0xff] }
 0x563   : > { %2992 = vmatmul.mubr.msk.bf16.vlgmr.msra.gmra.mrb[16].mxu0 %vm1215_vm2, %v1393_v57 }
 0x564   : > { %3002 = vmatpush3.bf16.msra.mxu0 %v1513_v58  ;;  %3003 = vmatprep.mubr.msk.bf16.mxu0 %vm3475_vm1, %v3474_v8 }
 0x565   : > { %v3253_v44 = vpop.eup %3252  ;;  %3013 = vmatprep.subr.bf16.mxu0 %v3474_v8 }
 0x566   : > { %v1505_v59 = vmul.f32 %v3253_v44, %v3245_v38  ;;  %v2842_v44 = vld [vmem:[%s4166_s17] ss:$0 sm:$0xff] }
 0x568   : > { %v1506_v60 = vpack.c.bf16 %v1505_v59, %v1505_v59 }
 0x56b   : > { %3004 = vmatmul.mubr.msk.bf16.vlgmr.msra.gmra.mrb[20].mxu0 %vm1215_vm2, %v1506_v60 }
 0x56c   : > { %3015 = vmatprep.mubr.msk.bf16.mxu0 %vm3475_vm1, %v3474_v8 }
 0x587   : > { %v1615_v61 = vpop.xlane.xlu1 %1614 }
 0x588   : > { %3254 = vrcp.f32 %v1615_v61 }
 0x58b   : > { %v1620_v62 = vpop.permute.xlu1 %1619 }
 0x58c   : > { %v1625_v63 = vsel %vm1284_vm3, %v1620_v62, 0 }
 0x58d   : > { %3014 = vmatpush3.bf16.msra.mxu0 %v1625_v63 }
 0x58e   : > { %3027 = vmatprep.subr.bf16.mxu0 %v3474_v8 }
 0x592   : > { %v3255_v0 = vpop.eup %3254 }
 0x593   : > { %v1617_v1 = vmul.f32 %v3255_v0, %v3249_v48  ;;  %v3223_v48 = vld [vmem:[%s4163_s14 + $0x8] sm:$0xff]  }
 0x595   : > { %v1618_v2 = vpack.c.bf16 %v1617_v1, %v1617_v1 }
 0x597   : > { %3016 = vmatmul.mubr.msk.bf16.vlgmr.msra.gmra.mrb[24].mxu0 %vm1215_vm2, %v1618_v2  ;;  %v2838_v2 = vld [vmem:[%s4164_s15] ss:$0 sm:$0xff] }
 0x598   : > { %3031 = vmatprep.mubr.msk.bf16.mxu0 %vm3475_vm1, %v3474_v8  ;;  %3028 = vmatpush3.bf16.msra.mxu0 %v3222_v47 }
 0x599   : > { %3029 = vmatprep.subr.bf16.mxu0 %v3474_v8 }
 0x59c   : > { %3030 = vmatpush3.bf16.msra.mxu0 %v3223_v48 }
 0x59d   : > { %3043 = vmatprep.subr.bf16.mxu0 %v3474_v8 }
 0x5c2   : > { %v1322_v3 = vpop.f32.mrb[12].mxu0 }
 0x5c3   : > { %v2981_v4 = vpop.f32.mrb[13].mxu0 }
 0x5c4   : > { %v1325_v5 = vpop.f32.mrb[14].mxu0 }
 0x5c5   : > { %v2982_v6 = vpop.f32.mrb[15].mxu0 }
 0x636   : > { %v1437_v9 = vpop.f32.mrb[16].mxu0 }
 0x637   : > { %1668 = vrot.lane.b32.xlu0 %v1437_v9, %s3479_s7  ;;  %v2993_v10 = vpop.f32.mrb[17].mxu0 }
 0x638   : > { %v1440_v11 = vpop.f32.mrb[18].mxu0 }
 0x639   : > { %v2994_v12 = vpop.f32.mrb[19].mxu0 }
 0x63a   : > { %v3224_v12 = vld [vmem:[%s4167_s18] sm:$0xff]  }
 0x63e   : > { %v1549_v13 = vpop.f32.mrb[20].mxu0 }
 0x63f   : > { %1672 = vrot.lane.b32.xlu1 %v1549_v13, %s4187_s4  ;;  %v3005_v14 = vpop.f32.mrb[21].mxu0  ;;  %v3225_v13 = vld [vmem:[%s4167_s18 + $0x8] sm:$0xff]  }
 0x640   : > { %v1552_v15 = vpop.f32.mrb[22].mxu0 }
 0x641   : > { %v3006_v16 = vpop.f32.mrb[23].mxu0 }
 0x66a   : > { %v1661_v19 = vpop.f32.mrb[24].mxu0 }
 0x66b   : > { %1676 = vrot.lane.b32.xlu0 %v1661_v19, %s4186_s5  ;;  %v3017_v20 = vpop.f32.mrb[25].mxu0 }
 0x66c   : > { %v1664_v21 = vpop.f32.mrb[26].mxu0 }
 0x66d   : > { %v3018_v22 = vpop.f32.mrb[27].mxu0 }
 0x6a9   : > { %v1669_v23 = vpop.permute.xlu0 %1668 }
 0x6aa   : > { %v1679_v25 = vsel %vm1215_vm2, %v1322_v3, %v1669_v23 }
 0x6b1   : > { %v1673_v24 = vpop.permute.xlu1 %1672 }
 0x6b2   : > { %v1681_v26 = vsel %vm1680_vm5, %v1679_v25, %v1673_v24 }
 0x6dd   : > { %v1677_v27 = vpop.permute.xlu0 %1676 }
 0x6de   : > { %v1683_v28 = vsel %vm1682_vm6, %v1681_v26, %v1677_v27 }
 0x6df   : > { %v1684_v29 = vpack.c.bf16 %v1683_v28, %v1683_v28 }
 0x6e1   : > { %3024 = vmatmul.mubr.msk.bf16.vlgmr.msra.gmra.mrb[16].mxu1 %vm1005_vm0, %v1684_v29 }
 0x6e2   : > { %3039 = vmatprep.mubr.msk.bf16.mxu1 %vm3475_vm1, %v3474_v8  ;;  %3036 = vmatpush3.bf16.msra.mxu1 %v3220_v43 }
 0x6e3   : > { %3037 = vmatprep.subr.bf16.mxu1 %v3474_v8 }
 0x7b4   : > { %v1740_v31 = vpop.f32.mrb[16].mxu1 }
 0x7b5   : > { %v1741_v32 = vadd.f32 %v2832_v30, %v1740_v31  ;;  %v3025_v33 = vpop.f32.mrb[17].mxu1 }
 0x7b6   : > { %v1743_v34 = vpop.f32.mrb[18].mxu1 }
 0x7b7   : > { %v3026_v35 = vpop.f32.mrb[19].mxu1  ;;  %v1746_v36 = vadd.f32 %v1741_v32, %v3844_v18  ;;  %v3221_v18 = vld [vmem:[%s4165_s16 + $0x8] sm:$0xff]  }
 0x7b8   : > { %3038 = vmatpush3.bf16.msra.mxu1 %v3221_v18 }
 0x7b9   : > { %v1747_v37 = vsel %vm1005_vm0, %v1746_v36, 0.0  ;;  %3051 = vmatprep.subr.bf16.mxu1 %v3474_v8 }
 0x7ba   : > { %1748 = vadd.xlane.f32.xlu1 %v1747_v37 }
 0x7bb   : > { %3040 = vmatmul.mubr.msk.bf16.vlgmr.msra.gmra.mrb[20].mxu1 %vm1005_vm0, %v1836_v46 }
 0x7bc   : > { %3053 = vmatprep.mubr.msk.bf16.mxu1 %vm3475_vm1, %v3474_v8 }
 0x847   : > { %v1749_v38 = vpop.xlane.xlu1 %1748 }
 0x848   : > { %v1750_v39 = vmul.f32 0.03125, %v1749_v38 }
 0x84a   : > { %v1751_v40 = vsub.f32 %v1746_v36, %v1750_v39 }
 0x84c   : > { %v1752_v41 = vmul.f32 %v1751_v40, %v1751_v40 }
 0x84e   : > { %v1753_v42 = vsel %vm1005_vm0, %v1752_v41, 0.0 }
 0x84f   : > { %1754 = vadd.xlane.f32.xlu0 %v1753_v42 }
 0x88e   : > { %v1892_v59 = vpop.f32.mrb[20].mxu1 }
 0x88f   : > { %v1893_v60 = vadd.f32 %v2842_v44, %v1892_v59  ;;  %v3041_v61 = vpop.f32.mrb[21].mxu1 }
 0x890   : > { %v1895_v62 = vpop.f32.mrb[22].mxu1 }
 0x891   : > { %v1957_v63 = vpack.c.bf16 %v1893_v60, %v1893_v60  ;;  %v3042_v0 = vpop.f32.mrb[23].mxu1 }
 0x893   : > { %2068 = vrot.lane.b32.xlu0 %v1957_v63, %s3477_s6  ;;  %v1963_v1 = vsel %vm1215_vm2, %v1957_v63, 0 }
 0x894   : > { %3052 = vmatpush3.bf16.xpose.msra.mxu1 %v1963_v1 }
 0x895   : > { %3063 = vmatprep.subr.bf16.mxu1 %v3474_v8 }
 0x8dc   : > { %v1755_v49 = vpop.xlane.xlu0 %1754 }
 0x8dd   : > { %v1756_v50 = vmul.f32 0.03125, %v1755_v49  ;;  %v2846_v49 = vld [vmem:[#allocation2] ss:$0 sm:$0xff] }
 0x8df   : > { %v1757_v51 = vadd.f32 1e-05, %v1756_v50 }
 0x8e1   : > { %3256 = vrsqrt.f32 %v1757_v51 }
 0x8eb   : > { %v3257_v52 = vpop.eup %3256 }
 0x8ec   : > { %v1759_v54 = vmul.f32 %v3257_v52, %v1751_v40 }
 0x8ee   : > { %v1766_v56 = vmul.f32 %v2836_v53, %v1759_v54 }
 0x8f0   : > { %v4001_v57 = vadd.f32 %v2837_v55, %v1766_v56 }
 0x8f2   : > { %v1774_v58 = vpack.c.bf16 %v4001_v57, %v4001_v57 }
 0x8f4   : > { %3032 = vmatmul.mubr.msk.bf16.vlgmr.msra.gmra.mrb[28].mxu0 %vm1005_vm0, %v1774_v58 }
 0x8f5   : > { %3047 = vmatprep.mubr.msk.bf16.mxu0 %vm3475_vm1, %v3474_v8  ;;  %3044 = vmatpush3.bf16.msra.mxu0 %v3224_v12 }
 0x8f6   : > { %3045 = vmatprep.subr.bf16.mxu0 %v3474_v8 }
 0x8f9   : > { %3046 = vmatpush3.bf16.msra.mxu0 %v3225_v13 }
 0x8fa   : > { %3057 = vmatprep.subr.bf16.mxu0 %v3474_v8 }
 0x8fc   : > { %3048 = vmatmul.mubr.msk.bf16.vlgmr.msra.gmra.mrb[32].mxu0 %vm1005_vm0, %v1836_v46 }
 0x8fd   : > { %3059 = vmatprep.mubr.msk.bf16.mxu0 %vm3475_vm1, %v3474_v8 }
 0x905   : > { %v2069_v6 = vpop.permute.xlu0 %2068 }
 0x906   : > { %v2074_v11 = vsel %vm1215_vm2, %v2069_v6, 0 }
 0x9c7   : > { %v1830_v3 = vpop.f32.mrb[28].mxu0 }
 0x9c8   : > { %v1831_v4 = vadd.f32 %v2838_v2, %v1830_v3  ;;  %v3033_v5 = vpop.f32.mrb[29].mxu0 }
 0x9c9   : > { %v1833_v7 = vpop.f32.mrb[30].mxu0 }
 0x9ca   : > { %v1956_v9 = vpack.c.bf16 %v1831_v4, %v1831_v4  ;;  %v3034_v10 = vpop.f32.mrb[31].mxu0 }
 0x9cc   : > { %2178 = vrot.lane.b32.xlu0 %v1956_v9, %s3476_s29  ;;  %2065 = vrot.lane.b32.xlu1 %v1956_v9, %s3477_s6 }
 0x9cd   : > { %3054 = vmatmul.mubr.msk.bf16.vlgmr.msra.gmra.mrb[24].mxu1 %vm1215_vm2, %v1956_v9 }
 0x9ce   : > { %3064 = vmatpush3.bf16.xpose.msra.mxu1 %v2074_v11  ;;  %3065 = vmatprep.mubr.msk.bf16.mxu1 %vm3475_vm1, %v3474_v8 }
 0x9cf   : > { %3075 = vmatprep.subr.bf16.mxu1 %v3474_v8  ;;  %v1950_v50 = vpop.f32.mrb[32].mxu0 }
 0x9d0   : > { %2289 = vrot.lane.b32.xlu0 %v1956_v9, %s3478_s9  ;;  %2180 = vrot.lane.b32.xlu1 %v1957_v63, %s3476_s29  ;;  %v1951_v51 = vadd.f32 %v2846_v49, %v1950_v50  ;;  %v3049_v52 = vpop.f32.mrb[33].mxu0 }
 0x9d1   : > { %v1953_v53 = vpop.f32.mrb[34].mxu0 }
 0x9d2   : > { %v3050_v54 = vpop.f32.mrb[35].mxu0  ;;  %v1958_v58 = vpack.c.bf16 %v1951_v51, %v1951_v51 }
 0x9d4   : > { %2291 = vrot.lane.b32.xlu1 %v1957_v63, %s3478_s9  ;;  %v2022_v44 = vsel %vm1284_vm3, %v1958_v58, 0 }
 0x9d5   : > { %3058 = vmatpush3.bf16.msra.mxu0 %v2022_v44 }
 0x9d6   : > { %3069 = vmatprep.subr.bf16.mxu0 %v3474_v8 }
 0xa3e   : > { %v2066_v14 = vpop.permute.xlu1 %2065  ;;  %v2179_v19 = vpop.permute.xlu0 %2178 }
 0xa3f   : > { %3066 = vmatmul.mubr.msk.bf16.vlgmr.msra.gmra.mrb[28].mxu1 %vm1215_vm2, %v2066_v14 }
 0xa40   : > { %3077 = vmatprep.mubr.msk.bf16.mxu1 %vm3475_vm1, %v3474_v8 }
 0xa42   : > { %v2181_v15 = vpop.permute.xlu1 %2180  ;;  %v2290_v21 = vpop.permute.xlu0 %2289 }
 0xa43   : > { %v2186_v16 = vsel %vm1215_vm2, %v2181_v15, 0 }
 0xa44   : > { %3076 = vmatpush3.bf16.xpose.msra.mxu1 %v2186_v16 }
 0xa45   : > { %3087 = vmatprep.subr.bf16.mxu1 %v3474_v8 }
 0xa46   : > { %v2292_v17 = vpop.permute.xlu1 %2291 }
 0xa47   : > { %v2297_v20 = vsel %vm1215_vm2, %v2292_v17, 0 }
 0xa4b   : > { %3078 = vmatmul.mubr.msk.bf16.vlgmr.msra.gmra.mrb[32].mxu1 %vm1215_vm2, %v2179_v19 }
 0xa4c   : > { %3088 = vmatpush3.bf16.xpose.msra.mxu1 %v2297_v20  ;;  %3089 = vmatprep.mubr.msk.bf16.mxu1 %vm3475_vm1, %v3474_v8 }
 0xa4d   : > { %3099 = vmatprep.subr.bf16.mxu1 %v3474_v8 }
 0xa53   : > { %3090 = vmatmul.mubr.msk.bf16.vlgmr.msra.gmra.mrb[36].mxu1 %vm1215_vm2, %v2290_v21 }
 0xa54   : > { %3103 = vmatprep.mubr.msk.bf16.mxu1 %vm3475_vm1, %v3474_v8 }
 0xaa0   : > { %v1999_v22 = vpop.f32.mrb[24].mxu1 }
 0xaa1   : > { %v2005_v23 = vmul.f32 0.35355338, %v1999_v22  ;;  %v3055_v24 = vpop.f32.mrb[25].mxu1 }
 0xaa2   : > { %v2002_v25 = vpop.f32.mrb[26].mxu1 }
 0xaa3   : > { %v3056_v26 = vpop.f32.mrb[27].mxu1  ;;  %v2006_v27 = vsel %vm1215_vm2, %v2005_v23, -inf }
 0xaa4   : > { %2007 = vmax.xlane.f32.xlu1 %v2006_v27 }
 0xb12   : > { %v2110_v28 = vpop.f32.mrb[28].mxu1 }
 0xb13   : > { %v2116_v29 = vmul.f32 0.35355338, %v2110_v28  ;;  %v3067_v30 = vpop.f32.mrb[29].mxu1 }
 0xb14   : > { %v2113_v31 = vpop.f32.mrb[30].mxu1 }
 0xb15   : > { %v3068_v32 = vpop.f32.mrb[31].mxu1  ;;  %v2117_v33 = vsel %vm1215_vm2, %v2116_v29, -inf }
 0xb16   : > { %2118 = vmax.xlane.f32.xlu0 %v2117_v33 }
 0xb1e   : > { %v2222_v34 = vpop.f32.mrb[32].mxu1 }
 0xb1f   : > { %v2228_v35 = vmul.f32 0.35355338, %v2222_v34  ;;  %v3079_v36 = vpop.f32.mrb[33].mxu1 }
 0xb20   : > { %v2225_v37 = vpop.f32.mrb[34].mxu1 }
 0xb21   : > { %v3080_v38 = vpop.f32.mrb[35].mxu1  ;;  %v2229_v39 = vsel %vm1215_vm2, %v2228_v35, -inf }
 0xb22   : > { %2230 = vmax.xlane.f32.xlu0 %v2229_v39  ;;  %v3226_v38 = vld [vmem:[%s4169_s20] sm:$0xff]  }
 0xb23   : > { %3100 = vmatpush3.bf16.msra.mxu1 %v3226_v38 }
 0xb24   : > { %3101 = vmatprep.subr.bf16.mxu1 %v3474_v8 }
 0xb26   : > { %v2333_v40 = vpop.f32.mrb[36].mxu1 }
 0xb27   : > { %v2339_v41 = vmul.f32 0.35355338, %v2333_v40  ;;  %v3091_v42 = vpop.f32.mrb[37].mxu1 }
 0xb28   : > { %v2336_v43 = vpop.f32.mrb[38].mxu1 }
 0xb29   : > { %v3092_v45 = vpop.f32.mrb[39].mxu1  ;;  %v2340_v18 = vsel %vm1215_vm2, %v2339_v41, -inf }
 0xb2a   : > { %2341 = vmax.xlane.f32.xlu1 %v2340_v18 }
 0xb31   : > { %v2008_v46 = vpop.xlane.xlu1 %2007 }
 0xb32   : > { %v2009_v47 = vsub.f32 %v2005_v23, %v2008_v46 }
 0xb34   : > { %v2010_v48 = vmul.f32 1.442695, %v2009_v47  ;;  %v3227_v47 = vld [vmem:[%s4169_s20 + $0x8] sm:$0xff]  }
 0xb35   : > { %3102 = vmatpush3.bf16.msra.mxu1 %v3227_v47 }
 0xb36   : > { %3258 = vpow2.f32 %v2010_v48  ;;  %3115 = vmatprep.subr.bf16.mxu1 %v3474_v8 }
 0xb40   : > { %v3259_v55 = vpop.eup %3258 }
 0xb41   : > { %v2012_v56 = vsel %vm1215_vm2, %v3259_v55, 0.0 }
 0xb42   : > { %2013 = vadd.xlane.f32.xlu0 %v2012_v56 }
 0xba3   : > { %v2119_v59 = vpop.xlane.xlu0 %2118 }
 0xba4   : > { %v2120_v60 = vsub.f32 %v2116_v29, %v2119_v59  ;;  %v2858_v59 = vld [vmem:[#allocation4] ss:$0 sm:$0xff] }
 0xba6   : > { %v2121_v61 = vmul.f32 1.442695, %v2120_v60 }
 0xba8   : > { %3260 = vpow2.f32 %v2121_v61 }
 0xbaf   : > { %v2231_v62 = vpop.xlane.xlu0 %2230 }
 0xbb0   : > { %v2232_v63 = vsub.f32 %v2228_v35, %v2231_v62 }
 0xbb2   : > { %v3261_v0 = vpop.eup %3260  ;;  %v2233_v1 = vmul.f32 1.442695, %v2232_v63 }
 0xbb3   : > { %v2123_v2 = vsel %vm1215_vm2, %v3261_v0, 0.0 }
 0xbb4   : > { %3262 = vpow2.f32 %v2233_v1  ;;  %2124 = vadd.xlane.f32.xlu1 %v2123_v2 }
 0xbb7   : > { %v2342_v6 = vpop.xlane.xlu1 %2341 }
 0xbb8   : > { %v2343_v7 = vsub.f32 %v2339_v41, %v2342_v6 }
 0xbba   : > { %v2344_v9 = vmul.f32 1.442695, %v2343_v7 }
 0xbbe   : > { %v3263_v3 = vpop.eup %3262 }
 0xbbf   : > { %v2235_v4 = vsel %vm1215_vm2, %v3263_v3, 0.0 }
 0xbc0   : > { %2236 = vadd.xlane.f32.xlu0 %v2235_v4 }
 0xbc5   : > { %2241 = vrot.lane.b32.xlu1 %v1958_v58, %s3476_s29  ;;  %s4231_s29 = sld [smem:[#allocation30_spill]] }
 0xbcf   : > { %v2014_v5 = vpop.xlane.xlu0 %2013 }
 0xbd0   : > { %3264 = vrcp.f32 %v2014_v5 }
 0xbd1   : > { %3266 = vpow2.f32 %v2344_v9  ;;  %v3228_v9 = vld [vmem:[%s4173_s24] sm:$0xff]  }
 0xbd6   : > { %2130 = vrot.lane.b32.xlu0 %v1958_v58, %s3477_s6 }
 0xbda   : > { %v3265_v10 = vpop.eup %3264 }
 0xbdb   : > { %v2016_v11 = vmul.f32 %v3265_v10, %v3259_v55  ;;  %v3267_v13 = vpop.eup %3266  ;;  %v3229_v10 = vld [vmem:[%s4173_s24 + $0x8] sm:$0xff]  }
 0xbdc   : > { %v2346_v14 = vsel %vm1215_vm2, %v3267_v13, 0.0 }
 0xbdd   : > { %v2017_v12 = vpack.c.bf16 %v2016_v11, %v2016_v11  ;;  %v3231_v11 = vld [vmem:[%s4231_s29 + $0x8] sm:$0xff]  }
 0xbdf   : > { %3060 = vmatmul.mubr.msk.bf16.vlgmr.msra.gmra.mrb[36].mxu0 %vm1215_vm2, %v2017_v12  ;;  %v3232_v12 = vld [vmem:[%s4231_s29 + $0x10] sm:$0xff]  }
 0xbe0   : > { %3071 = vmatprep.mubr.msk.bf16.mxu0 %vm3475_vm1, %v3474_v8 }
 0xbe9   : > { %2347 = vadd.xlane.f32.xlu1 %v2346_v14  ;;  %v3234_v14 = vld [vmem:[%s4231_s29 + $0x20] sm:$0xff]  }
 0xbfa   : > { %2352 = vrot.lane.b32.xlu1 %v1958_v58, %s3478_s9  ;;  %s4229_s9 = smov 16  }
 0xc41   : > { %v2125_v15 = vpop.xlane.xlu1 %2124 }
 0xc42   : > { %3268 = vrcp.f32 %v2125_v15  ;;  %v3235_v15 = vld [vmem:[%s4231_s29 + $0x28] sm:$0xff]  }
 0xc45   : > { %v2242_v22 = vpop.permute.xlu1 %2241 }
 0xc46   : > { %v2247_v24 = vsel %vm1284_vm3, %v2242_v22, 0 }
 0xc4c   : > { %v3269_v16 = vpop.eup %3268 }
 0xc4d   : > { %v2237_v17 = vpop.xlane.xlu0 %2236  ;;  %v2127_v19 = vmul.f32 %v3269_v16, %v3261_v0 }
 0xc4e   : > { %3270 = vrcp.f32 %v2237_v17 }
 0xc4f   : > { %v2128_v23 = vpack.c.bf16 %v2127_v19, %v2127_v19 }
 0xc51   : > { %v2131_v20 = vpop.permute.xlu0 %2130 }
 0xc52   : > { %v2136_v21 = vsel %vm1284_vm3, %v2131_v20, 0 }
 0xc53   : > { %3070 = vmatpush3.bf16.msra.mxu0 %v2136_v21  ;;  %v2862_v21 = vld [vmem:[#allocation6] ss:$0 sm:$0xff] }
 0xc54   : > { %3081 = vmatprep.subr.bf16.mxu0 %v3474_v8 }
 0xc56   : > { %3072 = vmatmul.mubr.msk.bf16.vlgmr.msra.gmra.mrb[40].mxu0 %vm1215_vm2, %v2128_v23  ;;  %v2863_v23 = vld [vmem:[#allocation7] ss:$0 sm:$0xff] }
 0xc57   : > { %3082 = vmatpush3.bf16.msra.mxu0 %v2247_v24  ;;  %3083 = vmatprep.mubr.msk.bf16.mxu0 %vm3475_vm1, %v3474_v8 }
 0xc58   : > { %v3271_v25 = vpop.eup %3270  ;;  %3093 = vmatprep.subr.bf16.mxu0 %v3474_v8 }
 0xc59   : > { %v2239_v26 = vmul.f32 %v3271_v25, %v3263_v3 }
 0xc5b   : > { %v2240_v27 = vpack.c.bf16 %v2239_v26, %v2239_v26 }
 0xc5e   : > { %3084 = vmatmul.mubr.msk.bf16.vlgmr.msra.gmra.mrb[44].mxu0 %vm1215_vm2, %v2240_v27  ;;  %v3236_v27 = vld [vmem:[%s4231_s29 + $0x30] sm:$0xff]  }
 0xc5f   : > { %3095 = vmatprep.mubr.msk.bf16.mxu0 %vm3475_vm1, %v3474_v8 }
 0xc76   : > { %v2348_v28 = vpop.xlane.xlu1 %2347 }
 0xc77   : > { %3272 = vrcp.f32 %v2348_v28  ;;  %v3237_v28 = vld [vmem:[%s4231_s29 + $0x38] sm:$0xff]  }
 0xc7a   : > { %v2353_v29 = vpop.permute.xlu1 %2352 }
 0xc7b   : > { %v2358_v30 = vsel %vm1284_vm3, %v2353_v29, 0  ;;  %v2864_v29 = vld [vmem:[#allocation9] ss:$0 sm:$0xff] }
 0xc7c   : > { %3094 = vmatpush3.bf16.msra.mxu0 %v2358_v30 }
 0xc7d   : > { %3107 = vmatprep.subr.bf16.mxu0 %v3474_v8 }
 0xc81   : > { %v3273_v31 = vpop.eup %3272 }
 0xc82   : > { %v2350_v32 = vmul.f32 %v3273_v31, %v3267_v13  ;;  %v3233_v13 = vld [vmem:[%s4231_s29 + $0x18] sm:$0xff]  }
 0xc84   : > { %v2351_v33 = vpack.c.bf16 %v2350_v32, %v2350_v32 }
 0xc86   : > { %3096 = vmatmul.mubr.msk.bf16.vlgmr.msra.gmra.mrb[48].mxu0 %vm1215_vm2, %v2351_v33 }
 0xc87   : > { %3111 = vmatprep.mubr.msk.bf16.mxu0 %vm3475_vm1, %v3474_v8  ;;  %3108 = vmatpush3.bf16.msra.mxu0 %v3228_v9 }
 0xc88   : > { %3109 = vmatprep.subr.bf16.mxu0 %v3474_v8 }
 0xc8b   : > { %3110 = vmatpush3.bf16.msra.mxu0 %v3229_v10 }
 0xcb2   : > { %v2058_v34 = vpop.f32.mrb[36].mxu0 }
 0xcb3   : > { %v3061_v35 = vpop.f32.mrb[37].mxu0 }
 0xcb4   : > { %v2061_v36 = vpop.f32.mrb[38].mxu0 }
 0xcb5   : > { %v3062_v37 = vpop.f32.mrb[39].mxu0 }
 0xcb6   : > { %v2868_v37 = vld [vmem:[#allocation10] ss:$0 sm:$0xff] }
 0xd29   : > { %v2172_v39 = vpop.f32.mrb[40].mxu0 }
 0xd2a   : > { %2401 = vrot.lane.b32.xlu0 %v2172_v39, %s3479_s7  ;;  %v3073_v40 = vpop.f32.mrb[41].mxu0  ;;  %s4232_s7 = sld [smem:[#allocation31_spill]] }
 0xd2b   : > { %v2175_v41 = vpop.f32.mrb[42].mxu0 }
 0xd2c   : > { %v3074_v42 = vpop.f32.mrb[43].mxu0 }
 0xd30   : > { %s933_s4 = scalar_lea.vmem %s4232_s7, %s3816_s3 }
 0xd31   : > { %v2283_v43 = vpop.f32.mrb[44].mxu0 }
 0xd32   : > { %2405 = vrot.lane.b32.xlu1 %v2283_v43, %s4229_s9  ;;  %v3085_v45 = vpop.f32.mrb[45].mxu0 }
 0xd33   : > { %v2286_v18 = vpop.f32.mrb[46].mxu0 }
 0xd34   : > { %v3086_v46 = vpop.f32.mrb[47].mxu0 }
 0xd59   : > { %v2394_v48 = vpop.f32.mrb[48].mxu0 }
 0xd5a   : > { %2409 = vrot.lane.b32.xlu0 %v2394_v48, %s4230_s2  ;;  %v3097_v49 = vpop.f32.mrb[49].mxu0 }
 0xd5b   : > { %v2397_v50 = vpop.f32.mrb[50].mxu0 }
 0xd5c   : > { %v3098_v51 = vpop.f32.mrb[51].mxu0 }
 0xd9c   : > { %v2402_v52 = vpop.permute.xlu0 %2401 }
 0xd9d   : > { %v2412_v54 = vsel %vm1215_vm2, %v2058_v34, %v2402_v52 }
 0xda4   : > { %v2406_v53 = vpop.permute.xlu1 %2405 }
 0xda5   : > { %v2413_v55 = vsel %vm1680_vm5, %v2412_v54, %v2406_v53 }
 0xdcc   : > { %v2410_v56 = vpop.permute.xlu0 %2409 }
 0xdcd   : > { %v2414_v58 = vsel %vm1682_vm6, %v2413_v55, %v2410_v56 }
 0xdce   : > { %v2415_v44 = vpack.c.bf16 %v2414_v58, %v2414_v58 }
 0xdd0   : > { %3104 = vmatmul.mubr.msk.bf16.vlgmr.msra.gmra.mrb[40].mxu1 %vm1005_vm0, %v2415_v44 }
 0xdd1   : > { %3131 = vmatprep.mubr.msk.bf16.mxu1 %vm3475_vm1, %v3474_v8 }
 0xea3   : > { %v2471_v60 = vpop.f32.mrb[40].mxu1 }
 0xea4   : > { %v2472_v61 = vadd.f32 %v2858_v59, %v2471_v60  ;;  %v3105_v62 = vpop.f32.mrb[41].mxu1 }
 0xea5   : > { %v2474_v63 = vpop.f32.mrb[42].mxu1 }
 0xea6   : > { %v3106_v0 = vpop.f32.mrb[43].mxu1  ;;  %v2477_v1 = vadd.f32 %v2472_v61, %v4001_v57  ;;  %v3230_v57 = vld [vmem:[%s4231_s29] sm:$0xff]  }
 0xea7   : > { %3116 = vmatpush3.bf16.msra.mxu1 %v3230_v57 }
 0xea8   : > { %v2478_v2 = vsel %vm1005_vm0, %v2477_v1, 0.0  ;;  %3117 = vmatprep.subr.bf16.mxu1 %v3474_v8 }
 0xea9   : > { %2479 = vadd.xlane.f32.xlu1 %v2478_v2 }
 0xeab   : > { %3118 = vmatpush3.bf16.msra.mxu1 %v3231_v11 }
 0xeac   : > { %3119 = vmatprep.subr.bf16.mxu1 %v3474_v8 }
 0xeaf   : > { %3120 = vmatpush3.bf16.msra.mxu1 %v3232_v12 }
 0xeb0   : > { %3121 = vmatprep.subr.bf16.mxu1 %v3474_v8 }
 0xeb3   : > { %3122 = vmatpush3.bf16.msra.mxu1 %v3233_v13 }
 0xeb4   : > { %3123 = vmatprep.subr.bf16.mxu1 %v3474_v8 }
 0xeb7   : > { %3124 = vmatpush3.bf16.msra.mxu1 %v3234_v14 }
 0xeb8   : > { %3125 = vmatprep.subr.bf16.mxu1 %v3474_v8 }
 0xebb   : > { %3126 = vmatpush3.bf16.msra.mxu1 %v3235_v15 }
 0xebc   : > { %3127 = vmatprep.subr.bf16.mxu1 %v3474_v8 }
 0xebf   : > { %3128 = vmatpush3.bf16.msra.mxu1 %v3236_v27 }
 0xec0   : > { %3129 = vmatprep.subr.bf16.mxu1 %v3474_v8 }
 0xec3   : > { %3130 = vmatpush3.bf16.msra.mxu1 %v3237_v28 }
 0xf36   : > { %v2480_v3 = vpop.xlane.xlu1 %2479 }
 0xf37   : > { %v2481_v4 = vmul.f32 0.03125, %v2480_v3 }
 0xf39   : > { %v2482_v5 = vsub.f32 %v2477_v1, %v2481_v4 }
 0xf3b   : > { %v2483_v6 = vmul.f32 %v2482_v5, %v2482_v5 }
 0xf3d   : > { %v2484_v7 = vsel %vm1005_vm0, %v2483_v6, 0.0 }
 0xf3e   : > { %2485 = vadd.xlane.f32.xlu0 %v2484_v7 }
 0xfcb   : > { %v2486_v16 = vpop.xlane.xlu0 %2485 }
 0xfcc   : > { %v2487_v17 = vmul.f32 0.03125, %v2486_v16 }
 0xfce   : > { %v2488_v19 = vadd.f32 1e-05, %v2487_v17 }
 0xfd0   : > { %3274 = vrsqrt.f32 %v2488_v19 }
 0xfda   : > { %v3275_v20 = vpop.eup %3274 }
 0xfdb   : > { %v2490_v22 = vmul.f32 %v3275_v20, %v2482_v5 }
 0xfdd   : > { %v2497_v24 = vmul.f32 %v2862_v21, %v2490_v22 }
 0xfdf   : > { %v2504_v25 = vadd.f32 %v2863_v23, %v2497_v24 }
 0xfe1   : > { %v2505_v26 = vpack.c.bf16 %v2504_v25, %v2504_v25 }
 0xfe3   : > { %3112 = vmatmul.mubr.msk.bf16.vlgmr.msra.gmra.mrb[52].mxu0 %vm1005_vm0, %v2505_v26 }
0x10b6   : > { %v2561_v30 = vpop.f32.mrb[52].mxu0 }
0x10b7   : > { %v2562_v31 = vadd.f32 %v2864_v29, %v2561_v30  ;;  %v3113_v32 = vpop.f32.mrb[53].mxu0 }
0x10b8   : > { %v2564_v33 = vpop.f32.mrb[54].mxu0 }
0x10b9   : > { %v2567_v34 = vmax.f32 %v2562_v31, 0.0  ;;  %v3114_v35 = vpop.f32.mrb[55].mxu0 }
0x10bb   : > { %v2568_v36 = vpack.c.bf16 %v2567_v34, %v2567_v34 }
0x10bd   : > { %3132 = vmatmul.mubr.bf16.vlgmr.msra.gmra.mrb[44].mxu1 %v2568_v36 }
0x1190   : > { %v2657_v38 = vpop.f32.mrb[44].mxu1 }
0x1191   : > { %v2658_v39 = vadd.f32 %v2868_v37, %v2657_v38  ;;  %v3133_v40 = vpop.f32.mrb[45].mxu1 }
0x1192   : > { %v2660_v8 = vpop.f32.mrb[46].mxu1 }
0x1193   : > { %v2663_v41 = vadd.f32 %v2658_v39, %v2504_v25  ;;  %v3134_v42 = vpop.f32.mrb[47].mxu1 }
0x1195   : > { %2664 = vst.msk [vmem:[%s933_s4] sm:$0xff] %vm1005_vm0, %v2663_v41 }
0x1196 PF: > { %s4233_s5 = sld [smem:[#allocation16_spill]] }
0x119c   : > { %s42_s8 = sadd.s32 1, %s4233_s5  }
0x119d   : > { %p39_p11 = scmp.ge.s32.totalorder %s42_s8, 4  }
0x119f   :  { %41 = sbr.rel (!%p39_p11) target bundleno = 20 (0x14), region = 190 }
0x11a6   :  { %2684 = vsyncpa [#allocation3], 1 }
0x11a7   :  { %2686 = vsyncpa [#allocation3 + $0x1], 1 }
0x11a8   :  { %2687 = vsyncpa [#allocation5], 1 }
0x11a9   :  { %2688 = vsyncpa [#allocation8], 1 }
0x11aa   :  { %2689 = vsyncpa [#allocation11], 1 }

</bundles_post_ra>
